<compile_context>
chip_gen: v6e
topology: v6e:2x2x1
jax: 0.10.0
libtpu: 0.0.40
codegen_flags: <defaults>
</compile_context>

<pallas_src>
import functools

import numpy as np

import jax
import jax.numpy as jnp
from jax import lax
from jax.experimental import pallas as pl
from jax.experimental.pallas import tpu as pltpu


def _vmem():
    return pl.BlockSpec(memory_space=pltpu.MemorySpace.VMEM)


# ----------------------------------------------------------------------------
# Pallas kernels
# ----------------------------------------------------------------------------

def _conv_relu_pool_kernel(cols_ref, w_ref, b_ref, tgt_ref, val_ref, idx_ref):
    # cols: (4, Kp, M) im2col columns split by 2x2 window offset (di, dj),
    #       M = B*Hs*Ws on lanes.  w: (Cout, Kp), b: (Cout, 1),
    # tgt:  (4, 1, M) int32 torch flat index (h*W + w) of each window slot.
    best = None
    besti = None
    for d in range(4):
        y = jnp.dot(w_ref[...], cols_ref[d], preferred_element_type=jnp.float32)
        y = jnp.maximum(y + b_ref[...], 0.0)
        cand = jnp.broadcast_to(tgt_ref[d], y.shape)
        if d == 0:
            best, besti = y, cand
        else:
            better = y > best          # strict '>' -> first-occurrence tie-break
            best = jnp.where(better, y, best)
            besti = jnp.where(better, cand, besti)
    val_ref[...] = best
    idx_ref[...] = besti


def _middle_kernel(a0_ref, idx2_ref, tgt_ref,
                   w1_ref, b1_ref, w2_ref, b2_ref, w3_ref, b3_ref,
                   w4_ref, b4_ref, w5_ref, b5_ref, w6_ref, b6_ref,
                   wt4_ref, bt4_ref, out_ref, *, full):
    # a0/idx2: (B, 160) pool2 output / indices flattened per image (c, h, w).
    # w1/b1 already contain conv3+flatten folded into fc1; wt4/bt4 is the
    # unflatten+convT4 stage as a dense (80, 160) map.
    def aff(h, w, b, relu=True):
        y = jnp.dot(h, w[...], preferred_element_type=jnp.float32) + b[...]
        return jnp.maximum(y, 0.0) if relu else y

    h = aff(a0_ref[...], w1_ref, b1_ref)        # conv3 + flatten + fc1  (B, 40)
    h = aff(h, w2_ref, b2_ref)                  # fc2                    (B, 20)
    h = aff(h, w3_ref, b3_ref)                  # fc3                    (B, 10)
    if not full:
        out_ref[...] = h
        return
    h = aff(h, w4_ref, b4_ref)                  # fc4                    (B, 20)
    h = aff(h, w5_ref, b5_ref)                  # fc5                    (B, 40)
    h = aff(h, w6_ref, b6_ref)                  # fc6                    (B, 80)
    a4 = aff(h, wt4_ref, bt4_ref)               # unflatten+convT4+ReLU  (B, 160)
    # maxunpool(idx2) expressed as per-window-offset masking.  Valid because
    # the indices come from the matching 2x2 pool of the same spatial size.
    idx2 = idx2_ref[...]
    for d in range(4):
        out_ref[d] = jnp.where(idx2 == tgt_ref[d], a4, 0.0)


def _convt_relu_unpool_kernel(cols_ref, w_ref, b_ref, idx_ref, tgt_ref, out_ref):
    # convT5 (as lane-dense GEMM on pre-padded columns) + bias + ReLU, then
    # maxunpool(idx1) masking.  cols: (Kp, M), w: (Cout, Kp), idx: (Cout, M).
    y = jnp.dot(w_ref[...], cols_ref[...], preferred_element_type=jnp.float32)
    y = jnp.maximum(y + b_ref[...], 0.0)
    idx = idx_ref[...]
    for d in range(4):
        out_ref[d] = jnp.where(idx == tgt_ref[d], y, 0.0)


def _convt_final_kernel(cols_ref, w_ref, b_ref, out_ref):
    y = jnp.dot(w_ref[...], cols_ref[...], preferred_element_type=jnp.float32)
    out_ref[...] = y + b_ref[...]


# ----------------------------------------------------------------------------
# pallas_call wrappers (single VMEM-resident block each; no grid needed at B=2)
# ----------------------------------------------------------------------------

def _conv_relu_pool(cols, w, b, tgt):
    cout, m = w.shape[0], cols.shape[2]
    return pl.pallas_call(
        _conv_relu_pool_kernel,
        out_shape=(jax.ShapeDtypeStruct((cout, m), jnp.float32),
                   jax.ShapeDtypeStruct((cout, m), jnp.int32)),
        in_specs=[_vmem()] * 4,
        out_specs=(_vmem(), _vmem()),
    )(cols, w, b, tgt)


def _middle(a0, idx2f, tgt, q, *, full):
    b = a0.shape[0]
    out_shape = (jax.ShapeDtypeStruct((4, b, 160), jnp.float32) if full
                 else jax.ShapeDtypeStruct((b, 10), jnp.float32))
    args = (a0, idx2f, tgt,
            q["w_fc1"], q["b_fc1"], q["w_fc2"], q["b_fc2"], q["w_fc3"], q["b_fc3"],
            q["w_fc4"], q["b_fc4"], q["w_fc5"], q["b_fc5"], q["w_fc6"], q["b_fc6"],
            q["w_ct4"], q["b_ct4"])
    return pl.pallas_call(
        functools.partial(_middle_kernel, full=full),
        out_shape=out_shape,
        in_specs=[_vmem()] * len(args),
        out_specs=_vmem(),
    )(*args)


def _convt_relu_unpool(cols, w, b, idx, tgt):
    cout, m = w.shape[0], cols.shape[1]
    return pl.pallas_call(
        _convt_relu_unpool_kernel,
        out_shape=jax.ShapeDtypeStruct((4, cout, m), jnp.float32),
        in_specs=[_vmem()] * 5,
        out_specs=_vmem(),
    )(cols, w, b, idx, tgt)


def _convt_final(cols, w, b):
    cout, m = w.shape[0], cols.shape[1]
    return pl.pallas_call(
        _convt_final_kernel,
        out_shape=jax.ShapeDtypeStruct((cout, m), jnp.float32),
        in_specs=[_vmem()] * 3,
        out_specs=_vmem(),
    )(cols, w, b)


# ----------------------------------------------------------------------------
# XLA glue: im2col / window-split / interleave (tiny tensors, fuse into a few
# HLO fusions each) and compile-time pool-index constants.
# ----------------------------------------------------------------------------

def _window_split_cols(x, k, k_pad):
    """im2col for a valid k x k conv followed by a 2x2/2 pool.
    x: (B, C, H, W) -> (4, k_pad, B*Hs*Ws); leading dim = window offset (di, dj)
    row-major, rows ordered (c, kh, kw), columns ordered (b, hs, ws)."""
    B, C, H, W = x.shape
    OH, OW = H - k + 1, W - k + 1
    Hs, Ws = OH // 2, OW // 2
    parts = []
    for kh in range(k):
        for kw in range(k):
            s = x[:, :, kh:kh + 2 * Hs, kw:kw + 2 * Ws]
            parts.append(s.reshape(B, C, Hs, 2, Ws, 2))
    p = jnp.stack(parts, axis=0)                    # (k*k, B, C, Hs, di, Ws, dj)
    p = jnp.transpose(p, (4, 6, 2, 0, 1, 3, 5))     # (di, dj, C, k*k, B, Hs, Ws)
    cols = p.reshape(4, C * k * k, B * Hs * Ws)
    if k_pad > C * k * k:
        cols = jnp.pad(cols, ((0, 0), (0, k_pad - C * k * k), (0, 0)))
    return cols


def _im2col(xpad, k, k_pad):
    """Standard im2col for a valid k x k conv on an already padded input.
    xpad: (B, C, Hp, Wp) -> (k_pad, B*OH*OW); rows (c, kh, kw), cols (b, oh, ow)."""
    B, C, Hp, Wp = xpad.shape
    OH, OW = Hp - k + 1, Wp - k + 1
    parts = []
    for kh in range(k):
        for kw in range(k):
            parts.append(xpad[:, :, kh:kh + OH, kw:kw + OW])
    p = jnp.stack(parts, axis=0)                    # (k*k, B, C, OH, OW)
    p = jnp.transpose(p, (2, 0, 1, 3, 4))           # (C, k*k, B, OH, OW)
    cols = p.reshape(C * k * k, B * OH * OW)
    if k_pad > C * k * k:
        cols = jnp.pad(cols, ((0, k_pad - C * k * k), (0, 0)))
    return cols


def _pool_targets(n_outer, hs_dim, ws_dim, w_in):
    """Torch flat index (h*W + w) of each 2x2 window slot as a (4, 1, L) int32
    constant; the lane axis is ordered (outer, hs, ws)."""
    pos = np.arange(hs_dim * ws_dim)
    hs, ws = pos // ws_dim, pos % ws_dim
    t = np.stack([(2 * hs + di) * w_in + (2 * ws + dj)
                  for di in (0, 1) for dj in (0, 1)], axis=0)
    t = np.tile(t, (1, n_outer))
    return jnp.asarray(t[:, None, :], dtype=jnp.int32)


# ----------------------------------------------------------------------------
# AE forward
# ----------------------------------------------------------------------------

def ae_forward(x, q, *, training=True):
    B = x.shape[0]

    # -- stage 1: conv1(1->5, 5x5) + ReLU + maxpool 2x2 (one kernel) ----------
    cols1 = _window_split_cols(x, 5, 32)                     # (4, 32, B*144)
    t24 = _pool_targets(B, 12, 12, 24)
    p1, idx1 = _conv_relu_pool(cols1, q["w_conv1"], q["b_conv1"], t24)   # (5, B*144)

    # -- stage 2: conv2(5->10, 5x5) + ReLU + maxpool 2x2 (one kernel) ---------
    p1img = p1.reshape(5, B, 12, 12).transpose(1, 0, 2, 3)   # (B, 5, 12, 12)
    cols2 = _window_split_cols(p1img, 5, 128)                # (4, 128, B*16)
    t8b = _pool_targets(B, 4, 4, 8)
    p2, idx2 = _conv_relu_pool(cols2, q["w_conv2"], q["b_conv2"], t8b)   # (10, B*16)

    # -- middle: conv3 + fc1..fc6 + convT4 + ReLU + unpool(idx2) masks --------
    a0 = p2.reshape(10, B, 16).transpose(1, 0, 2).reshape(B, 160)
    idx2f = idx2.reshape(10, B, 16).transpose(1, 0, 2).reshape(B, 160)
    t8c = _pool_targets(10, 4, 4, 8)
    mid = _middle(a0, idx2f, t8c, q, full=training)
    if not training:
        return mid                                           # (B, 10)

    # -- decoder 1: unpool(idx2) -> convT5 + ReLU -> unpool(idx1) masks -------
    u = mid.reshape(2, 2, B, 10, 4, 4)                       # (di, dj, b, c, hs, ws)
    u = jnp.transpose(u, (2, 3, 4, 0, 5, 1)).reshape(B, 10, 8, 8)
    up = jnp.pad(u, ((0, 0), (0, 0), (4, 4), (4, 4)))
    cols5 = _im2col(up, 5, 256)                              # (256, B*144)
    u4 = _convt_relu_unpool(cols5, q["w_ct5"], q["b_ct5"], idx1, t24)    # (4, 5, B*144)

    # -- decoder 2: unpool(idx1) -> convT6 ------------------------------------
    v = u4.reshape(2, 2, 5, B, 12, 12)                       # (di, dj, c, b, hs, ws)
    v = jnp.transpose(v, (3, 2, 4, 0, 5, 1)).reshape(B, 5, 24, 24)
    vp = jnp.pad(v, ((0, 0), (0, 0), (4, 4), (4, 4)))
    cols6 = _im2col(vp, 5, 128)                              # (128, B*784)
    y = _convt_final(cols6, q["w_ct6"], q["b_ct6"])          # (1, B*784)
    return y.reshape(B, 1, 28, 28)


# ----------------------------------------------------------------------------
# Parameters (torch layouts) and one-time kernel-ready preparation
# ----------------------------------------------------------------------------

def init_params(key):
    specs = {
        "conv1": ((5, 1, 5, 5), (5,)),
        "conv2": ((10, 5, 5, 5), (10,)),
        "conv3": ((20, 10, 3, 3), (20,)),
        "fc1": ((40, 80), (40,)),
        "fc2": ((20, 40), (20,)),
        "fc3": ((10, 20), (10,)),
        "fc4": ((20, 10), (20,)),
        "fc5": ((40, 20), (40,)),
        "fc6": ((80, 40), (80,)),
        "conv4": ((20, 10, 3, 3), (10,)),   # ConvTranspose2d: (Cin, Cout, k, k)
        "conv5": ((10, 5, 5, 5), (5,)),
        "conv6": ((5, 1, 5, 5), (1,)),
    }
    params = {}
    keys = jax.random.split(key, 2 * len(specs))
    for i, (name, (wshape, bshape)) in enumerate(specs.items()):
        fan_in = int(np.prod(wshape[1:]))
        scale = 1.0 / np.sqrt(fan_in)
        params[name + "_w"] = scale * jax.random.normal(keys[2 * i], wshape, jnp.float32)
        params[name + "_b"] = scale * jax.random.normal(keys[2 * i + 1], bshape, jnp.float32)
    return params


def prepare_params(p):
    """One-time prep: GEMM-shaped, K-padded, pre-flipped / pre-composed weights."""
    hi = lax.Precision.HIGHEST

    def pad_cols(w, kp):
        return jnp.pad(w, ((0, 0), (0, kp - w.shape[1])))

    q = {}
    # encoder convs -> (Cout, K_pad)
    q["w_conv1"] = pad_cols(p["conv1_w"].reshape(5, 25), 32)
    q["b_conv1"] = p["conv1_b"].reshape(5, 1)
    q["w_conv2"] = pad_cols(p["conv2_w"].reshape(10, 125), 128)
    q["b_conv2"] = p["conv2_b"].reshape(10, 1)

    # conv3 (valid 3x3 on 4x4 -> 2x2) as a dense (80, 160) map, folded into fc1
    w3 = p["conv3_w"]
    c3 = jnp.zeros((20, 4, 10, 16), jnp.float32)
    for oh in range(2):
        for ow in range(2):
            for kh in range(3):
                for kw in range(3):
                    c3 = c3.at[:, oh * 2 + ow, :, (oh + kh) * 4 + (ow + kw)].set(w3[:, :, kh, kw])
    c3 = c3.reshape(80, 160)
    c3b = jnp.repeat(p["conv3_b"], 4)
    q["w_fc1"] = jnp.dot(p["fc1_w"], c3, precision=hi).T                 # (160, 40)
    q["b_fc1"] = (p["fc1_b"] + jnp.dot(p["fc1_w"], c3b, precision=hi)).reshape(1, -1)
    for i in range(2, 7):
        q[f"w_fc{i}"] = p[f"fc{i}_w"].T
        q[f"b_fc{i}"] = p[f"fc{i}_b"].reshape(1, -1)

    # convT4 (2x2 -> 4x4) as a dense (80, 160) map acting on (B, 80)
    w4 = p["conv4_w"]
    c4 = jnp.zeros((10, 16, 20, 4), jnp.float32)
    for ih in range(2):
        for iw in range(2):
            for kh in range(3):
                for kw in range(3):
                    y, xx = ih + kh, iw + kw
                    c4 = c4.at[:, y * 4 + xx, :, ih * 2 + iw].set(w4[:, :, kh, kw].T)
    q["w_ct4"] = c4.reshape(160, 80).T                                   # (80, 160)
    q["b_ct4"] = jnp.repeat(p["conv4_b"], 16).reshape(1, 160)

    # convT5 / convT6 as ordinary convs on the zero-padded input (pre-flipped)
    w5 = jnp.transpose(p["conv5_w"][:, :, ::-1, ::-1], (1, 0, 2, 3)).reshape(5, 250)
    q["w_ct5"] = pad_cols(w5, 256)
    q["b_ct5"] = p["conv5_b"].reshape(5, 1)
    w6 = jnp.transpose(p["conv6_w"][:, :, ::-1, ::-1], (1, 0, 2, 3)).reshape(1, 125)
    q["w_ct6"] = pad_cols(w6, 128)
    q["b_ct6"] = p["conv6_b"].reshape(1, 1)
    return q


# ----------------------------------------------------------------------------
# Pure-JAX reference (for a light correctness check in __main__)
# ----------------------------------------------------------------------------

def _reference_forward(x, p, *, training=True):
    dn = ("NCHW", "OIHW", "NCHW")
    prec = lax.Precision.HIGHEST

    def conv(h, w, b):
        y = lax.conv_general_dilated(h, w, (1, 1), "VALID",
                                     dimension_numbers=dn, precision=prec)
        return y + b.reshape(1, -1, 1, 1)

    def convt(h, w, b):
        k = w.shape[-1]
        wc = jnp.transpose(w[:, :, ::-1, ::-1], (1, 0, 2, 3))
        hp = jnp.pad(h, ((0, 0), (0, 0), (k - 1, k - 1), (k - 1, k - 1)))
        return conv(hp, wc, b)

    def pool(h):
        B, C, H, W = h.shape
        hw = h.reshape(B, C, H // 2, 2, W // 2, 2)
        hw = jnp.transpose(hw, (0, 1, 2, 4, 3, 5)).reshape(B, C, H // 2, W // 2, 4)
        vals = hw.max(axis=-1)
        arg = jnp.argmax(hw, axis=-1)
        di, dj = arg // 2, arg % 2
        hh = 2 * jnp.arange(H // 2)[None, None, :, None]
        ww = 2 * jnp.arange(W // 2)[None, None, None, :]
        return vals, (hh + di) * W + (ww + dj)

    def unpool(v, idx, H, W):
        B, C, Hs, Ws = v.shape
        out = jnp.zeros((B, C, H * W), v.dtype)
        bb = jnp.arange(B)[:, None, None, None]
        cc = jnp.arange(C)[None, :, None, None]
        return out.at[bb, cc, idx].set(v).reshape(B, C, H, W)

    def fc(h, w, b):
        return jnp.maximum(jnp.dot(h, w.T, precision=prec) + b, 0.0)

    h = jnp.maximum(conv(x, p["conv1_w"], p["conv1_b"]), 0.0)
    h, i1 = pool(h)
    h = jnp.maximum(conv(h, p["conv2_w"], p["conv2_b"]), 0.0)
    h, i2 = pool(h)
    h = conv(h, p["conv3_w"], p["conv3_b"])
    B = h.shape[0]
    h = h.reshape(B, -1)
    h = fc(h, p["fc1_w"], p["fc1_b"])
    h = fc(h, p["fc2_w"], p["fc2_b"])
    h = fc(h, p["fc3_w"], p["fc3_b"])
    if not training:
        return h
    h = fc(h, p["fc4_w"], p["fc4_b"])
    h = fc(h, p["fc5_w"], p["fc5_b"])
    h = fc(h, p["fc6_w"], p["fc6_b"])
    h = h.reshape(B, 20, 2, 2)
    h = jnp.maximum(convt(h, p["conv4_w"], p["conv4_b"]), 0.0)
    h = unpool(h, i2, 8, 8)
    h = jnp.maximum(convt(h, p["conv5_w"], p["conv5_b"]), 0.0)
    h = unpool(h, i1, 24, 24)
    return convt(h, p["conv6_w"], p["conv6_b"])


# ----------------------------------------------------------------------------

if __name__ == "__main__":
    key = jax.random.PRNGKey(0)
    k_params, k_x = jax.random.split(key)
    params = init_params(k_params)
    q = prepare_params(params)
    # Input shape fixed by the module: conv/pool chain + Linear(80,...) => 1x28x28.
    x = jax.random.normal(k_x, (2, 1, 28, 28), dtype=jnp.float32)

    fwd = jax.jit(functools.partial(ae_forward, training=True))
    out = jax.block_until_ready(fwd(x, q))
    assert out.shape == (2, 1, 28, 28) and out.dtype == jnp.float32, (out.shape, out.dtype)

    # light correctness check against a pure-JAX reference
    ref = jax.block_until_ready(
        jax.jit(functools.partial(_reference_forward, training=True))(x, params))
    err = float(jnp.max(jnp.abs(out - ref)))
    tol = 5e-2 * (1.0 + float(jnp.max(jnp.abs(ref))))
    assert err <= tol, f"mismatch vs reference: max abs err {err} (tol {tol})"

    print("KERNEL_OK")
</pallas_src>

<mosaic_0001>
module attributes {stable_mosaic.version = 11 : i64} {
  func.func @_conv_relu_pool_kernel(%arg0: memref<4x32x288xf32, #tpu.memory_space<vmem>>, %arg1: memref<5x32xf32, #tpu.memory_space<vmem>>, %arg2: memref<5x1xf32, #tpu.memory_space<vmem>>, %arg3: memref<4x1x288xi32, #tpu.memory_space<vmem>>, %arg4: memref<5x288xf32, #tpu.memory_space<vmem>>, %arg5: memref<5x288xi32, #tpu.memory_space<vmem>>) attributes {dimension_semantics = [], scalar_prefetch = 0 : i64, scratch_operands = 0 : i64, tpu.core_type = #tpu.core_type<tc>} {
    %c0 = arith.constant 0 : index
    %c0_0 = arith.constant 0 : index
    %0 = vector.load %arg1[%c0, %c0_0] : memref<5x32xf32, #tpu.memory_space<vmem>>, vector<5x32xf32>
    %c0_1 = arith.constant 0 : index
    %c0_2 = arith.constant 0 : index
    %c0_3 = arith.constant 0 : index
    %1 = vector.load %arg0[%c0_1, %c0_2, %c0_3] : memref<4x32x288xf32, #tpu.memory_space<vmem>>, vector<1x32x288xf32>
    %2 = vector.shape_cast %1 : vector<1x32x288xf32> to vector<32x288xf32>
    %cst = arith.constant dense<0.000000e+00> : vector<5x288xf32>
    %3 = tpu.matmul %0, %2, %cst {dimension_numbers = #tpu.dot_dimension_numbers<[1], [0], [0], [1], [0, 0, 1, 1], [], []>} : vector<5x32xf32>, vector<32x288xf32>, vector<5x288xf32> -> vector<5x288xf32>
    %c0_4 = arith.constant 0 : index
    %c0_5 = arith.constant 0 : index
    %4 = vector.load %arg2[%c0_4, %c0_5] : memref<5x1xf32, #tpu.memory_space<vmem>>, vector<5x1xf32>
    %5 = vector.broadcast %4 : vector<5x1xf32> to vector<5x288xf32>
    %6 = arith.addf %3, %5 : vector<5x288xf32>
    %cst_6 = arith.constant 0.000000e+00 : f32
    %7 = vector.broadcast %cst_6 : f32 to vector<5x288xf32>
    %8 = arith.maximumf %6, %7 : vector<5x288xf32>
    %c0_7 = arith.constant 0 : index
    %c0_8 = arith.constant 0 : index
    %c0_9 = arith.constant 0 : index
    %9 = vector.load %arg3[%c0_7, %c0_8, %c0_9] : memref<4x1x288xi32, #tpu.memory_space<vmem>>, vector<1x1x288xi32>
    %10 = vector.shape_cast %9 : vector<1x1x288xi32> to vector<1x288xi32>
    %11 = vector.shape_cast %10 : vector<1x288xi32> to vector<1x288xi32>
    %12 = vector.broadcast %11 : vector<1x288xi32> to vector<5x288xi32>
    %c0_10 = arith.constant 0 : index
    %c0_11 = arith.constant 0 : index
    %13 = vector.load %arg1[%c0_10, %c0_11] : memref<5x32xf32, #tpu.memory_space<vmem>>, vector<5x32xf32>
    %c1 = arith.constant 1 : index
    %c0_12 = arith.constant 0 : index
    %c0_13 = arith.constant 0 : index
    %14 = vector.load %arg0[%c1, %c0_12, %c0_13] : memref<4x32x288xf32, #tpu.memory_space<vmem>>, vector<1x32x288xf32>
    %15 = vector.shape_cast %14 : vector<1x32x288xf32> to vector<32x288xf32>
    %cst_14 = arith.constant dense<0.000000e+00> : vector<5x288xf32>
    %16 = tpu.matmul %13, %15, %cst_14 {dimension_numbers = #tpu.dot_dimension_numbers<[1], [0], [0], [1], [0, 0, 1, 1], [], []>} : vector<5x32xf32>, vector<32x288xf32>, vector<5x288xf32> -> vector<5x288xf32>
    %c0_15 = arith.constant 0 : index
    %c0_16 = arith.constant 0 : index
    %17 = vector.load %arg2[%c0_15, %c0_16] : memref<5x1xf32, #tpu.memory_space<vmem>>, vector<5x1xf32>
    %18 = vector.broadcast %17 : vector<5x1xf32> to vector<5x288xf32>
    %19 = arith.addf %16, %18 : vector<5x288xf32>
    %cst_17 = arith.constant 0.000000e+00 : f32
    %20 = vector.broadcast %cst_17 : f32 to vector<5x288xf32>
    %21 = arith.maximumf %19, %20 : vector<5x288xf32>
    %c1_18 = arith.constant 1 : index
    %c0_19 = arith.constant 0 : index
    %c0_20 = arith.constant 0 : index
    %22 = vector.load %arg3[%c1_18, %c0_19, %c0_20] : memref<4x1x288xi32, #tpu.memory_space<vmem>>, vector<1x1x288xi32>
    %23 = vector.shape_cast %22 : vector<1x1x288xi32> to vector<1x288xi32>
    %24 = vector.shape_cast %23 : vector<1x288xi32> to vector<1x288xi32>
    %25 = vector.broadcast %24 : vector<1x288xi32> to vector<5x288xi32>
    %26 = arith.cmpf ogt, %21, %8 : vector<5x288xf32>
    %27 = arith.select %26, %21, %8 : vector<5x288xi1>, vector<5x288xf32>
    %28 = arith.select %26, %25, %12 : vector<5x288xi1>, vector<5x288xi32>
    %c0_21 = arith.constant 0 : index
    %c0_22 = arith.constant 0 : index
    %29 = vector.load %arg1[%c0_21, %c0_22] : memref<5x32xf32, #tpu.memory_space<vmem>>, vector<5x32xf32>
    %c2 = arith.constant 2 : index
    %c0_23 = arith.constant 0 : index
    %c0_24 = arith.constant 0 : index
    %30 = vector.load %arg0[%c2, %c0_23, %c0_24] : memref<4x32x288xf32, #tpu.memory_space<vmem>>, vector<1x32x288xf32>
    %31 = vector.shape_cast %30 : vector<1x32x288xf32> to vector<32x288xf32>
    %cst_25 = arith.constant dense<0.000000e+00> : vector<5x288xf32>
    %32 = tpu.matmul %29, %31, %cst_25 {dimension_numbers = #tpu.dot_dimension_numbers<[1], [0], [0], [1], [0, 0, 1, 1], [], []>} : vector<5x32xf32>, vector<32x288xf32>, vector<5x288xf32> -> vector<5x288xf32>
    %c0_26 = arith.constant 0 : index
    %c0_27 = arith.constant 0 : index
    %33 = vector.load %arg2[%c0_26, %c0_27] : memref<5x1xf32, #tpu.memory_space<vmem>>, vector<5x1xf32>
    %34 = vector.broadcast %33 : vector<5x1xf32> to vector<5x288xf32>
    %35 = arith.addf %32, %34 : vector<5x288xf32>
    %cst_28 = arith.constant 0.000000e+00 : f32
    %36 = vector.broadcast %cst_28 : f32 to vector<5x288xf32>
    %37 = arith.maximumf %35, %36 : vector<5x288xf32>
    %c2_29 = arith.constant 2 : index
    %c0_30 = arith.constant 0 : index
    %c0_31 = arith.constant 0 : index
    %38 = vector.load %arg3[%c2_29, %c0_30, %c0_31] : memref<4x1x288xi32, #tpu.memory_space<vmem>>, vector<1x1x288xi32>
    %39 = vector.shape_cast %38 : vector<1x1x288xi32> to vector<1x288xi32>
    %40 = vector.shape_cast %39 : vector<1x288xi32> to vector<1x288xi32>
    %41 = vector.broadcast %40 : vector<1x288xi32> to vector<5x288xi32>
    %42 = arith.cmpf ogt, %37, %27 : vector<5x288xf32>
    %43 = arith.select %42, %37, %27 : vector<5x288xi1>, vector<5x288xf32>
    %44 = arith.select %42, %41, %28 : vector<5x288xi1>, vector<5x288xi32>
    %c0_32 = arith.constant 0 : index
    %c0_33 = arith.constant 0 : index
    %45 = vector.load %arg1[%c0_32, %c0_33] : memref<5x32xf32, #tpu.memory_space<vmem>>, vector<5x32xf32>
    %c3 = arith.constant 3 : index
    %c0_34 = arith.constant 0 : index
    %c0_35 = arith.constant 0 : index
    %46 = vector.load %arg0[%c3, %c0_34, %c0_35] : memref<4x32x288xf32, #tpu.memory_space<vmem>>, vector<1x32x288xf32>
    %47 = vector.shape_cast %46 : vector<1x32x288xf32> to vector<32x288xf32>
    %cst_36 = arith.constant dense<0.000000e+00> : vector<5x288xf32>
    %48 = tpu.matmul %45, %47, %cst_36 {dimension_numbers = #tpu.dot_dimension_numbers<[1], [0], [0], [1], [0, 0, 1, 1], [], []>} : vector<5x32xf32>, vector<32x288xf32>, vector<5x288xf32> -> vector<5x288xf32>
    %c0_37 = arith.constant 0 : index
    %c0_38 = arith.constant 0 : index
    %49 = vector.load %arg2[%c0_37, %c0_38] : memref<5x1xf32, #tpu.memory_space<vmem>>, vector<5x1xf32>
    %50 = vector.broadcast %49 : vector<5x1xf32> to vector<5x288xf32>
    %51 = arith.addf %48, %50 : vector<5x288xf32>
    %cst_39 = arith.constant 0.000000e+00 : f32
    %52 = vector.broadcast %cst_39 : f32 to vector<5x288xf32>
    %53 = arith.maximumf %51, %52 : vector<5x288xf32>
    %c3_40 = arith.constant 3 : index
    %c0_41 = arith.constant 0 : index
    %c0_42 = arith.constant 0 : index
    %54 = vector.load %arg3[%c3_40, %c0_41, %c0_42] : memref<4x1x288xi32, #tpu.memory_space<vmem>>, vector<1x1x288xi32>
    %55 = vector.shape_cast %54 : vector<1x1x288xi32> to vector<1x288xi32>
    %56 = vector.shape_cast %55 : vector<1x288xi32> to vector<1x288xi32>
    %57 = vector.broadcast %56 : vector<1x288xi32> to vector<5x288xi32>
    %58 = arith.cmpf ogt, %53, %43 : vector<5x288xf32>
    %59 = arith.select %58, %53, %43 : vector<5x288xi1>, vector<5x288xf32>
    %60 = arith.select %58, %57, %44 : vector<5x288xi1>, vector<5x288xi32>
    %c0_43 = arith.constant 0 : index
    %c0_44 = arith.constant 0 : index
    %61 = vector.load %arg4[%c0_43, %c0_44] : memref<5x288xf32, #tpu.memory_space<vmem>>, vector<5x288xf32>
    tpu.vector_store %arg4[%c0_43, %c0_44], %59 {strides = array<i32>} : memref<5x288xf32, #tpu.memory_space<vmem>>, vector<5x288xf32>,
    %c0_45 = arith.constant 0 : index
    %c0_46 = arith.constant 0 : index
    %62 = vector.load %arg5[%c0_45, %c0_46] : memref<5x288xi32, #tpu.memory_space<vmem>>, vector<5x288xi32>
    tpu.vector_store %arg5[%c0_45, %c0_46], %60 {strides = array<i32>} : memref<5x288xi32, #tpu.memory_space<vmem>>, vector<5x288xi32>,
    return
  }
}

module attributes {stable_mosaic.version = 11 : i64} {
  func.func @_conv_relu_pool_kernel(%arg0: memref<4x128x32xf32, #tpu.memory_space<vmem>>, %arg1: memref<10x128xf32, #tpu.memory_space<vmem>>, %arg2: memref<10x1xf32, #tpu.memory_space<vmem>>, %arg3: memref<4x1x32xi32, #tpu.memory_space<vmem>>, %arg4: memref<10x32xf32, #tpu.memory_space<vmem>>, %arg5: memref<10x32xi32, #tpu.memory_space<vmem>>) attributes {dimension_semantics = [], scalar_prefetch = 0 : i64, scratch_operands = 0 : i64, tpu.core_type = #tpu.core_type<tc>} {
    %c0 = arith.constant 0 : index
    %c0_0 = arith.constant 0 : index
    %0 = vector.load %arg1[%c0, %c0_0] : memref<10x128xf32, #tpu.memory_space<vmem>>, vector<10x128xf32>
    %c0_1 = arith.constant 0 : index
    %c0_2 = arith.constant 0 : index
    %c0_3 = arith.constant 0 : index
    %1 = vector.load %arg0[%c0_1, %c0_2, %c0_3] : memref<4x128x32xf32, #tpu.memory_space<vmem>>, vector<1x128x32xf32>
    %2 = vector.shape_cast %1 : vector<1x128x32xf32> to vector<128x32xf32>
    %cst = arith.constant dense<0.000000e+00> : vector<10x32xf32>
    %3 = tpu.matmul %0, %2, %cst {dimension_numbers = #tpu.dot_dimension_numbers<[1], [0], [0], [1], [0, 0, 1, 1], [], []>} : vector<10x128xf32>, vector<128x32xf32>, vector<10x32xf32> -> vector<10x32xf32>
    %c0_4 = arith.constant 0 : index
    %c0_5 = arith.constant 0 : index
    %4 = vector.load %arg2[%c0_4, %c0_5] : memref<10x1xf32, #tpu.memory_space<vmem>>, vector<10x1xf32>
    %5 = vector.broadcast %4 : vector<10x1xf32> to vector<10x32xf32>
    %6 = arith.addf %3, %5 : vector<10x32xf32>
    %cst_6 = arith.constant 0.000000e+00 : f32
    %7 = vector.broadcast %cst_6 : f32 to vector<10x32xf32>
    %8 = arith.maximumf %6, %7 : vector<10x32xf32>
    %c0_7 = arith.constant 0 : index
    %c0_8 = arith.constant 0 : index
    %c0_9 = arith.constant 0 : index
    %9 = vector.load %arg3[%c0_7, %c0_8, %c0_9] : memref<4x1x32xi32, #tpu.memory_space<vmem>>, vector<1x1x32xi32>
    %10 = vector.shape_cast %9 : vector<1x1x32xi32> to vector<1x32xi32>
    %11 = vector.shape_cast %10 : vector<1x32xi32> to vector<1x32xi32>
    %12 = vector.broadcast %11 : vector<1x32xi32> to vector<10x32xi32>
    %c0_10 = arith.constant 0 : index
    %c0_11 = arith.constant 0 : index
    %13 = vector.load %arg1[%c0_10, %c0_11] : memref<10x128xf32, #tpu.memory_space<vmem>>, vector<10x128xf32>
    %c1 = arith.constant 1 : index
    %c0_12 = arith.constant 0 : index
    %c0_13 = arith.constant 0 : index
    %14 = vector.load %arg0[%c1, %c0_12, %c0_13] : memref<4x128x32xf32, #tpu.memory_space<vmem>>, vector<1x128x32xf32>
    %15 = vector.shape_cast %14 : vector<1x128x32xf32> to vector<128x32xf32>
    %cst_14 = arith.constant dense<0.000000e+00> : vector<10x32xf32>
    %16 = tpu.matmul %13, %15, %cst_14 {dimension_numbers = #tpu.dot_dimension_numbers<[1], [0], [0], [1], [0, 0, 1, 1], [], []>} : vector<10x128xf32>, vector<128x32xf32>, vector<10x32xf32> -> vector<10x32xf32>
    %c0_15 = arith.constant 0 : index
    %c0_16 = arith.constant 0 : index
    %17 = vector.load %arg2[%c0_15, %c0_16] : memref<10x1xf32, #tpu.memory_space<vmem>>, vector<10x1xf32>
    %18 = vector.broadcast %17 : vector<10x1xf32> to vector<10x32xf32>
    %19 = arith.addf %16, %18 : vector<10x32xf32>
    %cst_17 = arith.constant 0.000000e+00 : f32
    %20 = vector.broadcast %cst_17 : f32 to vector<10x32xf32>
    %21 = arith.maximumf %19, %20 : vector<10x32xf32>
    %c1_18 = arith.constant 1 : index
    %c0_19 = arith.constant 0 : index
    %c0_20 = arith.constant 0 : index
    %22 = vector.load %arg3[%c1_18, %c0_19, %c0_20] : memref<4x1x32xi32, #tpu.memory_space<vmem>>, vector<1x1x32xi32>
    %23 = vector.shape_cast %22 : vector<1x1x32xi32> to vector<1x32xi32>
    %24 = vector.shape_cast %23 : vector<1x32xi32> to vector<1x32xi32>
    %25 = vector.broadcast %24 : vector<1x32xi32> to vector<10x32xi32>
    %26 = arith.cmpf ogt, %21, %8 : vector<10x32xf32>
    %27 = arith.select %26, %21, %8 : vector<10x32xi1>, vector<10x32xf32>
    %28 = arith.select %26, %25, %12 : vector<10x32xi1>, vector<10x32xi32>
    %c0_21 = arith.constant 0 : index
    %c0_22 = arith.constant 0 : index
    %29 = vector.load %arg1[%c0_21, %c0_22] : memref<10x128xf32, #tpu.memory_space<vmem>>, vector<10x128xf32>
    %c2 = arith.constant 2 : index
    %c0_23 = arith.constant 0 : index
    %c0_24 = arith.constant 0 : index
    %30 = vector.load %arg0[%c2, %c0_23, %c0_24] : memref<4x128x32xf32, #tpu.memory_space<vmem>>, vector<1x128x32xf32>
    %31 = vector.shape_cast %30 : vector<1x128x32xf32> to vector<128x32xf32>
    %cst_25 = arith.constant dense<0.000000e+00> : vector<10x32xf32>
    %32 = tpu.matmul %29, %31, %cst_25 {dimension_numbers = #tpu.dot_dimension_numbers<[1], [0], [0], [1], [0, 0, 1, 1], [], []>} : vector<10x128xf32>, vector<128x32xf32>, vector<10x32xf32> -> vector<10x32xf32>
    %c0_26 = arith.constant 0 : index
    %c0_27 = arith.constant 0 : index
    %33 = vector.load %arg2[%c0_26, %c0_27] : memref<10x1xf32, #tpu.memory_space<vmem>>, vector<10x1xf32>
    %34 = vector.broadcast %33 : vector<10x1xf32> to vector<10x32xf32>
    %35 = arith.addf %32, %34 : vector<10x32xf32>
    %cst_28 = arith.constant 0.000000e+00 : f32
    %36 = vector.broadcast %cst_28 : f32 to vector<10x32xf32>
    %37 = arith.maximumf %35, %36 : vector<10x32xf32>
    %c2_29 = arith.constant 2 : index
    %c0_30 = arith.constant 0 : index
    %c0_31 = arith.constant 0 : index
    %38 = vector.load %arg3[%c2_29, %c0_30, %c0_31] : memref<4x1x32xi32, #tpu.memory_space<vmem>>, vector<1x1x32xi32>
    %39 = vector.shape_cast %38 : vector<1x1x32xi32> to vector<1x32xi32>
    %40 = vector.shape_cast %39 : vector<1x32xi32> to vector<1x32xi32>
    %41 = vector.broadcast %40 : vector<1x32xi32> to vector<10x32xi32>
    %42 = arith.cmpf ogt, %37, %27 : vector<10x32xf32>
    %43 = arith.select %42, %37, %27 : vector<10x32xi1>, vector<10x32xf32>
    %44 = arith.select %42, %41, %28 : vector<10x32xi1>, vector<10x32xi32>
    %c0_32 = arith.constant 0 : index
    %c0_33 = arith.constant 0 : index
    %45 = vector.load %arg1[%c0_32, %c0_33] : memref<10x128xf32, #tpu.memory_space<vmem>>, vector<10x128xf32>
    %c3 = arith.constant 3 : index
    %c0_34 = arith.constant 0 : index
    %c0_35 = arith.constant 0 : index
    %46 = vector.load %arg0[%c3, %c0_34, %c0_35] : memref<4x128x32xf32, #tpu.memory_space<vmem>>, vector<1x128x32xf32>
    %47 = vector.shape_cast %46 : vector<1x128x32xf32> to vector<128x32xf32>
    %cst_36 = arith.constant dense<0.000000e+00> : vector<10x32xf32>
    %48 = tpu.matmul %45, %47, %cst_36 {dimension_numbers = #tpu.dot_dimension_numbers<[1], [0], [0], [1], [0, 0, 1, 1], [], []>} : vector<10x128xf32>, vector<128x32xf32>, vector<10x32xf32> -> vector<10x32xf32>
    %c0_37 = arith.constant 0 : index
    %c0_38 = arith.constant 0 : index
    %49 = vector.load %arg2[%c0_37, %c0_38] : memref<10x1xf32, #tpu.memory_space<vmem>>, vector<10x1xf32>
    %50 = vector.broadcast %49 : vector<10x1xf32> to vector<10x32xf32>
    %51 = arith.addf %48, %50 : vector<10x32xf32>
    %cst_39 = arith.constant 0.000000e+00 : f32
    %52 = vector.broadcast %cst_39 : f32 to vector<10x32xf32>
    %53 = arith.maximumf %51, %52 : vector<10x32xf32>
    %c3_40 = arith.constant 3 : index
    %c0_41 = arith.constant 0 : index
    %c0_42 = arith.constant 0 : index
    %54 = vector.load %arg3[%c3_40, %c0_41, %c0_42] : memref<4x1x32xi32, #tpu.memory_space<vmem>>, vector<1x1x32xi32>
    %55 = vector.shape_cast %54 : vector<1x1x32xi32> to vector<1x32xi32>
    %56 = vector.shape_cast %55 : vector<1x32xi32> to vector<1x32xi32>
    %57 = vector.broadcast %56 : vector<1x32xi32> to vector<10x32xi32>
    %58 = arith.cmpf ogt, %53, %43 : vector<10x32xf32>
    %59 = arith.select %58, %53, %43 : vector<10x32xi1>, vector<10x32xf32>
    %60 = arith.select %58, %57, %44 : vector<10x32xi1>, vector<10x32xi32>
    %c0_43 = arith.constant 0 : index
    %c0_44 = arith.constant 0 : index
    %61 = vector.load %arg4[%c0_43, %c0_44] : memref<10x32xf32, #tpu.memory_space<vmem>>, vector<10x32xf32>
    tpu.vector_store %arg4[%c0_43, %c0_44], %59 {strides = array<i32>} : memref<10x32xf32, #tpu.memory_space<vmem>>, vector<10x32xf32>,
    %c0_45 = arith.constant 0 : index
    %c0_46 = arith.constant 0 : index
    %62 = vector.load %arg5[%c0_45, %c0_46] : memref<10x32xi32, #tpu.memory_space<vmem>>, vector<10x32xi32>
    tpu.vector_store %arg5[%c0_45, %c0_46], %60 {strides = array<i32>} : memref<10x32xi32, #tpu.memory_space<vmem>>, vector<10x32xi32>,
    return
  }
}

module attributes {stable_mosaic.version = 11 : i64} {
  func.func @_middle_kernel(%arg0: memref<2x160xf32, #tpu.memory_space<vmem>>, %arg1: memref<2x160xi32, #tpu.memory_space<vmem>>, %arg2: memref<4x1x160xi32, #tpu.memory_space<vmem>>, %arg3: memref<160x40xf32, #tpu.memory_space<vmem>>, %arg4: memref<1x40xf32, #tpu.memory_space<vmem>>, %arg5: memref<40x20xf32, #tpu.memory_space<vmem>>, %arg6: memref<1x20xf32, #tpu.memory_space<vmem>>, %arg7: memref<20x10xf32, #tpu.memory_space<vmem>>, %arg8: memref<1x10xf32, #tpu.memory_space<vmem>>, %arg9: memref<10x20xf32, #tpu.memory_space<vmem>>, %arg10: memref<1x20xf32, #tpu.memory_space<vmem>>, %arg11: memref<20x40xf32, #tpu.memory_space<vmem>>, %arg12: memref<1x40xf32, #tpu.memory_space<vmem>>, %arg13: memref<40x80xf32, #tpu.memory_space<vmem>>, %arg14: memref<1x80xf32, #tpu.memory_space<vmem>>, %arg15: memref<80x160xf32, #tpu.memory_space<vmem>>, %arg16: memref<1x160xf32, #tpu.memory_space<vmem>>, %arg17: memref<4x2x160xf32, #tpu.memory_space<vmem>>) attributes {dimension_semantics = [], scalar_prefetch = 0 : i64, scratch_operands = 0 : i64, tpu.core_type = #tpu.core_type<tc>} {
    %c0 = arith.constant 0 : index
    %c0_0 = arith.constant 0 : index
    %0 = vector.load %arg0[%c0, %c0_0] : memref<2x160xf32, #tpu.memory_space<vmem>>, vector<2x160xf32>
    %c0_1 = arith.constant 0 : index
    %c0_2 = arith.constant 0 : index
    %1 = vector.load %arg3[%c0_1, %c0_2] : memref<160x40xf32, #tpu.memory_space<vmem>>, vector<160x40xf32>
    %cst = arith.constant dense<0.000000e+00> : vector<2x40xf32>
    %2 = tpu.matmul %0, %1, %cst {dimension_numbers = #tpu.dot_dimension_numbers<[1], [0], [0], [1], [0, 0, 1, 1], [], []>} : vector<2x160xf32>, vector<160x40xf32>, vector<2x40xf32> -> vector<2x40xf32>
    %c0_3 = arith.constant 0 : index
    %c0_4 = arith.constant 0 : index
    %3 = vector.load %arg4[%c0_3, %c0_4] : memref<1x40xf32, #tpu.memory_space<vmem>>, vector<1x40xf32>
    %4 = vector.broadcast %3 : vector<1x40xf32> to vector<2x40xf32>
    %5 = arith.addf %2, %4 : vector<2x40xf32>
    %cst_5 = arith.constant 0.000000e+00 : f32
    %6 = vector.broadcast %cst_5 : f32 to vector<2x40xf32>
    %7 = arith.maximumf %5, %6 : vector<2x40xf32>
    %c0_6 = arith.constant 0 : index
    %c0_7 = arith.constant 0 : index
    %8 = vector.load %arg5[%c0_6, %c0_7] : memref<40x20xf32, #tpu.memory_space<vmem>>, vector<40x20xf32>
    %cst_8 = arith.constant dense<0.000000e+00> : vector<2x20xf32>
    %9 = tpu.matmul %7, %8, %cst_8 {dimension_numbers = #tpu.dot_dimension_numbers<[1], [0], [0], [1], [0, 0, 1, 1], [], []>} : vector<2x40xf32>, vector<40x20xf32>, vector<2x20xf32> -> vector<2x20xf32>
    %c0_9 = arith.constant 0 : index
    %c0_10 = arith.constant 0 : index
    %10 = vector.load %arg6[%c0_9, %c0_10] : memref<1x20xf32, #tpu.memory_space<vmem>>, vector<1x20xf32>
    %11 = vector.broadcast %10 : vector<1x20xf32> to vector<2x20xf32>
    %12 = arith.addf %9, %11 : vector<2x20xf32>
    %cst_11 = arith.constant 0.000000e+00 : f32
    %13 = vector.broadcast %cst_11 : f32 to vector<2x20xf32>
    %14 = arith.maximumf %12, %13 : vector<2x20xf32>
    %c0_12 = arith.constant 0 : index
    %c0_13 = arith.constant 0 : index
    %15 = vector.load %arg7[%c0_12, %c0_13] : memref<20x10xf32, #tpu.memory_space<vmem>>, vector<20x10xf32>
    %cst_14 = arith.constant dense<0.000000e+00> : vector<2x10xf32>
    %16 = tpu.matmul %14, %15, %cst_14 {dimension_numbers = #tpu.dot_dimension_numbers<[1], [0], [0], [1], [0, 0, 1, 1], [], []>} : vector<2x20xf32>, vector<20x10xf32>, vector<2x10xf32> -> vector<2x10xf32>
    %c0_15 = arith.constant 0 : index
    %c0_16 = arith.constant 0 : index
    %17 = vector.load %arg8[%c0_15, %c0_16] : memref<1x10xf32, #tpu.memory_space<vmem>>, vector<1x10xf32>
    %18 = vector.broadcast %17 : vector<1x10xf32> to vector<2x10xf32>
    %19 = arith.addf %16, %18 : vector<2x10xf32>
    %cst_17 = arith.constant 0.000000e+00 : f32
    %20 = vector.broadcast %cst_17 : f32 to vector<2x10xf32>
    %21 = arith.maximumf %19, %20 : vector<2x10xf32>
    %c0_18 = arith.constant 0 : index
    %c0_19 = arith.constant 0 : index
    %22 = vector.load %arg9[%c0_18, %c0_19] : memref<10x20xf32, #tpu.memory_space<vmem>>, vector<10x20xf32>
    %cst_20 = arith.constant dense<0.000000e+00> : vector<2x20xf32>
    %23 = tpu.matmul %21, %22, %cst_20 {dimension_numbers = #tpu.dot_dimension_numbers<[1], [0], [0], [1], [0, 0, 1, 1], [], []>} : vector<2x10xf32>, vector<10x20xf32>, vector<2x20xf32> -> vector<2x20xf32>
    %c0_21 = arith.constant 0 : index
    %c0_22 = arith.constant 0 : index
    %24 = vector.load %arg10[%c0_21, %c0_22] : memref<1x20xf32, #tpu.memory_space<vmem>>, vector<1x20xf32>
    %25 = vector.broadcast %24 : vector<1x20xf32> to vector<2x20xf32>
    %26 = arith.addf %23, %25 : vector<2x20xf32>
    %cst_23 = arith.constant 0.000000e+00 : f32
    %27 = vector.broadcast %cst_23 : f32 to vector<2x20xf32>
    %28 = arith.maximumf %26, %27 : vector<2x20xf32>
    %c0_24 = arith.constant 0 : index
    %c0_25 = arith.constant 0 : index
    %29 = vector.load %arg11[%c0_24, %c0_25] : memref<20x40xf32, #tpu.memory_space<vmem>>, vector<20x40xf32>
    %cst_26 = arith.constant dense<0.000000e+00> : vector<2x40xf32>
    %30 = tpu.matmul %28, %29, %cst_26 {dimension_numbers = #tpu.dot_dimension_numbers<[1], [0], [0], [1], [0, 0, 1, 1], [], []>} : vector<2x20xf32>, vector<20x40xf32>, vector<2x40xf32> -> vector<2x40xf32>
    %c0_27 = arith.constant 0 : index
    %c0_28 = arith.constant 0 : index
    %31 = vector.load %arg12[%c0_27, %c0_28] : memref<1x40xf32, #tpu.memory_space<vmem>>, vector<1x40xf32>
    %32 = vector.broadcast %31 : vector<1x40xf32> to vector<2x40xf32>
    %33 = arith.addf %30, %32 : vector<2x40xf32>
    %cst_29 = arith.constant 0.000000e+00 : f32
    %34 = vector.broadcast %cst_29 : f32 to vector<2x40xf32>
    %35 = arith.maximumf %33, %34 : vector<2x40xf32>
    %c0_30 = arith.constant 0 : index
    %c0_31 = arith.constant 0 : index
    %36 = vector.load %arg13[%c0_30, %c0_31] : memref<40x80xf32, #tpu.memory_space<vmem>>, vector<40x80xf32>
    %cst_32 = arith.constant dense<0.000000e+00> : vector<2x80xf32>
    %37 = tpu.matmul %35, %36, %cst_32 {dimension_numbers = #tpu.dot_dimension_numbers<[1], [0], [0], [1], [0, 0, 1, 1], [], []>} : vector<2x40xf32>, vector<40x80xf32>, vector<2x80xf32> -> vector<2x80xf32>
    %c0_33 = arith.constant 0 : index
    %c0_34 = arith.constant 0 : index
    %38 = vector.load %arg14[%c0_33, %c0_34] : memref<1x80xf32, #tpu.memory_space<vmem>>, vector<1x80xf32>
    %39 = vector.broadcast %38 : vector<1x80xf32> to vector<2x80xf32>
    %40 = arith.addf %37, %39 : vector<2x80xf32>
    %cst_35 = arith.constant 0.000000e+00 : f32
    %41 = vector.broadcast %cst_35 : f32 to vector<2x80xf32>
    %42 = arith.maximumf %40, %41 : vector<2x80xf32>
    %c0_36 = arith.constant 0 : index
    %c0_37 = arith.constant 0 : index
    %43 = vector.load %arg15[%c0_36, %c0_37] : memref<80x160xf32, #tpu.memory_space<vmem>>, vector<80x160xf32>
    %cst_38 = arith.constant dense<0.000000e+00> : vector<2x160xf32>
    %44 = tpu.matmul %42, %43, %cst_38 {dimension_numbers = #tpu.dot_dimension_numbers<[1], [0], [0], [1], [0, 0, 1, 1], [], []>} : vector<2x80xf32>, vector<80x160xf32>, vector<2x160xf32> -> vector<2x160xf32>
    %c0_39 = arith.constant 0 : index
    %c0_40 = arith.constant 0 : index
    %45 = vector.load %arg16[%c0_39, %c0_40] : memref<1x160xf32, #tpu.memory_space<vmem>>, vector<1x160xf32>
    %46 = vector.broadcast %45 : vector<1x160xf32> to vector<2x160xf32>
    %47 = arith.addf %44, %46 : vector<2x160xf32>
    %cst_41 = arith.constant 0.000000e+00 : f32
    %48 = vector.broadcast %cst_41 : f32 to vector<2x160xf32>
    %49 = arith.maximumf %47, %48 : vector<2x160xf32>
    %c0_42 = arith.constant 0 : index
    %c0_43 = arith.constant 0 : index
    %50 = vector.load %arg1[%c0_42, %c0_43] : memref<2x160xi32, #tpu.memory_space<vmem>>, vector<2x160xi32>
    %c0_44 = arith.constant 0 : index
    %c0_45 = arith.constant 0 : index
    %c0_46 = arith.constant 0 : index
    %51 = vector.load %arg2[%c0_44, %c0_45, %c0_46] : memref<4x1x160xi32, #tpu.memory_space<vmem>>, vector<1x1x160xi32>
    %52 = vector.shape_cast %51 : vector<1x1x160xi32> to vector<1x160xi32>
    %53 = vector.broadcast %52 : vector<1x160xi32> to vector<2x160xi32>
    %54 = arith.cmpi eq, %50, %53 : vector<2x160xi32>
    %cst_47 = arith.constant 0.000000e+00 : f32
    %55 = vector.broadcast %cst_47 : f32 to vector<2x160xf32>
    %56 = arith.select %54, %49, %55 : vector<2x160xi1>, vector<2x160xf32>
    %c0_48 = arith.constant 0 : index
    %c0_49 = arith.constant 0 : index
    %c0_50 = arith.constant 0 : index
    %57 = vector.load %arg17[%c0_48, %c0_49, %c0_50] : memref<4x2x160xf32, #tpu.memory_space<vmem>>, vector<1x2x160xf32>
    %58 = vector.shape_cast %57 : vector<1x2x160xf32> to vector<2x160xf32>
    %59 = vector.shape_cast %56 : vector<2x160xf32> to vector<1x2x160xf32>
    tpu.vector_store %arg17[%c0_48, %c0_49, %c0_50], %59 {strides = array<i32>} : memref<4x2x160xf32, #tpu.memory_space<vmem>>, vector<1x2x160xf32>,
    %c1 = arith.constant 1 : index
    %c0_51 = arith.constant 0 : index
    %c0_52 = arith.constant 0 : index
    %60 = vector.load %arg2[%c1, %c0_51, %c0_52] : memref<4x1x160xi32, #tpu.memory_space<vmem>>, vector<1x1x160xi32>
    %61 = vector.shape_cast %60 : vector<1x1x160xi32> to vector<1x160xi32>
    %62 = vector.broadcast %61 : vector<1x160xi32> to vector<2x160xi32>
    %63 = arith.cmpi eq, %50, %62 : vector<2x160xi32>
    %cst_53 = arith.constant 0.000000e+00 : f32
    %64 = vector.broadcast %cst_53 : f32 to vector<2x160xf32>
    %65 = arith.select %63, %49, %64 : vector<2x160xi1>, vector<2x160xf32>
    %c1_54 = arith.constant 1 : index
    %c0_55 = arith.constant 0 : index
    %c0_56 = arith.constant 0 : index
    %66 = vector.load %arg17[%c1_54, %c0_55, %c0_56] : memref<4x2x160xf32, #tpu.memory_space<vmem>>, vector<1x2x160xf32>
    %67 = vector.shape_cast %66 : vector<1x2x160xf32> to vector<2x160xf32>
    %68 = vector.shape_cast %65 : vector<2x160xf32> to vector<1x2x160xf32>
    tpu.vector_store %arg17[%c1_54, %c0_55, %c0_56], %68 {strides = array<i32>} : memref<4x2x160xf32, #tpu.memory_space<vmem>>, vector<1x2x160xf32>,
    %c2 = arith.constant 2 : index
    %c0_57 = arith.constant 0 : index
    %c0_58 = arith.constant 0 : index
    %69 = vector.load %arg2[%c2, %c0_57, %c0_58] : memref<4x1x160xi32, #tpu.memory_space<vmem>>, vector<1x1x160xi32>
    %70 = vector.shape_cast %69 : vector<1x1x160xi32> to vector<1x160xi32>
    %71 = vector.broadcast %70 : vector<1x160xi32> to vector<2x160xi32>
    %72 = arith.cmpi eq, %50, %71 : vector<2x160xi32>
    %cst_59 = arith.constant 0.000000e+00 : f32
    %73 = vector.broadcast %cst_59 : f32 to vector<2x160xf32>
    %74 = arith.select %72, %49, %73 : vector<2x160xi1>, vector<2x160xf32>
    %c2_60 = arith.constant 2 : index
    %c0_61 = arith.constant 0 : index
    %c0_62 = arith.constant 0 : index
    %75 = vector.load %arg17[%c2_60, %c0_61, %c0_62] : memref<4x2x160xf32, #tpu.memory_space<vmem>>, vector<1x2x160xf32>
    %76 = vector.shape_cast %75 : vector<1x2x160xf32> to vector<2x160xf32>
    %77 = vector.shape_cast %74 : vector<2x160xf32> to vector<1x2x160xf32>
    tpu.vector_store %arg17[%c2_60, %c0_61, %c0_62], %77 {strides = array<i32>} : memref<4x2x160xf32, #tpu.memory_space<vmem>>, vector<1x2x160xf32>,
    %c3 = arith.constant 3 : index
    %c0_63 = arith.constant 0 : index
    %c0_64 = arith.constant 0 : index
    %78 = vector.load %arg2[%c3, %c0_63, %c0_64] : memref<4x1x160xi32, #tpu.memory_space<vmem>>, vector<1x1x160xi32>
    %79 = vector.shape_cast %78 : vector<1x1x160xi32> to vector<1x160xi32>
    %80 = vector.broadcast %79 : vector<1x160xi32> to vector<2x160xi32>
    %81 = arith.cmpi eq, %50, %80 : vector<2x160xi32>
    %cst_65 = arith.constant 0.000000e+00 : f32
    %82 = vector.broadcast %cst_65 : f32 to vector<2x160xf32>
    %83 = arith.select %81, %49, %82 : vector<2x160xi1>, vector<2x160xf32>
    %c3_66 = arith.constant 3 : index
    %c0_67 = arith.constant 0 : index
    %c0_68 = arith.constant 0 : index
    %84 = vector.load %arg17[%c3_66, %c0_67, %c0_68] : memref<4x2x160xf32, #tpu.memory_space<vmem>>, vector<1x2x160xf32>
    %85 = vector.shape_cast %84 : vector<1x2x160xf32> to vector<2x160xf32>
    %86 = vector.shape_cast %83 : vector<2x160xf32> to vector<1x2x160xf32>
    tpu.vector_store %arg17[%c3_66, %c0_67, %c0_68], %86 {strides = array<i32>} : memref<4x2x160xf32, #tpu.memory_space<vmem>>, vector<1x2x160xf32>,
    return
  }
}

module attributes {stable_mosaic.version = 11 : i64} {
  func.func @_convt_relu_unpool_kernel(%arg0: memref<256x288xf32, #tpu.memory_space<vmem>>, %arg1: memref<5x256xf32, #tpu.memory_space<vmem>>, %arg2: memref<5x1xf32, #tpu.memory_space<vmem>>, %arg3: memref<5x288xi32, #tpu.memory_space<vmem>>, %arg4: memref<4x1x288xi32, #tpu.memory_space<vmem>>, %arg5: memref<4x5x288xf32, #tpu.memory_space<vmem>>) attributes {dimension_semantics = [], scalar_prefetch = 0 : i64, scratch_operands = 0 : i64, tpu.core_type = #tpu.core_type<tc>} {
    %c0 = arith.constant 0 : index
    %c0_0 = arith.constant 0 : index
    %0 = vector.load %arg1[%c0, %c0_0] : memref<5x256xf32, #tpu.memory_space<vmem>>, vector<5x256xf32>
    %c0_1 = arith.constant 0 : index
    %c0_2 = arith.constant 0 : index
    %1 = vector.load %arg0[%c0_1, %c0_2] : memref<256x288xf32, #tpu.memory_space<vmem>>, vector<256x288xf32>
    %cst = arith.constant dense<0.000000e+00> : vector<5x288xf32>
    %2 = tpu.matmul %0, %1, %cst {dimension_numbers = #tpu.dot_dimension_numbers<[1], [0], [0], [1], [0, 0, 1, 1], [], []>} : vector<5x256xf32>, vector<256x288xf32>, vector<5x288xf32> -> vector<5x288xf32>
    %c0_3 = arith.constant 0 : index
    %c0_4 = arith.constant 0 : index
    %3 = vector.load %arg2[%c0_3, %c0_4] : memref<5x1xf32, #tpu.memory_space<vmem>>, vector<5x1xf32>
    %4 = vector.broadcast %3 : vector<5x1xf32> to vector<5x288xf32>
    %5 = arith.addf %2, %4 : vector<5x288xf32>
    %cst_5 = arith.constant 0.000000e+00 : f32
    %6 = vector.broadcast %cst_5 : f32 to vector<5x288xf32>
    %7 = arith.maximumf %5, %6 : vector<5x288xf32>
    %c0_6 = arith.constant 0 : index
    %c0_7 = arith.constant 0 : index
    %8 = vector.load %arg3[%c0_6, %c0_7] : memref<5x288xi32, #tpu.memory_space<vmem>>, vector<5x288xi32>
    %c0_8 = arith.constant 0 : index
    %c0_9 = arith.constant 0 : index
    %c0_10 = arith.constant 0 : index
    %9 = vector.load %arg4[%c0_8, %c0_9, %c0_10] : memref<4x1x288xi32, #tpu.memory_space<vmem>>, vector<1x1x288xi32>
    %10 = vector.shape_cast %9 : vector<1x1x288xi32> to vector<1x288xi32>
    %11 = vector.broadcast %10 : vector<1x288xi32> to vector<5x288xi32>
    %12 = arith.cmpi eq, %8, %11 : vector<5x288xi32>
    %cst_11 = arith.constant 0.000000e+00 : f32
    %13 = vector.broadcast %cst_11 : f32 to vector<5x288xf32>
    %14 = arith.select %12, %7, %13 : vector<5x288xi1>, vector<5x288xf32>
    %c0_12 = arith.constant 0 : index
    %c0_13 = arith.constant 0 : index
    %c0_14 = arith.constant 0 : index
    %15 = vector.load %arg5[%c0_12, %c0_13, %c0_14] : memref<4x5x288xf32, #tpu.memory_space<vmem>>, vector<1x5x288xf32>
    %16 = vector.shape_cast %15 : vector<1x5x288xf32> to vector<5x288xf32>
    %17 = vector.shape_cast %14 : vector<5x288xf32> to vector<1x5x288xf32>
    tpu.vector_store %arg5[%c0_12, %c0_13, %c0_14], %17 {strides = array<i32>} : memref<4x5x288xf32, #tpu.memory_space<vmem>>, vector<1x5x288xf32>,
    %c1 = arith.constant 1 : index
    %c0_15 = arith.constant 0 : index
    %c0_16 = arith.constant 0 : index
    %18 = vector.load %arg4[%c1, %c0_15, %c0_16] : memref<4x1x288xi32, #tpu.memory_space<vmem>>, vector<1x1x288xi32>
    %19 = vector.shape_cast %18 : vector<1x1x288xi32> to vector<1x288xi32>
    %20 = vector.broadcast %19 : vector<1x288xi32> to vector<5x288xi32>
    %21 = arith.cmpi eq, %8, %20 : vector<5x288xi32>
    %cst_17 = arith.constant 0.000000e+00 : f32
    %22 = vector.broadcast %cst_17 : f32 to vector<5x288xf32>
    %23 = arith.select %21, %7, %22 : vector<5x288xi1>, vector<5x288xf32>
    %c1_18 = arith.constant 1 : index
    %c0_19 = arith.constant 0 : index
    %c0_20 = arith.constant 0 : index
    %24 = vector.load %arg5[%c1_18, %c0_19, %c0_20] : memref<4x5x288xf32, #tpu.memory_space<vmem>>, vector<1x5x288xf32>
    %25 = vector.shape_cast %24 : vector<1x5x288xf32> to vector<5x288xf32>
    %26 = vector.shape_cast %23 : vector<5x288xf32> to vector<1x5x288xf32>
    tpu.vector_store %arg5[%c1_18, %c0_19, %c0_20], %26 {strides = array<i32>} : memref<4x5x288xf32, #tpu.memory_space<vmem>>, vector<1x5x288xf32>,
    %c2 = arith.constant 2 : index
    %c0_21 = arith.constant 0 : index
    %c0_22 = arith.constant 0 : index
    %27 = vector.load %arg4[%c2, %c0_21, %c0_22] : memref<4x1x288xi32, #tpu.memory_space<vmem>>, vector<1x1x288xi32>
    %28 = vector.shape_cast %27 : vector<1x1x288xi32> to vector<1x288xi32>
    %29 = vector.broadcast %28 : vector<1x288xi32> to vector<5x288xi32>
    %30 = arith.cmpi eq, %8, %29 : vector<5x288xi32>
    %cst_23 = arith.constant 0.000000e+00 : f32
    %31 = vector.broadcast %cst_23 : f32 to vector<5x288xf32>
    %32 = arith.select %30, %7, %31 : vector<5x288xi1>, vector<5x288xf32>
    %c2_24 = arith.constant 2 : index
    %c0_25 = arith.constant 0 : index
    %c0_26 = arith.constant 0 : index
    %33 = vector.load %arg5[%c2_24, %c0_25, %c0_26] : memref<4x5x288xf32, #tpu.memory_space<vmem>>, vector<1x5x288xf32>
    %34 = vector.shape_cast %33 : vector<1x5x288xf32> to vector<5x288xf32>
    %35 = vector.shape_cast %32 : vector<5x288xf32> to vector<1x5x288xf32>
    tpu.vector_store %arg5[%c2_24, %c0_25, %c0_26], %35 {strides = array<i32>} : memref<4x5x288xf32, #tpu.memory_space<vmem>>, vector<1x5x288xf32>,
    %c3 = arith.constant 3 : index
    %c0_27 = arith.constant 0 : index
    %c0_28 = arith.constant 0 : index
    %36 = vector.load %arg4[%c3, %c0_27, %c0_28] : memref<4x1x288xi32, #tpu.memory_space<vmem>>, vector<1x1x288xi32>
    %37 = vector.shape_cast %36 : vector<1x1x288xi32> to vector<1x288xi32>
    %38 = vector.broadcast %37 : vector<1x288xi32> to vector<5x288xi32>
    %39 = arith.cmpi eq, %8, %38 : vector<5x288xi32>
    %cst_29 = arith.constant 0.000000e+00 : f32
    %40 = vector.broadcast %cst_29 : f32 to vector<5x288xf32>
    %41 = arith.select %39, %7, %40 : vector<5x288xi1>, vector<5x288xf32>
    %c3_30 = arith.constant 3 : index
    %c0_31 = arith.constant 0 : index
    %c0_32 = arith.constant 0 : index
    %42 = vector.load %arg5[%c3_30, %c0_31, %c0_32] : memref<4x5x288xf32, #tpu.memory_space<vmem>>, vector<1x5x288xf32>
    %43 = vector.shape_cast %42 : vector<1x5x288xf32> to vector<5x288xf32>
    %44 = vector.shape_cast %41 : vector<5x288xf32> to vector<1x5x288xf32>
    tpu.vector_store %arg5[%c3_30, %c0_31, %c0_32], %44 {strides = array<i32>} : memref<4x5x288xf32, #tpu.memory_space<vmem>>, vector<1x5x288xf32>,
    return
  }
}

module attributes {stable_mosaic.version = 11 : i64} {
  func.func @_convt_final_kernel(%arg0: memref<128x1568xf32, #tpu.memory_space<vmem>>, %arg1: memref<1x128xf32, #tpu.memory_space<vmem>>, %arg2: memref<1x1xf32, #tpu.memory_space<vmem>>, %arg3: memref<1x1568xf32, #tpu.memory_space<vmem>>) attributes {dimension_semantics = [], scalar_prefetch = 0 : i64, scratch_operands = 0 : i64, tpu.core_type = #tpu.core_type<tc>} {
    %c0 = arith.constant 0 : index
    %c0_0 = arith.constant 0 : index
    %0 = vector.load %arg1[%c0, %c0_0] : memref<1x128xf32, #tpu.memory_space<vmem>>, vector<1x128xf32>
    %c0_1 = arith.constant 0 : index
    %c0_2 = arith.constant 0 : index
    %1 = vector.load %arg0[%c0_1, %c0_2] : memref<128x1568xf32, #tpu.memory_space<vmem>>, vector<128x1568xf32>
    %cst = arith.constant dense<0.000000e+00> : vector<1x1568xf32>
    %2 = tpu.matmul %0, %1, %cst {dimension_numbers = #tpu.dot_dimension_numbers<[1], [0], [0], [1], [0, 0, 1, 1], [], []>} : vector<1x128xf32>, vector<128x1568xf32>, vector<1x1568xf32> -> vector<1x1568xf32>
    %c0_3 = arith.constant 0 : index
    %c0_4 = arith.constant 0 : index
    %3 = vector.load %arg2[%c0_3, %c0_4] : memref<1x1xf32, #tpu.memory_space<vmem>>, vector<1x1xf32>
    %4 = vector.broadcast %3 : vector<1x1xf32> to vector<1x1568xf32>
    %5 = arith.addf %2, %4 : vector<1x1568xf32>
    %c0_5 = arith.constant 0 : index
    %c0_6 = arith.constant 0 : index
    %6 = vector.load %arg3[%c0_5, %c0_6] : memref<1x1568xf32, #tpu.memory_space<vmem>>, vector<1x1568xf32>
    tpu.vector_store %arg3[%c0_5, %c0_6], %5 {strides = array<i32>} : memref<1x1568xf32, #tpu.memory_space<vmem>>, vector<1x1568xf32>,
    return
  }
}

</mosaic_0001>

<bundles_post_ra>
// kernel: ae_forward.5
= control target key start
LH: loop header
LB: loop body
LE: loop exit
PB: predicated region body
PF: predicated region fallthrough
CT: control target
= control target key end

     0   :  { %v869_v0 = vmov 0.0   ;;  %vm38_vm0 = vcmask 261120   ;;  %vm870_vm1 = vmmov 0   ;;  %v871_v51 = vmov 0   ;;  %s1210_s0 = inlined_call_operand.vmem [shape: f32[4,32,288], index: 0, kind: input, shape index: {}]   ;;  %s1211_s1 = inlined_call_operand.vmem [shape: f32[5,32], index: 1, kind: input, shape index: {}]   ;;  %s1212_s2 = inlined_call_operand.vmem [shape: f32[5,1], index: 2, kind: input, shape index: {}]   ;;  %s1213_s3 = inlined_call_operand.vmem [shape: s32[4,1,288], index: 3, kind: input, shape index: {}]   ;;  %s1214_s4 = inlined_call_operand.vmem [shape: f32[5,288], index: 4, kind: output, shape index: {0}]   ;;  %s1215_s5 = inlined_call_operand.vmem [shape: s32[5,288], index: 5, kind: output, shape index: {1}]  }
   0x1   :  { %821 = vmatprep.subr.mxu1 %v869_v0  ;;  %v30_v1 = vld [vmem:[%s1210_s0 + $0x50] sm:$0xff]  ;;  %v31_v2 = vld [vmem:[%s1210_s0 + $0x58] sm:$0xff]  ;;  %v29_v3 = vld [vmem:[%s1210_s0 + $0x48] sm:$0xff]  ;;  %106 = vmatprep.mubr.f32.mxu0 %v869_v0  ;;  %v187_v59 = vlaneseq  ;;  %vm741_vm5 = vcmask 258048  }
   0x2   :  { %66 = vmatprep.subr.mxu0 %v30_v1  ;;  %822 = vmatpush3.msra.mxu1 %v31_v2  ;;  %v27_v4 = vld [vmem:[%s1210_s0 + $0x38] sm:$0xff]  ;;  %v28_v5 = vld [vmem:[%s1210_s0 + $0x40] sm:$0xff]  ;;  %v26_v6 = vld [vmem:[%s1210_s0 + $0x30] sm:$0xff] }
   0x3   :  { %67 = vmatpush1.msra.mxu0 %v29_v3  ;;  %823 = vmatprep.subr.mxu1 %v869_v0  ;;  %v24_v7 = vld [vmem:[%s1210_s0 + $0x20] sm:$0xff]  ;;  %v25_v8 = vld [vmem:[%s1210_s0 + $0x28] sm:$0xff]  ;;  %v23_v9 = vld [vmem:[%s1210_s0 + $0x18] sm:$0xff]  ;;  %v188_v62 = vshrl.u32 %v187_v59, 7 }
   0x4   :  { %68 = vmatprep.subr.mxu0 %v27_v4  ;;  %824 = vmatpush3.msra.mxu1 %v28_v5  ;;  %v21_v10 = vld [vmem:[%s1210_s0 + $0x8] sm:$0xff]  ;;  %v22_v11 = vld [vmem:[%s1210_s0 + $0x10] sm:$0xff]  ;;  %v20_v12 = vld [vmem:[%s1210_s0] sm:$0xff] }
   0x5   :  { %69 = vmatpush1.msra.mxu0 %v26_v6  ;;  %825 = vmatprep.subr.mxu1 %v869_v0  ;;  %v946_v13 = vld [vmem:[%s1211_s1] sm:$0x1f]  ;;  %v766_v14 = vld [vmem:[%s1210_s0 + $0xb0] sm:$0xff]  ;;  %v767_v15 = vld [vmem:[%s1210_s0 + $0xb8] sm:$0xff]  ;;  %v1105_v5 = vsub.s32 2, %v188_v62 }
   0x6   :  { %70 = vmatprep.subr.mxu0 %v24_v7  ;;  %826 = vmatpush3.msra.mxu1 %v25_v8  ;;  %v765_v16 = vld [vmem:[%s1210_s0 + $0xa8] sm:$0xff]  ;;  %v763_v17 = vld [vmem:[%s1210_s0 + $0x98] sm:$0xff]  ;;  %v764_v18 = vld [vmem:[%s1210_s0 + $0xa0] sm:$0xff] }
   0x7   :  { %71 = vmatpush1.msra.mxu0 %v23_v9  ;;  %827 = vmatprep.subr.mxu1 %v869_v0  ;;  %v762_v19 = vld [vmem:[%s1210_s0 + $0x90] sm:$0xff]  ;;  %v760_v20 = vld [vmem:[%s1210_s0 + $0x80] sm:$0xff]  ;;  %v761_v21 = vld [vmem:[%s1210_s0 + $0x88] sm:$0xff] }
   0x8   :  { %72 = vmatprep.subr.mxu0 %v21_v10  ;;  %828 = vmatpush3.msra.mxu1 %v22_v11  ;;  %v759_v22 = vld [vmem:[%s1210_s0 + $0x78] sm:$0xff]  ;;  %v757_v23 = vld [vmem:[%s1210_s0 + $0x68] sm:$0xff]  ;;  %v758_v24 = vld [vmem:[%s1210_s0 + $0x70] sm:$0xff]  ;;  %v1111_v10 = vsub.s32 0, %v188_v62 }
   0x9   :  { %73 = vmatpush1.msra.mxu0 %v20_v12  ;;  %829 = vmatprep.mubr.msk.f32.mxu1 %vm870_vm1, %v869_v0  ;;  %v756_v25 = vld [vmem:[%s1210_s0 + $0x60] sm:$0xff]  ;;  %v781_v26 = vld [vmem:[%s1210_s0 + $0x110] sm:$0xff]  ;;  %v782_v27 = vld [vmem:[%s1210_s0 + $0x118] sm:$0xff] }
   0xa   :  { %832 = vmatprep.subr.mxu1 %v869_v0  ;;  %754 = vmatmul.mubr.msk.f32.vlgmr.msra.gmra.mxu0 %vm38_vm0, %v946_v13  ;;  %v780_v28 = vld [vmem:[%s1210_s0 + $0x108] sm:$0xff]  ;;  %v778_v29 = vld [vmem:[%s1210_s0 + $0xf8] sm:$0xff]  ;;  %v779_v30 = vld [vmem:[%s1210_s0 + $0x100] sm:$0xff] }
   0xb   :  { %830 = vmatmul.mubr.msk.f32.vlgmr.msra.gmra.mxu1 %vm38_vm0, %v946_v13  ;;  %236 = vmatprep.subr.mxu0 %v766_v14  ;;  %v777_v31 = vld [vmem:[%s1210_s0 + $0xf0] sm:$0xff]  ;;  %v775_v32 = vld [vmem:[%s1210_s0 + $0xe0] sm:$0xff]  ;;  %v776_v33 = vld [vmem:[%s1210_s0 + $0xe8] sm:$0xff] }
   0xc   :  { %833 = vmatpush3.msra.mxu1 %v767_v15  ;;  %237 = vmatpush1.msra.mxu0 %v765_v16  ;;  %v774_v34 = vld [vmem:[%s1210_s0 + $0xd8] sm:$0xff]  ;;  %v772_v35 = vld [vmem:[%s1210_s0 + $0xc8] sm:$0xff]  ;;  %v773_v36 = vld [vmem:[%s1210_s0 + $0xd0] sm:$0xff] }
   0xd   :  { %834 = vmatprep.subr.mxu1 %v869_v0  ;;  %238 = vmatprep.subr.mxu0 %v763_v17  ;;  %v771_v37 = vld [vmem:[%s1210_s0 + $0xc0] sm:$0xff]  ;;  %v796_v38 = vld [vmem:[%s1210_s0 + $0x170] sm:$0xff]  ;;  %v797_v39 = vld [vmem:[%s1210_s0 + $0x178] sm:$0xff] }
   0xe   :  { %835 = vmatpush3.msra.mxu1 %v764_v18  ;;  %239 = vmatpush1.msra.mxu0 %v762_v19  ;;  %v795_v40 = vld [vmem:[%s1210_s0 + $0x168] sm:$0xff]  ;;  %v793_v41 = vld [vmem:[%s1210_s0 + $0x158] sm:$0xff]  ;;  %v794_v42 = vld [vmem:[%s1210_s0 + $0x160] sm:$0xff]  ;;  %v1118_v19 = vsub.s32 1, %v188_v62 }
   0xf   :  { %836 = vmatprep.subr.mxu1 %v869_v0  ;;  %240 = vmatprep.subr.mxu0 %v760_v20  ;;  %v792_v43 = vld [vmem:[%s1210_s0 + $0x150] sm:$0xff]  ;;  %v790_v44 = vld [vmem:[%s1210_s0 + $0x140] sm:$0xff]  ;;  %v791_v45 = vld [vmem:[%s1210_s0 + $0x148] sm:$0xff] }
  0x10   :  { %837 = vmatpush3.msra.mxu1 %v761_v21  ;;  %241 = vmatpush1.msra.mxu0 %v759_v22  ;;  %v789_v46 = vld [vmem:[%s1210_s0 + $0x138] sm:$0xff]  ;;  %v787_v47 = vld [vmem:[%s1210_s0 + $0x128] sm:$0xff]  ;;  %v788_v48 = vld [vmem:[%s1210_s0 + $0x130] sm:$0xff] }
  0x11   :  { %838 = vmatprep.subr.mxu1 %v869_v0  ;;  %242 = vmatprep.subr.mxu0 %v757_v23  ;;  %v786_v49 = vld [vmem:[%s1210_s0 + $0x120] sm:$0xff] }
  0x12   :  { %839 = vmatpush3.msra.mxu1 %v758_v24  ;;  %840 = vmatprep.mubr.msk.f32.mxu1 %vm870_vm1, %v869_v0  ;;  %v32_v50 = vld [vmem:[%s1212_s2] sm:$0x1f]  ;;  %v785_v24 = vld [vmem:[%s1213_s3 + $0x6] sm:$0x7] }
  0x13   :  { %243 = vmatpush1.msra.mxu0 %v756_v25  ;;  %276 = vmatprep.mubr.f32.mxu0 %v869_v0  ;;  %v186_v8 = vld [vmem:[%s1213_s3] sm:$0x7]  ;;  %v770_v12 = vld [vmem:[%s1213_s3 + $0x3] sm:$0x7] }
  0x14   :  { %841 = vmatmul.mubr.msk.f32.vlgmr.msra.gmra.mxu1 %vm38_vm0, %v946_v13  ;;  %843 = vmatprep.subr.mxu1 %v869_v0  ;;  %v198_v22 = vrot.slane %v186_v8, %v1105_v5  ;;  %v369_v25 = vrot.slane %v770_v12, %v1105_v5 }
  0x15   :  { %768 = vmatmul.mubr.msk.f32.vlgmr.msra.gmra.mxu0 %vm38_vm0, %v946_v13  ;;  %416 = vmatprep.subr.mxu0 %v781_v26 }
  0x16   :  { %844 = vmatpush3.msra.mxu1 %v782_v27  ;;  %417 = vmatpush1.msra.mxu0 %v780_v28  ;;  %v190_v27 = vrot.slane %v186_v8, %v1111_v10  ;;  %v361_v28 = vrot.slane %v770_v12, %v1111_v10 }
  0x17   :  { %845 = vmatprep.subr.mxu1 %v869_v0  ;;  %418 = vmatprep.subr.mxu0 %v778_v29  ;;  %v800_v29 = vld [vmem:[%s1213_s3 + $0x9] sm:$0x7] }
  0x18   :  { %846 = vmatpush3.msra.mxu1 %v779_v30  ;;  %419 = vmatpush1.msra.mxu0 %v777_v31 }
  0x19   :  { %847 = vmatprep.subr.mxu1 %v869_v0  ;;  %420 = vmatprep.subr.mxu0 %v775_v32 }
  0x1a   :  { %848 = vmatpush3.msra.mxu1 %v776_v33  ;;  %421 = vmatpush1.msra.mxu0 %v774_v34  ;;  %v194_v34 = vrot.slane %v186_v8, %v1118_v19 }
  0x1b   :  { %849 = vmatprep.subr.mxu1 %v869_v0  ;;  %422 = vmatprep.subr.mxu0 %v772_v35  ;;  %v365_v35 = vrot.slane %v770_v12, %v1118_v19 }
  0x1c   :  { %850 = vmatpush3.msra.mxu1 %v773_v36  ;;  %851 = vmatprep.mubr.msk.f32.mxu1 %vm870_vm1, %v869_v0  ;;  %v549_v36 = vrot.slane %v785_v24, %v1105_v5 }
  0x1d   :  { %423 = vmatpush1.msra.mxu0 %v771_v37  ;;  %456 = vmatprep.mubr.f32.mxu0 %v869_v0 }
  0x1e   :  { %852 = vmatmul.mubr.msk.f32.vlgmr.msra.gmra.mxu1 %vm38_vm0, %v946_v13  ;;  %854 = vmatprep.subr.mxu1 %v869_v0 }
  0x1f   :  { %783 = vmatmul.mubr.msk.f32.vlgmr.msra.gmra.mxu0 %vm38_vm0, %v946_v13  ;;  %596 = vmatprep.subr.mxu0 %v796_v38  ;;  %v541_v38 = vrot.slane %v785_v24, %v1111_v10 }
  0x20   :  { %855 = vmatpush3.msra.mxu1 %v797_v39  ;;  %597 = vmatpush1.msra.mxu0 %v795_v40  ;;  %v545_v39 = vrot.slane %v785_v24, %v1118_v19  ;;  %v729_v40 = vrot.slane %v800_v29, %v1105_v5 }
  0x21   :  { %856 = vmatprep.subr.mxu1 %v869_v0  ;;  %598 = vmatprep.subr.mxu0 %v793_v41  ;;  %v721_v41 = vrot.slane %v800_v29, %v1111_v10 }
  0x22   :  { %857 = vmatpush3.msra.mxu1 %v794_v42  ;;  %599 = vmatpush1.msra.mxu0 %v792_v43 }
  0x23   :  { %858 = vmatprep.subr.mxu1 %v869_v0  ;;  %600 = vmatprep.subr.mxu0 %v790_v44 }
  0x24   :  { %859 = vmatpush3.msra.mxu1 %v791_v45  ;;  %601 = vmatpush1.msra.mxu0 %v789_v46 }
  0x25   :  { %860 = vmatprep.subr.mxu1 %v869_v0  ;;  %602 = vmatprep.subr.mxu0 %v787_v47 }
  0x26   :  { %861 = vmatpush3.msra.mxu1 %v788_v48  ;;  %862 = vmatprep.mubr.msk.f32.mxu1 %vm870_vm1, %v869_v0 }
  0x27   :  { %603 = vmatpush1.msra.mxu0 %v786_v49  ;;  %636 = vmatprep.mubr.f32.mxu0 %v869_v0 }
  0x28   :  { %863 = vmatmul.mubr.msk.f32.vlgmr.msra.gmra.mxu1 %vm38_vm0, %v946_v13  ;;  %798 = vmatmul.mubr.msk.f32.vlgmr.msra.gmra.mxu0 %vm38_vm0, %v946_v13 }
  0x29   :  { %868 = vset.pattern.permute.xlu0 %v871_v51 }
  0x2a   :  { %35 = vperm.xlu0 %868, %v32_v50  }
  0xa5   :  { %v1098_v61 = vpop.permute.xlu0 %35 }
  0xca   :  { %v108_v54 = vpop.f32.mrf.mxu0 }
  0xcb   :  { %v179_v52 = vpop.f32.mrf.mxu1  ;;  %v109_v6 = vadd.f32 %v108_v54, %v1098_v61 }
  0xcc   :  { %v110_v55 = vpop.f32.mrf.mxu0  ;;  %v180_v2 = vadd.f32 %v179_v52, %v1098_v61 }
  0xcd   :  { %v831_v53 = vpop.f32.mrf.mxu1  ;;  %v111_v4 = vadd.f32 %v110_v55, %v1098_v61  ;;  %v183_v23 = vmax.f32 %v109_v6, 0.0  ;;  %v725_v55 = vrot.slane %v800_v29, %v1118_v19 }
  0xce   :  { %v185_v18 = vmax.f32 %v180_v2, 0.0 }
  0xcf   :  { %v184_v21 = vmax.f32 %v111_v4, 0.0 }
  0xd4   :  { %v349_v56 = vpop.f32.mrf.mxu1 }
  0xd5   :  { %v278_v57 = vpop.f32.mrf.mxu0  ;;  %v350_v63 = vadd.f32 %v349_v56, %v1098_v61 }
  0xd6   :  { %v842_v58 = vpop.f32.mrf.mxu1  ;;  %v279_v0 = vadd.f32 %v278_v57, %v1098_v61 }
  0xd7   :  { %v280_v60 = vpop.f32.mrf.mxu0  ;;  %v355_v9 = vmax.f32 %v350_v63, 0.0 }
  0xd8   :  { %v281_v1 = vadd.f32 %v280_v60, %v1098_v61  ;;  %v353_v13 = vmax.f32 %v279_v0, 0.0 }
  0xd9   :  { %vm1126_vm2 = vcmp.gt.f32.partialorder %v355_v9, %v185_v18 }
  0xda   :  { %v354_v14 = vmax.f32 %v281_v1, 0.0  ;;  %vm1135_vm3 = vcmp.gt.f32.partialorder %v353_v13, %v183_v23  ;;  %v375_v42 = vsel %vm1126_vm2, %v355_v9, %v185_v18  ;;  %v378_v51 = vsel %vm1126_vm2, %v369_v25, %v198_v22 }
  0xdb   :  { %v373_v43 = vsel %vm1135_vm3, %v353_v13, %v183_v23  ;;  %v376_v52 = vsel %vm1135_vm3, %v361_v28, %v190_v27 }
  0xdc   :  { %vm1139_vm4 = vcmp.gt.f32.partialorder %v354_v14, %v184_v21 }
  0xdd   :  { %v374_v44 = vsel %vm1139_vm4, %v354_v14, %v184_v21  ;;  %v377_v57 = vsel %vm1139_vm4, %v365_v35, %v194_v34 }
  0xde   :  { %v529_v3 = vpop.f32.mrf.mxu1 }
  0xdf   :  { %v458_v7 = vpop.f32.mrf.mxu0  ;;  %v530_v15 = vadd.f32 %v529_v3, %v1098_v61 }
  0xe0   :  { %v853_v11 = vpop.f32.mrf.mxu1  ;;  %v459_v16 = vadd.f32 %v458_v7, %v1098_v61 }
  0xe1   :  { %v460_v17 = vpop.f32.mrf.mxu0  ;;  %v535_v32 = vmax.f32 %v530_v15, 0.0 }
  0xe2   :  { %v461_v20 = vadd.f32 %v460_v17, %v1098_v61  ;;  %v533_v33 = vmax.f32 %v459_v16, 0.0 }
  0xe3   :  { %vm1156_vm6 = vcmp.gt.f32.partialorder %v535_v32, %v375_v42 }
  0xe4   :  { %v534_v37 = vmax.f32 %v461_v20, 0.0  ;;  %vm1160_vm7 = vcmp.gt.f32.partialorder %v533_v33, %v373_v43  ;;  %v558_v62 = vsel %vm1156_vm6, %v549_v36, %v378_v51  ;;  %v555_v0 = vsel %vm1156_vm6, %v535_v32, %v375_v42 }
  0xe5   :  { %v556_v63 = vsel %vm1160_vm7, %v541_v38, %v376_v52  ;;  %v553_v1 = vsel %vm1160_vm7, %v533_v33, %v373_v43 }
  0xe6   :  { %vm1170_vm8 = vcmp.gt.f32.partialorder %v534_v37, %v374_v44 }
  0xe7   :  { %v554_v2 = vsel %vm1170_vm8, %v534_v37, %v374_v44  ;;  %v557_v7 = vsel %vm1170_vm8, %v545_v39, %v377_v57 }
  0xe8   :  { %v709_v45 = vpop.f32.mrf.mxu1  ;;  %v638_v46 = vpop.f32.mrf.mxu0 }
  0xe9   :  { %v710_v49 = vadd.f32 %v709_v45, %v1098_v61  ;;  %v639_v50 = vadd.f32 %v638_v46, %v1098_v61 }
  0xea   :  { %v640_v54 = vpop.f32.mrf.mxu0  ;;  %v864_v56 = vpop.f32.mrf.mxu1 }
  0xeb   :  { %v715_v58 = vmax.f32 %v710_v49, 0.0  ;;  %v713_v59 = vmax.f32 %v639_v50, 0.0  ;;  %v641_v60 = vadd.f32 %v640_v54, %v1098_v61 }
  0xed   :  { %vm732_vm9 = vcmp.gt.f32.partialorder %v715_v58, %v555_v0  ;;  %vm730_vm10 = vcmp.gt.f32.partialorder %v713_v59, %v553_v1  ;;  %v714_v3 = vmax.f32 %v641_v60, 0.0 }
  0xee   :  { %v735_v4 = vsel %vm732_vm9, %v715_v58, %v555_v0  ;;  %v738_v61 = vsel %vm732_vm9, %v729_v40, %v558_v62  ;;  %v733_v5 = vsel %vm730_vm10, %v713_v59, %v553_v1  ;;  %v736_v6 = vsel %vm730_vm10, %v721_v41, %v556_v63 }
  0xef   :  { %742 = vst.msk [vmem:[%s1214_s4 + $0x10] sm:$0x1f] %vm741_vm5, %v735_v4  ;;  %745 = vst.msk [vmem:[%s1215_s5 + $0x10] sm:$0x1f] %vm741_vm5, %v738_v61  ;;  %vm731_vm11 = vcmp.gt.f32.partialorder %v714_v3, %v554_v2 }
  0xf0   :  { %739 = vst [vmem:[%s1214_s4] sm:$0x1f] %v733_v5  ;;  %743 = vst [vmem:[%s1215_s5] sm:$0x1f] %v736_v6  ;;  %v734_v8 = vsel %vm731_vm11, %v714_v3, %v554_v2  ;;  %v737_v9 = vsel %vm731_vm11, %v725_v55, %v557_v7 }
  0xf1   :  { %740 = vst [vmem:[%s1214_s4 + $0x8] sm:$0x1f] %v734_v8  ;;  %744 = vst [vmem:[%s1215_s5 + $0x8] sm:$0x1f] %v737_v9 }

// kernel: ae_forward.6
= control target key start
LH: loop header
LB: loop body
LE: loop exit
PB: predicated region body
PF: predicated region fallthrough
CT: control target
= control target key end

     0   :  { %v732_v3 = vmov 0   ;;  %vm451_vm2 = vcmask 254976   ;;  %vm449_vm4 = vcmask 261120   ;;  %s1021_s0 = inlined_call_operand.vmem [shape: f32[4,128,32], index: 0, kind: input, shape index: {}]   ;;  %s1022_s1 = inlined_call_operand.vmem [shape: f32[10,128], index: 1, kind: input, shape index: {}]   ;;  %s1023_s2 = inlined_call_operand.vmem [shape: f32[10,1], index: 2, kind: input, shape index: {}]   ;;  %s1024_s3 = inlined_call_operand.vmem [shape: s32[4,1,32], index: 3, kind: input, shape index: {}]   ;;  %s1025_s4 = inlined_call_operand.vmem [shape: f32[10,32], index: 4, kind: output, shape index: {0}]   ;;  %s1026_s5 = inlined_call_operand.vmem [shape: s32[10,32], index: 5, kind: output, shape index: {1}]  }
   0x1   :  { %v36_v0 = vld [vmem:[%s1021_s0 + $0x78] sm:$0xff]  ;;  %v35_v2 = vld [vmem:[%s1021_s0 + $0x70] sm:$0xff]  ;;  %731 = vset.pattern.permute.xlu0 %v732_v3  ;;  %v34_v5 = vld [vmem:[%s1021_s0 + $0x68] sm:$0xff] }
   0x2   :  { %v479_v1 = vld [vmem:[%s1021_s0 + $0xf8] sm:$0xff]  ;;  %590 = vmatprep.subr.mxu0 %v36_v0  ;;  %v478_v4 = vld [vmem:[%s1021_s0 + $0xf0] sm:$0xff]  ;;  %v477_v6 = vld [vmem:[%s1021_s0 + $0xe8] sm:$0xff] }
   0x3   :  { %625 = vmatprep.subr.mxu1 %v479_v1  ;;  %591 = vmatpush3.msra.mxu0 %v36_v0  ;;  %v33_v7 = vld [vmem:[%s1021_s0 + $0x60] sm:$0xff]  ;;  %v32_v9 = vld [vmem:[%s1021_s0 + $0x58] sm:$0xff]  ;;  %v31_v11 = vld [vmem:[%s1021_s0 + $0x50] sm:$0xff] }
   0x4   :  { %626 = vmatpush3.msra.mxu1 %v479_v1  ;;  %592 = vmatprep.subr.mxu0 %v35_v2  ;;  %v476_v8 = vld [vmem:[%s1021_s0 + $0xe0] sm:$0xff]  ;;  %v475_v10 = vld [vmem:[%s1021_s0 + $0xd8] sm:$0xff]  ;;  %v474_v12 = vld [vmem:[%s1021_s0 + $0xd0] sm:$0xff] }
   0x5   :  { %627 = vmatprep.subr.mxu1 %v478_v4  ;;  %593 = vmatpush3.msra.mxu0 %v35_v2  ;;  %v30_v13 = vld [vmem:[%s1021_s0 + $0x48] sm:$0xff]  ;;  %v29_v15 = vld [vmem:[%s1021_s0 + $0x40] sm:$0xff]  ;;  %v28_v17 = vld [vmem:[%s1021_s0 + $0x38] sm:$0xff] }
   0x6   :  { %628 = vmatpush3.msra.mxu1 %v478_v4  ;;  %594 = vmatprep.subr.mxu0 %v34_v5  ;;  %v473_v14 = vld [vmem:[%s1021_s0 + $0xc8] sm:$0xff]  ;;  %v472_v16 = vld [vmem:[%s1021_s0 + $0xc0] sm:$0xff]  ;;  %v471_v18 = vld [vmem:[%s1021_s0 + $0xb8] sm:$0xff] }
   0x7   :  { %629 = vmatprep.subr.mxu1 %v477_v6  ;;  %595 = vmatpush3.msra.mxu0 %v34_v5  ;;  %v27_v19 = vld [vmem:[%s1021_s0 + $0x30] sm:$0xff]  ;;  %v26_v21 = vld [vmem:[%s1021_s0 + $0x28] sm:$0xff]  ;;  %v25_v23 = vld [vmem:[%s1021_s0 + $0x20] sm:$0xff] }
   0x8   :  { %630 = vmatpush3.msra.mxu1 %v477_v6  ;;  %596 = vmatprep.subr.mxu0 %v33_v7  ;;  %v470_v20 = vld [vmem:[%s1021_s0 + $0xb0] sm:$0xff]  ;;  %v469_v22 = vld [vmem:[%s1021_s0 + $0xa8] sm:$0xff]  ;;  %v468_v24 = vld [vmem:[%s1021_s0 + $0xa0] sm:$0xff] }
   0x9   :  { %631 = vmatprep.subr.mxu1 %v476_v8  ;;  %597 = vmatpush3.msra.mxu0 %v33_v7  ;;  %v24_v25 = vld [vmem:[%s1021_s0 + $0x18] sm:$0xff]  ;;  %v23_v27 = vld [vmem:[%s1021_s0 + $0x10] sm:$0xff]  ;;  %v22_v29 = vld [vmem:[%s1021_s0 + $0x8] sm:$0xff] }
   0xa   :  { %632 = vmatpush3.msra.mxu1 %v476_v8  ;;  %598 = vmatprep.subr.mxu0 %v32_v9  ;;  %v467_v26 = vld [vmem:[%s1021_s0 + $0x98] sm:$0xff]  ;;  %v466_v28 = vld [vmem:[%s1021_s0 + $0x90] sm:$0xff]  ;;  %v465_v30 = vld [vmem:[%s1021_s0 + $0x88] sm:$0xff] }
   0xb   :  { %633 = vmatprep.subr.mxu1 %v475_v10  ;;  %599 = vmatpush3.msra.mxu0 %v32_v9  ;;  %v21_v31 = vld [vmem:[%s1021_s0] sm:$0xff]  ;;  %v867_v34 = vld [vmem:[%s1022_s1 + $0x8] sm:$0x3]  ;;  %v497_v35 = vld [vmem:[%s1021_s0 + $0x178] sm:$0xff] }
   0xc   :  { %634 = vmatpush3.msra.mxu1 %v475_v10  ;;  %600 = vmatprep.subr.mxu0 %v31_v11  ;;  %v464_v32 = vld [vmem:[%s1021_s0 + $0x80] sm:$0xff]  ;;  %v515_v36 = vld [vmem:[%s1021_s0 + $0x1f8] sm:$0xff]  ;;  %v496_v37 = vld [vmem:[%s1021_s0 + $0x170] sm:$0xff] }
   0xd   :  { %635 = vmatprep.subr.mxu1 %v474_v12  ;;  %601 = vmatpush3.msra.mxu0 %v31_v11  ;;  %v862_v33 = vld [vmem:[%s1022_s1] sm:$0xff]  ;;  %v514_v38 = vld [vmem:[%s1021_s0 + $0x1f0] sm:$0xff]  ;;  %v495_v39 = vld [vmem:[%s1021_s0 + $0x168] sm:$0xff] }
   0xe   :  { %636 = vmatpush3.msra.mxu1 %v474_v12  ;;  %602 = vmatprep.subr.mxu0 %v30_v13  ;;  %v513_v40 = vld [vmem:[%s1021_s0 + $0x1e8] sm:$0xff]  ;;  %v494_v41 = vld [vmem:[%s1021_s0 + $0x160] sm:$0xff]  ;;  %v493_v43 = vld [vmem:[%s1021_s0 + $0x158] sm:$0xff] }
   0xf   :  { %637 = vmatprep.subr.mxu1 %v473_v14  ;;  %603 = vmatpush3.msra.mxu0 %v30_v13  ;;  %v512_v42 = vld [vmem:[%s1021_s0 + $0x1e0] sm:$0xff]  ;;  %v511_v44 = vld [vmem:[%s1021_s0 + $0x1d8] sm:$0xff]  ;;  %v492_v45 = vld [vmem:[%s1021_s0 + $0x150] sm:$0xff] }
  0x10   :  { %638 = vmatpush3.msra.mxu1 %v473_v14  ;;  %604 = vmatprep.subr.mxu0 %v29_v15  ;;  %v510_v46 = vld [vmem:[%s1021_s0 + $0x1d0] sm:$0xff]  ;;  %v491_v47 = vld [vmem:[%s1021_s0 + $0x148] sm:$0xff]  ;;  %v490_v49 = vld [vmem:[%s1021_s0 + $0x140] sm:$0xff] }
  0x11   :  { %639 = vmatprep.subr.mxu1 %v472_v16  ;;  %605 = vmatpush3.msra.mxu0 %v29_v15  ;;  %v509_v48 = vld [vmem:[%s1021_s0 + $0x1c8] sm:$0xff]  ;;  %v508_v50 = vld [vmem:[%s1021_s0 + $0x1c0] sm:$0xff]  ;;  %v489_v51 = vld [vmem:[%s1021_s0 + $0x138] sm:$0xff] }
  0x12   :  { %640 = vmatpush3.msra.mxu1 %v472_v16  ;;  %606 = vmatprep.subr.mxu0 %v28_v17  ;;  %v507_v52 = vld [vmem:[%s1021_s0 + $0x1b8] sm:$0xff]  ;;  %v488_v53 = vld [vmem:[%s1021_s0 + $0x130] sm:$0xff]  ;;  %v487_v55 = vld [vmem:[%s1021_s0 + $0x128] sm:$0xff] }
  0x13   :  { %641 = vmatprep.subr.mxu1 %v471_v18  ;;  %607 = vmatpush3.msra.mxu0 %v28_v17  ;;  %v506_v54 = vld [vmem:[%s1021_s0 + $0x1b0] sm:$0xff]  ;;  %v505_v56 = vld [vmem:[%s1021_s0 + $0x1a8] sm:$0xff]  ;;  %v486_v57 = vld [vmem:[%s1021_s0 + $0x120] sm:$0xff] }
  0x14   :  { %642 = vmatpush3.msra.mxu1 %v471_v18  ;;  %608 = vmatprep.subr.mxu0 %v27_v19  ;;  %v504_v58 = vld [vmem:[%s1021_s0 + $0x1a0] sm:$0xff]  ;;  %v485_v59 = vld [vmem:[%s1021_s0 + $0x118] sm:$0xff]  ;;  %v484_v61 = vld [vmem:[%s1021_s0 + $0x110] sm:$0xff] }
  0x15   :  { %643 = vmatprep.subr.mxu1 %v470_v20  ;;  %609 = vmatpush3.msra.mxu0 %v27_v19  ;;  %v503_v60 = vld [vmem:[%s1021_s0 + $0x198] sm:$0xff]  ;;  %v502_v62 = vld [vmem:[%s1021_s0 + $0x190] sm:$0xff]  ;;  %v483_v63 = vld [vmem:[%s1021_s0 + $0x108] sm:$0xff] }
  0x16   :  { %644 = vmatpush3.msra.mxu1 %v470_v20  ;;  %610 = vmatprep.subr.mxu0 %v26_v21  ;;  %v501_v0 = vld [vmem:[%s1021_s0 + $0x188] sm:$0xff]  ;;  %v482_v1 = vld [vmem:[%s1021_s0 + $0x100] sm:$0xff] }
  0x17   :  { %645 = vmatprep.subr.mxu1 %v469_v22  ;;  %611 = vmatpush3.msra.mxu0 %v26_v21  ;;  %v500_v2 = vld [vmem:[%s1021_s0 + $0x180] sm:$0xff]  ;;  %v38_v4 = vld [vmem:[%s1023_s2 + $0x8] sm:$0x3] }
  0x18   :  { %646 = vmatpush3.msra.mxu1 %v469_v22  ;;  %612 = vmatprep.subr.mxu0 %v25_v23  ;;  %v37_v3 = vld [vmem:[%s1023_s2] sm:$0xff] }
  0x19   :  { %647 = vmatprep.subr.mxu1 %v468_v24  ;;  %613 = vmatpush3.msra.mxu0 %v25_v23 }
  0x1a   :  { %648 = vmatpush3.msra.mxu1 %v468_v24  ;;  %614 = vmatprep.subr.mxu0 %v24_v25  ;;  %v463_v24 = vld [vmem:[%s1024_s3] ss:$0 sm:$0xff] }
  0x1b   :  { %649 = vmatprep.subr.mxu1 %v467_v26  ;;  %615 = vmatpush3.msra.mxu0 %v24_v25  ;;  %v481_v25 = vld [vmem:[%s1024_s3 + $0x1] ss:$0 sm:$0xff] }
  0x1c   :  { %650 = vmatpush3.msra.mxu1 %v467_v26  ;;  %616 = vmatprep.subr.mxu0 %v23_v27 }
  0x1d   :  { %651 = vmatprep.subr.mxu1 %v466_v28  ;;  %617 = vmatpush3.msra.mxu0 %v23_v27 }
  0x1e   :  { %652 = vmatpush3.msra.mxu1 %v466_v28  ;;  %618 = vmatprep.subr.mxu0 %v22_v29 }
  0x1f   :  { %653 = vmatprep.subr.mxu1 %v465_v30  ;;  %619 = vmatpush3.msra.mxu0 %v22_v29 }
  0x20   :  { %654 = vmatpush3.msra.mxu1 %v465_v30  ;;  %620 = vmatprep.subr.mxu0 %v21_v31  ;;  %v499_v30 = vld [vmem:[%s1024_s3 + $0x2] ss:$0 sm:$0xff] }
  0x21   :  { %655 = vmatprep.subr.mxu1 %v464_v32  ;;  %621 = vmatpush3.msra.mxu0 %v21_v31 }
  0x22   :  { %622 = vmatprep.mubr.f32.mxu0 %v862_v33  ;;  %656 = vmatpush3.msra.mxu1 %v464_v32 }
  0x23   :  { %657 = vmatprep.mubr.f32.mxu1 %v862_v33  ;;  %623 = vmatmul.mubr.f32.vlgmr.msra.gmra.mxu0 %v867_v34 }
  0x24   :  { %658 = vmatmul.mubr.f32.vlgmr.msra.gmra.mxu1 %v867_v34  ;;  %660 = vmatprep.subr.mxu0 %v497_v35 }
  0x25   :  { %695 = vmatprep.subr.mxu1 %v515_v36  ;;  %661 = vmatpush3.msra.mxu0 %v497_v35 }
  0x26   :  { %696 = vmatpush3.msra.mxu1 %v515_v36  ;;  %662 = vmatprep.subr.mxu0 %v496_v37  ;;  %v517_v36 = vld [vmem:[%s1024_s3 + $0x3] ss:$0 sm:$0xff] }
  0x27   :  { %697 = vmatprep.subr.mxu1 %v514_v38  ;;  %663 = vmatpush3.msra.mxu0 %v496_v37 }
  0x28   :  { %698 = vmatpush3.msra.mxu1 %v514_v38  ;;  %664 = vmatprep.subr.mxu0 %v495_v39 }
  0x29   :  { %699 = vmatprep.subr.mxu1 %v513_v40  ;;  %665 = vmatpush3.msra.mxu0 %v495_v39 }
  0x2a   :  { %700 = vmatpush3.msra.mxu1 %v513_v40  ;;  %666 = vmatprep.subr.mxu0 %v494_v41 }
  0x2b   :  { %701 = vmatprep.subr.mxu1 %v512_v42  ;;  %667 = vmatpush3.msra.mxu0 %v494_v41 }
  0x2c   :  { %702 = vmatpush3.msra.mxu1 %v512_v42  ;;  %668 = vmatprep.subr.mxu0 %v493_v43 }
  0x2d   :  { %703 = vmatprep.subr.mxu1 %v511_v44  ;;  %669 = vmatpush3.msra.mxu0 %v493_v43 }
  0x2e   :  { %704 = vmatpush3.msra.mxu1 %v511_v44  ;;  %670 = vmatprep.subr.mxu0 %v492_v45 }
  0x2f   :  { %705 = vmatprep.subr.mxu1 %v510_v46  ;;  %671 = vmatpush3.msra.mxu0 %v492_v45 }
  0x30   :  { %706 = vmatpush3.msra.mxu1 %v510_v46  ;;  %672 = vmatprep.subr.mxu0 %v491_v47 }
  0x31   :  { %707 = vmatprep.subr.mxu1 %v509_v48  ;;  %673 = vmatpush3.msra.mxu0 %v491_v47 }
  0x32   :  { %708 = vmatpush3.msra.mxu1 %v509_v48  ;;  %674 = vmatprep.subr.mxu0 %v490_v49 }
  0x33   :  { %709 = vmatprep.subr.mxu1 %v508_v50  ;;  %675 = vmatpush3.msra.mxu0 %v490_v49 }
  0x34   :  { %710 = vmatpush3.msra.mxu1 %v508_v50  ;;  %676 = vmatprep.subr.mxu0 %v489_v51 }
  0x35   :  { %711 = vmatprep.subr.mxu1 %v507_v52  ;;  %677 = vmatpush3.msra.mxu0 %v489_v51 }
  0x36   :  { %712 = vmatpush3.msra.mxu1 %v507_v52  ;;  %678 = vmatprep.subr.mxu0 %v488_v53 }
  0x37   :  { %713 = vmatprep.subr.mxu1 %v506_v54  ;;  %679 = vmatpush3.msra.mxu0 %v488_v53 }
  0x38   :  { %714 = vmatpush3.msra.mxu1 %v506_v54  ;;  %680 = vmatprep.subr.mxu0 %v487_v55 }
  0x39   :  { %715 = vmatprep.subr.mxu1 %v505_v56  ;;  %681 = vmatpush3.msra.mxu0 %v487_v55 }
  0x3a   :  { %716 = vmatpush3.msra.mxu1 %v505_v56  ;;  %682 = vmatprep.subr.mxu0 %v486_v57 }
  0x3b   :  { %717 = vmatprep.subr.mxu1 %v504_v58  ;;  %683 = vmatpush3.msra.mxu0 %v486_v57 }
  0x3c   :  { %718 = vmatpush3.msra.mxu1 %v504_v58  ;;  %684 = vmatprep.subr.mxu0 %v485_v59 }
  0x3d   :  { %719 = vmatprep.subr.mxu1 %v503_v60  ;;  %685 = vmatpush3.msra.mxu0 %v485_v59 }
  0x3e   :  { %720 = vmatpush3.msra.mxu1 %v503_v60  ;;  %686 = vmatprep.subr.mxu0 %v484_v61 }
  0x3f   :  { %721 = vmatprep.subr.mxu1 %v502_v62  ;;  %687 = vmatpush3.msra.mxu0 %v484_v61 }
  0x40   :  { %722 = vmatpush3.msra.mxu1 %v502_v62  ;;  %688 = vmatprep.subr.mxu0 %v483_v63 }
  0x41   :  { %723 = vmatprep.subr.mxu1 %v501_v0  ;;  %689 = vmatpush3.msra.mxu0 %v483_v63 }
  0x42   :  { %724 = vmatpush3.msra.mxu1 %v501_v0  ;;  %690 = vmatprep.subr.mxu0 %v482_v1 }
  0x43   :  { %725 = vmatprep.subr.mxu1 %v500_v2  ;;  %691 = vmatpush3.msra.mxu0 %v482_v1 }
  0x44   :  { %692 = vmatprep.mubr.f32.mxu0 %v862_v33  ;;  %726 = vmatpush3.msra.mxu1 %v500_v2 }
  0x45   :  { %727 = vmatprep.mubr.f32.mxu1 %v862_v33  ;;  %693 = vmatmul.mubr.f32.vlgmr.msra.gmra.mxu0 %v867_v34 }
  0x46   :  { %728 = vmatmul.mubr.f32.vlgmr.msra.gmra.mxu1 %v867_v34  ;;  %41 = vperm.xlu0 %731, %v37_v3  }
  0x4a   :  { %46 = vperm.xlu0 %731, %v38_v4  }
  0xc1   :  { %v42_v5 = vpop.permute.xlu0 %41 }
  0xc5   :  { %v47_v8 = vpop.permute.xlu0 %46 }
  0xe3   :  { %v624_v6 = vpop.f32.mrf.mxu0 }
  0xe4   :  { %v659_v7 = vpop.f32.mrf.mxu1  ;;  %v121_v11 = vadd.f32 %v624_v6, %v47_v8 }
  0xe5   :  { %v115_v9 = vpop.f32.mrf.mxu0  ;;  %v220_v12 = vadd.f32 %v659_v7, %v47_v8 }
  0xe6   :  { %v214_v10 = vpop.f32.mrf.mxu1  ;;  %v116_v13 = vadd.f32 %v115_v9, %v42_v5  ;;  %v125_v15 = vmax.f32 %v121_v11, 0.0 }
  0xe7   :  { %v215_v14 = vadd.f32 %v214_v10, %v42_v5  ;;  %v224_v16 = vmax.f32 %v220_v12, 0.0 }
  0xe8   :  { %v124_v17 = vmax.f32 %v116_v13, 0.0 }
  0xe9   :  { %v223_v18 = vmax.f32 %v215_v14, 0.0  ;;  %vm979_vm0 = vcmp.gt.f32.partialorder %v224_v16, %v125_v15 }
  0xea   :  { %v234_v33 = vsel %vm979_vm0, %v224_v16, %v125_v15  ;;  %v236_v34 = vsel %vm979_vm0, %v481_v25, %v463_v24 }
  0xeb   :  { %vm989_vm1 = vcmp.gt.f32.partialorder %v223_v18, %v124_v17 }
  0xec   :  { %v233_v40 = vsel %vm989_vm1, %v223_v18, %v124_v17  ;;  %v235_v41 = vsel %vm989_vm1, %v481_v25, %v463_v24 }
 0x105   :  { %v694_v19 = vpop.f32.mrf.mxu0 }
 0x106   :  { %v729_v20 = vpop.f32.mrf.mxu1  ;;  %v326_v22 = vadd.f32 %v694_v19, %v47_v8 }
 0x107   :  { %v432_v23 = vadd.f32 %v729_v20, %v47_v8  ;;  %v320_v26 = vpop.f32.mrf.mxu0 }
 0x108   :  { %v426_v27 = vpop.f32.mrf.mxu1  ;;  %v330_v29 = vmax.f32 %v326_v22, 0.0  ;;  %v321_v31 = vadd.f32 %v320_v26, %v42_v5 }
 0x109   :  { %v427_v32 = vadd.f32 %v426_v27, %v42_v5  ;;  %v436_v35 = vmax.f32 %v432_v23, 0.0 }
 0x10a   :  { %vm338_vm3 = vcmp.gt.f32.partialorder %v330_v29, %v234_v33  ;;  %v329_v37 = vmax.f32 %v321_v31, 0.0 }
 0x10b   :  { %v342_v38 = vsel %vm338_vm3, %v499_v30, %v236_v34  ;;  %v340_v39 = vsel %vm338_vm3, %v330_v29, %v234_v33  ;;  %v435_v42 = vmax.f32 %v427_v32, 0.0 }
 0x10c   :  { %vm444_vm5 = vcmp.gt.f32.partialorder %v436_v35, %v340_v39  ;;  %vm337_vm6 = vcmp.gt.f32.partialorder %v329_v37, %v233_v40 }
 0x10d   :  { %v446_v43 = vsel %vm444_vm5, %v436_v35, %v340_v39  ;;  %v448_v44 = vsel %vm444_vm5, %v517_v36, %v342_v38  ;;  %v341_v45 = vsel %vm337_vm6, %v499_v30, %v235_v41  ;;  %v339_v46 = vsel %vm337_vm6, %v329_v37, %v233_v40 }
 0x10e   :  { %452 = vst.msk [vmem:[%s1025_s4 + $0x8] sm:$0x3] %vm451_vm2, %v446_v43  ;;  %454 = vst.msk [vmem:[%s1026_s5 + $0x8] sm:$0x3] %vm451_vm2, %v448_v44  ;;  %vm443_vm7 = vcmp.gt.f32.partialorder %v435_v42, %v339_v46 }
 0x10f   :  { %v445_v47 = vsel %vm443_vm7, %v435_v42, %v339_v46  ;;  %v447_v48 = vsel %vm443_vm7, %v517_v36, %v341_v45 }
 0x110   :  { %450 = vst.msk [vmem:[%s1025_s4] sm:$0xff] %vm449_vm4, %v445_v47  ;;  %453 = vst.msk [vmem:[%s1026_s5] sm:$0xff] %vm449_vm4, %v447_v48 }

// kernel: ae_forward.7
= control target key start
LH: loop header
LB: loop body
LE: loop exit
PB: predicated region body
PF: predicated region fallthrough
CT: control target
= control target key end

     0   :  { %v918_v0 = vmov 0.0   ;;  %vm94_vm0 = vcmask 261120   ;;  %vm919_vm1 = vmmov 0   ;;  %vm180_vm2 = vcmask 326656   ;;  %s1293_s3 = inlined_call_operand.vmem [shape: f32[160,40], index: 3, kind: input, shape index: {}]   ;;  %s1294_s0 = inlined_call_operand.vmem [shape: f32[2,160], index: 0, kind: input, shape index: {}]   ;;  %s1295_s5 = inlined_call_operand.vmem [shape: f32[40,20], index: 5, kind: input, shape index: {}]   ;;  %s1296_s4 = inlined_call_operand.vmem [shape: f32[1,40], index: 4, kind: input, shape index: {}]   ;;  %s1297_s7 = inlined_call_operand.vmem [shape: f32[20,10], index: 7, kind: input, shape index: {}]   ;;  %s1298_s6 = inlined_call_operand.vmem [shape: f32[1,20], index: 6, kind: input, shape index: {}]   ;;  %s1299_s9 = inlined_call_operand.vmem [shape: f32[10,20], index: 9, kind: input, shape index: {}]   ;;  %s1300_s8 = inlined_call_operand.vmem [shape: f32[1,10], index: 8, kind: input, shape index: {}]   ;;  %s1301_s11 = inlined_call_operand.vmem [shape: f32[20,40], index: 11, kind: input, shape index: {}]   ;;  %s1302_s10 = inlined_call_operand.vmem [shape: f32[1,20], index: 10, kind: input, shape index: {}]   ;;  %s1303_s13 = inlined_call_operand.vmem [shape: f32[40,80], index: 13, kind: input, shape index: {}]   ;;  %s1304_s15 = inlined_call_operand.vmem [shape: f32[80,160], index: 15, kind: input, shape index: {}]   ;;  %s1305_s12 = inlined_call_operand.vmem [shape: f32[1,40], index: 12, kind: input, shape index: {}]   ;;  %s1306_s14 = inlined_call_operand.vmem [shape: f32[1,80], index: 14, kind: input, shape index: {}]   ;;  %s1307_s2 = inlined_call_operand.vmem [shape: s32[4,1,160], index: 2, kind: input, shape index: {}]   ;;  %s1308_s16 = inlined_call_operand.vmem [shape: f32[1,160], index: 16, kind: input, shape index: {}]   ;;  %s1309_s1 = inlined_call_operand.vmem [shape: s32[2,160], index: 1, kind: input, shape index: {}]   ;;  %s1310_s17 = inlined_call_operand.vmem [shape: f32[4,2,160], index: 17, kind: output, shape index: {}]  }
   0x1   :  { %1312 = sst [smem:[#allocation2_spill]] %s1293_s3  ;;  %97 = vmatprep.subr.mxu0 %v918_v0  ;;  %877 = vmatprep.subr.mxu1 %v918_v0  ;;  %v172_v23 = vld [vmem:[%s1295_s5 + $0x20] sm:$0xff]  ;;  %v171_v24 = vld [vmem:[%s1295_s5 + $0x18] sm:$0xff]  ;;  %v170_v25 = vld [vmem:[%s1295_s5 + $0x10] sm:$0xff]  ;;  %vm269_vm3 = vcmask 1043456   ;;  %vm265_vm4 = vcmask 162816  }
   0x2   :  { %1313 = sst [smem:[#allocation3_spill]] %s1294_s0  ;;  %v169_v26 = vld [vmem:[%s1295_s5 + $0x8] sm:$0xff]  ;;  %v168_v27 = vld [vmem:[%s1295_s5] sm:$0xff]  ;;  %883 = vmatprep.mubr.msk.f32.mxu1 %vm919_vm1, %v918_v0  ;;  %v257_v33 = vld [vmem:[%s1297_s7 + $0x10] sm:$0xf]  ;;  %vm357_vm5 = vcmask 1041408  }
   0x3   :  { %s1314_s26 = sld [smem:[#allocation2_spill]]  ;;  %v818_v28 = vld [vmem:[%s1296_s4] ss:$0 sm:$0xff]  ;;  %878 = vmatpush3.msk.msra.mxu1 %vm269_vm3, %v257_v33  ;;  %v256_v34 = vld [vmem:[%s1297_s7 + $0x8] sm:$0xff]  ;;  %vm353_vm6 = vcmask 80896   ;;  %v522_v57 = vld [vmem:[%s1303_s13 + $0x18] sm:$0xff] }
   0x4   :  { %s1315_s22 = sld [smem:[#allocation3_spill]]  ;;  %879 = vmatprep.subr.mxu1 %v918_v0  ;;  %v255_v35 = vld [vmem:[%s1297_s7] sm:$0xff]  ;;  %v345_v41 = vld [vmem:[%s1299_s9 + $0x8] sm:$0x3]  ;;  %v434_v48 = vld [vmem:[%s1301_s11 + $0x10] sm:$0xf] }
   0x5   :  { %880 = vmatpush3.msra.mxu1 %v256_v34  ;;  %v821_v36 = vld [vmem:[%s1298_s6] ss:$0 sm:$0xff]  ;;  %v433_v49 = vld [vmem:[%s1301_s11 + $0x8] sm:$0xff]  ;;  %v521_v58 = vld [vmem:[%s1303_s13 + $0x10] sm:$0xff]  ;;  %vm637_vm7 = vcmask 654336   ;;  %vm745_vm8 = vcmask 257026  }
   0x6   :  { %881 = vmatprep.subr.mxu1 %v918_v0  ;;  %v344_v42 = vld [vmem:[%s1299_s9] sm:$0xff]  ;;  %v520_v59 = vld [vmem:[%s1303_s13 + $0x8] sm:$0xff]  ;;  %v624_v61 = vld [vmem:[%s1304_s15 + $0x98] sm:$0xff] }
   0x7   :  { %882 = vmatpush3.msra.mxu1 %v255_v35  ;;  %v823_v43 = vld [vmem:[%s1300_s8] ss:$0 sm:$0xff]  ;;  %v835_v33 = vld [vmem:[%s1307_s2 + $0x2] sm:$0x3]  ;;  %v837_v35 = vld [vmem:[%s1307_s2 + $0x4] sm:$0x3] }
   0x8   :  { %886 = vmatprep.subr.mxu1 %v918_v0  ;;  %v432_v50 = vld [vmem:[%s1301_s11] sm:$0xff]  ;;  %vm746_vm13 = vmor %vm745_vm8, %vm357_vm5 }
   0x9   :  { %v72_v1 = vld [vmem:[%s1314_s26 + $0x78] sm:$0xff]  ;;  %v71_v2 = vld [vmem:[%s1314_s26 + $0x70] sm:$0xff]  ;;  %v70_v3 = vld [vmem:[%s1314_s26 + $0x68] sm:$0xff] }
   0xa   :  { %98 = vmatpush1.msra.mxu0 %v72_v1  ;;  %v69_v4 = vld [vmem:[%s1314_s26 + $0x60] sm:$0xff]  ;;  %v68_v5 = vld [vmem:[%s1314_s26 + $0x58] sm:$0xff]  ;;  %v67_v8 = vld [vmem:[%s1314_s26 + $0x50] sm:$0xff] }
   0xb   :  { %99 = vmatprep.subr.mxu0 %v918_v0  ;;  %v819_v6 = vld.sshfl [vmem:[%s1315_s22] sm:$0x33 pattern:$0x76325410]  ;;  %v66_v9 = vld [vmem:[%s1314_s26 + $0x48] sm:$0xff]  ;;  %v64_v11 = vld [vmem:[%s1314_s26 + $0x38] sm:$0xff] }
   0xc   :  { %100 = vmatpush1.msra.mxu0 %v71_v2  ;;  %v92_v7 = vcombine.high %v819_v6, %v819_v6  ;;  %v65_v10 = vld [vmem:[%s1314_s26 + $0x40] sm:$0xff]  ;;  %v63_v12 = vld [vmem:[%s1314_s26 + $0x30] sm:$0xff]  ;;  %v62_v13 = vld [vmem:[%s1314_s26 + $0x28] sm:$0xff] }
   0xd   :  { %101 = vmatprep.subr.mxu0 %v918_v0  ;;  %v61_v14 = vld [vmem:[%s1314_s26 + $0x20] sm:$0xff]  ;;  %v60_v15 = vld [vmem:[%s1314_s26 + $0x18] sm:$0xff]  ;;  %v59_v16 = vld [vmem:[%s1314_s26 + $0x10] sm:$0xff] }
   0xe   :  { %102 = vmatpush1.msra.mxu0 %v70_v3  ;;  %820 = vmatprep.mubr.msk.f32.mxu0 %vm94_vm0, %v92_v7  ;;  %v58_v17 = vld [vmem:[%s1314_s26 + $0x8] sm:$0xff]  ;;  %v57_v18 = vld [vmem:[%s1314_s26] sm:$0xff]  ;;  %v76_v19 = vld [vmem:[%s1314_s26 + $0x98] sm:$0xff] }
   0xf   :  { %103 = vmatprep.subr.mxu0 %v918_v0  ;;  %v75_v20 = vld [vmem:[%s1314_s26 + $0x90] sm:$0xff]  ;;  %v74_v21 = vld [vmem:[%s1314_s26 + $0x88] sm:$0xff]  ;;  %v73_v22 = vld [vmem:[%s1314_s26 + $0x80] sm:$0xff] }
  0x10   :  { %104 = vmatpush1.msra.mxu0 %v69_v4  ;;  %v826_v51 = vld [vmem:[%s1302_s10] ss:$0 sm:$0xff]  ;;  %v623_v4 = vld [vmem:[%s1304_s15 + $0x90] sm:$0xff]  ;;  %v620_v7 = vld [vmem:[%s1304_s15 + $0x78] sm:$0xff] }
  0x11   :  { %105 = vmatprep.subr.mxu0 %v918_v0  ;;  %v523_v56 = vld [vmem:[%s1303_s13 + $0x20] sm:$0xff] }
  0x12   :  { %106 = vmatpush1.msra.mxu0 %v68_v5  ;;  %v519_v60 = vld [vmem:[%s1303_s13] sm:$0xff]  ;;  %v622_v5 = vld [vmem:[%s1304_s15 + $0x88] sm:$0xff] }
  0x13   :  { %107 = vmatprep.subr.mxu0 %v918_v0  ;;  %v829_v62 = vld [vmem:[%s1305_s12] ss:$0 sm:$0xff] }
  0x14   :  { %108 = vmatpush1.msra.mxu0 %v67_v8  ;;  %v619_v8 = vld [vmem:[%s1304_s15 + $0x70] sm:$0xff] }
  0x15   :  { %109 = vmatprep.subr.mxu0 %v918_v0 }
  0x16   :  { %110 = vmatpush1.msra.mxu0 %v66_v9  ;;  %v618_v9 = vld [vmem:[%s1304_s15 + $0x68] sm:$0xff] }
  0x17   :  { %111 = vmatprep.subr.mxu0 %v918_v0 }
  0x18   :  { %112 = vmatpush1.msra.mxu0 %v65_v10  ;;  %v617_v10 = vld [vmem:[%s1304_s15 + $0x60] sm:$0xff] }
  0x19   :  { %113 = vmatprep.subr.mxu0 %v918_v0 }
  0x1a   :  { %114 = vmatpush1.msra.mxu0 %v64_v11  ;;  %v615_v11 = vld [vmem:[%s1304_s15 + $0x50] sm:$0xff] }
  0x1b   :  { %115 = vmatprep.subr.mxu0 %v918_v0 }
  0x1c   :  { %116 = vmatpush1.msra.mxu0 %v63_v12  ;;  %v614_v12 = vld [vmem:[%s1304_s15 + $0x48] sm:$0xff] }
  0x1d   :  { %117 = vmatprep.subr.mxu0 %v918_v0 }
  0x1e   :  { %118 = vmatpush1.msra.mxu0 %v62_v13  ;;  %v613_v13 = vld [vmem:[%s1304_s15 + $0x40] sm:$0xff] }
  0x1f   :  { %119 = vmatprep.subr.mxu0 %v918_v0 }
  0x20   :  { %120 = vmatpush1.msra.mxu0 %v61_v14  ;;  %v612_v14 = vld [vmem:[%s1304_s15 + $0x38] sm:$0xff] }
  0x21   :  { %121 = vmatprep.subr.mxu0 %v918_v0 }
  0x22   :  { %122 = vmatpush1.msra.mxu0 %v60_v15  ;;  %v611_v15 = vld [vmem:[%s1304_s15 + $0x30] sm:$0xff] }
  0x23   :  { %123 = vmatprep.subr.mxu0 %v918_v0 }
  0x24   :  { %124 = vmatpush1.msra.mxu0 %v59_v16  ;;  %v610_v16 = vld [vmem:[%s1304_s15 + $0x28] sm:$0xff] }
  0x25   :  { %125 = vmatprep.subr.mxu0 %v918_v0 }
  0x26   :  { %126 = vmatpush1.msra.mxu0 %v58_v17  ;;  %v609_v17 = vld [vmem:[%s1304_s15 + $0x20] sm:$0xff] }
  0x27   :  { %127 = vmatprep.subr.mxu0 %v918_v0 }
  0x28   :  { %128 = vmatpush1.msra.mxu0 %v57_v18  ;;  %v608_v18 = vld [vmem:[%s1304_s15 + $0x18] sm:$0xff] }
  0x29   :  { %153 = vmatprep.subr.mxu0 %v918_v0 }
  0x2a   :  { %154 = vmatpush2.msra.mxu0 %v76_v19  ;;  %v607_v19 = vld [vmem:[%s1304_s15 + $0x10] sm:$0xff] }
  0x2b   :  { %155 = vmatprep.subr.mxu0 %v918_v0 }
  0x2c   :  { %156 = vmatpush2.msra.mxu0 %v75_v20  ;;  %v606_v20 = vld [vmem:[%s1304_s15 + $0x8] sm:$0xff] }
  0x2d   :  { %157 = vmatprep.subr.mxu0 %v918_v0 }
  0x2e   :  { %158 = vmatpush2.msra.mxu0 %v74_v21  ;;  %v605_v21 = vld [vmem:[%s1304_s15] sm:$0xff] }
  0x2f   :  { %159 = vmatprep.subr.mxu0 %v918_v0 }
  0x30   :  { %160 = vmatpush2.msra.mxu0 %v73_v22  ;;  %v832_v22 = vld [vmem:[%s1306_s14] ss:$0 sm:$0xff] }
  0x31   :  { %162 = vmatmul.mubr.f32.vlgmr.msra.gmra.mxu0 %v819_v6  ;;  %864 = vmatprep.subr.mxu0 %v918_v0  ;;  %v621_v6 = vld [vmem:[%s1304_s15 + $0x80] sm:$0xff] }
  0x32   :  { %865 = vmatpush3.msra.mxu0 %v172_v23  ;;  %874 = vmatprep.mubr.msk.f32.mxu0 %vm919_vm1, %v918_v0 }
  0x33   :  { %866 = vmatprep.subr.mxu0 %v918_v0 }
  0x34   :  { %867 = vmatpush3.msra.mxu0 %v171_v24 }
  0x35   :  { %868 = vmatprep.subr.mxu0 %v918_v0 }
  0x36   :  { %869 = vmatpush3.msra.mxu0 %v170_v25 }
  0x37   :  { %870 = vmatprep.subr.mxu0 %v918_v0 }
  0x38   :  { %871 = vmatpush3.msra.mxu0 %v169_v26 }
  0x39   :  { %872 = vmatprep.subr.mxu0 %v918_v0 }
  0x3a   :  { %873 = vmatpush3.msra.mxu0 %v168_v27  ;;  %v627_v27 = vlaneseq }
  0xf1   :  { %v163_v29 = vpop.f32.mrf.mxu0 }
  0xf2   :  { %v164_v30 = vadd.f32 %v818_v28, %v163_v29  ;;  %v628_v28 = vshrl.u32 %v627_v27, 7  ;;  %v715_v29 = vld [vmem:[%s1307_s2] sm:$0x3] }
  0xf3   :  { %v165_v31 = vpop.f32.mrf.mxu0 }
  0xf4   :  { %v167_v32 = vmax.f32 %v164_v30, 0.0  ;;  %v920_v30 = vmov 1983009808   ;;  %v633_v34 = vsub.s32 1, %v628_v28 }
  0xf5   :  { %v726_v31 = vunpack.c.l.s4 %v920_v30 }
  0xf6   :  { %875 = vmatmul.mubr.msk.f32.vlgmr.msra.gmra.mxu0 %vm180_vm2, %v167_v32  ;;  %v629_v32 = vsub.s32 0, %v628_v28 }
 0x1b6   :  { %v250_v37 = vpop.f32.mrf.mxu0 }
 0x1b7   :  { %v251_v38 = vadd.f32 %v821_v36, %v250_v37  ;;  %v839_v36 = vld [vmem:[%s1307_s2 + $0x6] sm:$0x3]  ;;  %v625_v37 = vld [vmem:[%s1308_s16] sm:$0x3] }
 0x1b8   :  { %v876_v39 = vpop.f32.mrf.mxu0 }
 0x1b9   :  { %v254_v40 = vmax.f32 %v251_v38, 0.0  ;;  %v719_v38 = vrot.slane %v715_v29, %v629_v32  ;;  %v723_v39 = vrot.slane %v715_v29, %v633_v34 }
 0x1bb   :  { %884 = vmatmul.mubr.msk.f32.vlgmr.msra.gmra.mxu1 %vm265_vm4, %v254_v40  ;;  %v727_v40 = vunpack.c.0.s8 %v726_v31 }
 0x1bc   :  { %890 = vmatprep.mubr.msk.f32.mxu1 %vm919_vm1, %v918_v0  ;;  %887 = vmatpush3.msk.msra.mxu1 %vm357_vm5, %v345_v41  ;;  %v753_v41 = vrot.slane %v835_v33, %v629_v32 }
 0x1bd   :  { %888 = vmatprep.subr.mxu1 %v918_v0 }
 0x1be   :  { %889 = vmatpush3.msra.mxu1 %v344_v42  ;;  %v757_v42 = vrot.slane %v835_v33, %v633_v34 }
 0x1bf   :  { %893 = vmatprep.subr.mxu1 %v918_v0 }
 0x27b   :  { %v339_v44 = vpop.f32.mrf.mxu1 }
 0x27c   :  { %v340_v45 = vadd.f32 %v823_v43, %v339_v44  ;;  %v775_v43 = vrot.slane %v837_v35, %v629_v32  ;;  %v779_v44 = vrot.slane %v837_v35, %v633_v34 }
 0x27d   :  { %v885_v46 = vpop.f32.mrf.mxu1 }
 0x27e   :  { %v343_v47 = vmax.f32 %v340_v45, 0.0  ;;  %v797_v45 = vrot.slane %v839_v36, %v629_v32  ;;  %v801_v46 = vrot.slane %v839_v36, %v633_v34 }
 0x280   :  { %891 = vmatmul.mubr.msk.f32.vlgmr.msra.gmra.mxu1 %vm353_vm6, %v343_v47  ;;  %v630_v47 = vrot.slane %v625_v37, %v629_v32 }
 0x281   :  { %899 = vmatprep.mubr.msk.f32.mxu1 %vm919_vm1, %v918_v0  ;;  %894 = vmatpush3.msk.msra.mxu1 %vm269_vm3, %v434_v48  ;;  %v634_v48 = vrot.slane %v625_v37, %v633_v34 }
 0x282   :  { %895 = vmatprep.subr.mxu1 %v918_v0 }
 0x283   :  { %896 = vmatpush3.msra.mxu1 %v433_v49  ;;  %v724_v49 = vcombine.low %v719_v38, %v723_v39 }
 0x284   :  { %897 = vmatprep.subr.mxu1 %v918_v0 }
 0x285   :  { %898 = vmatpush3.msra.mxu1 %v432_v50 }
 0x286   :  { %902 = vmatprep.subr.mxu1 %v918_v0 }
 0x340   :  { %v427_v52 = vpop.f32.mrf.mxu1 }
 0x341   :  { %v428_v53 = vadd.f32 %v826_v51, %v427_v52  ;;  %v730_v51 = vsub.s32 %v727_v40, %v628_v28  ;;  %v758_v52 = vcombine.low %v753_v41, %v757_v42 }
 0x342   :  { %v892_v54 = vpop.f32.mrf.mxu1 }
 0x343   :  { %v431_v55 = vmax.f32 %v428_v53, 0.0  ;;  %v780_v53 = vcombine.low %v775_v43, %v779_v44  ;;  %v802_v54 = vcombine.low %v797_v45, %v801_v46 }
 0x345   :  { %900 = vmatmul.mubr.msk.f32.vlgmr.msra.gmra.mxu1 %vm265_vm4, %v431_v55 }
 0x346   :  { %903 = vmatpush3.msra.mxu1 %v523_v56  ;;  %912 = vmatprep.mubr.msk.f32.mxu1 %vm919_vm1, %v918_v0 }
 0x347   :  { %904 = vmatprep.subr.mxu1 %v918_v0 }
 0x348   :  { %905 = vmatpush3.msra.mxu1 %v522_v57 }
 0x349   :  { %906 = vmatprep.subr.mxu1 %v918_v0 }
 0x34a   :  { %907 = vmatpush3.msra.mxu1 %v521_v58  ;;  %v731_v58 = vrot.slane %v724_v49, %v730_v51 }
 0x34b   :  { %908 = vmatprep.subr.mxu1 %v918_v0 }
 0x34c   :  { %909 = vmatpush3.msra.mxu1 %v520_v59  ;;  %v765_v59 = vrot.slane %v758_v52, %v730_v51 }
 0x34d   :  { %910 = vmatprep.subr.mxu1 %v918_v0 }
 0x34e   :  { %911 = vmatpush3.msra.mxu1 %v519_v60  ;;  %v787_v60 = vrot.slane %v780_v53, %v730_v51 }
 0x34f   :  { %653 = vmatprep.subr.mxu1 %v624_v61  ;;  %v809_v61 = vrot.slane %v802_v54, %v730_v51 }
 0x405   :  { %v514_v63 = vpop.f32.mrf.mxu1 }
 0x406   :  { %v515_v1 = vadd.f32 %v829_v62, %v514_v63 }
 0x407   :  { %v901_v2 = vpop.f32.mrf.mxu1 }
 0x408   :  { %v518_v3 = vmax.f32 %v515_v1, 0.0  ;;  %v714_v1 = vld [vmem:[%s1309_s1] sm:$0xf] }
 0x409   :  { %vm732_vm9 = vcmp.eq.s32.totalorder %v714_v1, %v731_v58  ;;  %vm766_vm10 = vcmp.eq.s32.totalorder %v714_v1, %v765_v59  ;;  %vm788_vm11 = vcmp.eq.s32.totalorder %v714_v1, %v787_v60  ;;  %vm810_vm12 = vcmp.eq.s32.totalorder %v714_v1, %v809_v61 }
 0x40a   :  { %913 = vmatmul.mubr.msk.f32.vlgmr.msra.gmra.mxu1 %vm180_vm2, %v518_v3 }
 0x40b   :  { %654 = vmatpush1.msra.mxu1 %v623_v4  ;;  %705 = vmatprep.mubr.f32.mxu1 %v918_v0  ;;  %v616_v0 = vld [vmem:[%s1304_s15 + $0x58] sm:$0xff] }
 0x40c   :  { %655 = vmatprep.subr.mxu1 %v622_v5 }
 0x40d   :  { %656 = vmatpush1.msra.mxu1 %v621_v6 }
 0x40e   :  { %657 = vmatprep.subr.mxu1 %v620_v7 }
 0x40f   :  { %658 = vmatpush1.msra.mxu1 %v619_v8 }
 0x410   :  { %659 = vmatprep.subr.mxu1 %v618_v9 }
 0x411   :  { %660 = vmatpush1.msra.mxu1 %v617_v10 }
 0x412   :  { %661 = vmatprep.subr.mxu1 %v616_v0 }
 0x413   :  { %662 = vmatpush1.msra.mxu1 %v615_v11 }
 0x414   :  { %663 = vmatprep.subr.mxu1 %v614_v12 }
 0x415   :  { %664 = vmatpush1.msra.mxu1 %v613_v13 }
 0x416   :  { %665 = vmatprep.subr.mxu1 %v612_v14 }
 0x417   :  { %666 = vmatpush1.msra.mxu1 %v611_v15 }
 0x418   :  { %667 = vmatprep.subr.mxu1 %v610_v16 }
 0x419   :  { %668 = vmatpush1.msra.mxu1 %v609_v17 }
 0x41a   :  { %669 = vmatprep.subr.mxu1 %v608_v18 }
 0x41b   :  { %670 = vmatpush1.msra.mxu1 %v607_v19 }
 0x41c   :  { %671 = vmatprep.subr.mxu1 %v606_v20 }
 0x41d   :  { %672 = vmatpush1.msra.mxu1 %v605_v21 }
 0x4ca   :  { %v600_v23 = vpop.f32.mrf.mxu1 }
 0x4cb   :  { %v601_v24 = vadd.f32 %v832_v22, %v600_v23 }
 0x4cc   :  { %v914_v25 = vpop.f32.mrf.mxu1 }
 0x4cd   :  { %v604_v26 = vmax.f32 %v601_v24, 0.0 }
 0x4cf   :  { %834 = vmatmul.mubr.msk.f32.vlgmr.msra.gmra.mxu1 %vm637_vm7, %v604_v26 }
 0x58f   :  { %v707_v50 = vpop.f32.mrf.mxu1 }
 0x590   :  { %v708_v55 = vadd.f32 %v707_v50, %v630_v47 }
 0x591   :  { %v709_v56 = vpop.f32.mrf.mxu1 }
 0x592   :  { %v710_v57 = vadd.f32 %v709_v56, %v634_v48  ;;  %v712_v62 = vmax.f32 %v708_v55, 0.0 }
 0x594   :  { %v713_v63 = vmax.f32 %v710_v57, 0.0 }
 0x596   :  { %v735_v2 = vcombine.low %v712_v62, %v713_v63 }
 0x598   :  { %v742_v3 = vrot.slane %v735_v2, %v730_v51 }
 0x59a   :  { %v744_v4 = vsel %vm732_vm9, %v742_v3, 0.0  ;;  %v767_v5 = vsel %vm766_vm10, %v742_v3, 0.0  ;;  %v789_v6 = vsel %vm788_vm11, %v742_v3, 0.0  ;;  %v811_v7 = vsel %vm810_vm12, %v742_v3, 0.0 }
 0x59b   :  { %747 = vst.msk [vmem:[%s1310_s17] sm:$0xf] %vm746_vm13, %v744_v4  ;;  %836 = vst.msk [vmem:[%s1310_s17 + $0x4] sm:$0xf] %vm746_vm13, %v767_v5 }
 0x59c   :  { %838 = vst.msk [vmem:[%s1310_s17 + $0x8] sm:$0xf] %vm746_vm13, %v789_v6  ;;  %840 = vst.msk [vmem:[%s1310_s17 + $0xc] sm:$0xf] %vm746_vm13, %v811_v7 }

// kernel: ae_forward.8
= control target key start
LH: loop header
LB: loop body
LE: loop exit
PB: predicated region body
PF: predicated region fallthrough
CT: control target
= control target key end

     0   :  { %v419_v3 = vmov 0   ;;  %vm292_vm4 = vcmask 258048   ;;  %s828_s0 = inlined_call_operand.vmem [shape: f32[256,288], index: 0, kind: input, shape index: {}]   ;;  %s829_s1 = inlined_call_operand.vmem [shape: f32[5,256], index: 1, kind: input, shape index: {}]   ;;  %s830_s2 = inlined_call_operand.vmem [shape: f32[5,1], index: 2, kind: input, shape index: {}]   ;;  %s831_s4 = inlined_call_operand.vmem [shape: s32[4,1,288], index: 4, kind: input, shape index: {}]   ;;  %s832_s3 = inlined_call_operand.vmem [shape: s32[5,288], index: 3, kind: input, shape index: {}]   ;;  %s833_s5 = inlined_call_operand.vmem [shape: f32[4,5,288], index: 5, kind: output, shape index: {}]  }
   0x1   :  { %v68_v0 = vld [vmem:[%s828_s0 + $0x170] sm:$0xff]  ;;  %v67_v1 = vld [vmem:[%s828_s0 + $0x168] sm:$0xff]  ;;  %v65_v2 = vld [vmem:[%s828_s0 + $0x158] sm:$0xff]  ;;  %418 = vset.pattern.permute.xlu0 %v419_v3 }
   0x2   :  { %124 = vmatprep.subr.mxu0 %v68_v0  ;;  %v64_v4 = vld [vmem:[%s828_s0 + $0x150] sm:$0xff]  ;;  %v62_v5 = vld [vmem:[%s828_s0 + $0x140] sm:$0xff]  ;;  %v61_v6 = vld [vmem:[%s828_s0 + $0x138] sm:$0xff] }
   0x3   :  { %125 = vmatpush1.msra.mxu0 %v67_v1  ;;  %v59_v7 = vld [vmem:[%s828_s0 + $0x128] sm:$0xff]  ;;  %v58_v8 = vld [vmem:[%s828_s0 + $0x120] sm:$0xff]  ;;  %v56_v9 = vld [vmem:[%s828_s0 + $0x110] sm:$0xff] }
   0x4   :  { %126 = vmatprep.subr.mxu0 %v65_v2  ;;  %v55_v10 = vld [vmem:[%s828_s0 + $0x108] sm:$0xff]  ;;  %v53_v11 = vld [vmem:[%s828_s0 + $0xf8] sm:$0xff]  ;;  %v52_v12 = vld [vmem:[%s828_s0 + $0xf0] sm:$0xff] }
   0x5   :  { %127 = vmatpush1.msra.mxu0 %v64_v4  ;;  %v117_v13 = vld [vmem:[%s828_s0 + $0x2f8] sm:$0xff]  ;;  %v50_v14 = vld [vmem:[%s828_s0 + $0xe0] sm:$0xff]  ;;  %v47_v19 = vld [vmem:[%s828_s0 + $0xc8] sm:$0xff] }
   0x6   :  { %128 = vmatprep.subr.mxu0 %v62_v5  ;;  %382 = vmatprep.subr.mxu1 %v117_v13  ;;  %v69_v15 = vld [vmem:[%s828_s0 + $0x178] sm:$0xff]  ;;  %v114_v17 = vld [vmem:[%s828_s0 + $0x2e0] sm:$0xff]  ;;  %v111_v20 = vld [vmem:[%s828_s0 + $0x2c8] sm:$0xff] }
   0x7   :  { %129 = vmatpush1.msra.mxu0 %v61_v6  ;;  %v49_v16 = vld [vmem:[%s828_s0 + $0xd8] sm:$0xff]  ;;  %383 = vmatpush3.msra.mxu1 %v69_v15  ;;  %v66_v18 = vld [vmem:[%s828_s0 + $0x160] sm:$0xff]  ;;  %v63_v22 = vld [vmem:[%s828_s0 + $0x148] sm:$0xff] }
   0x8   :  { %130 = vmatprep.subr.mxu0 %v59_v7  ;;  %384 = vmatprep.subr.mxu1 %v114_v17  ;;  %v46_v21 = vld [vmem:[%s828_s0 + $0xc0] sm:$0xff]  ;;  %v108_v23 = vld [vmem:[%s828_s0 + $0x2b0] sm:$0xff]  ;;  %v43_v26 = vld [vmem:[%s828_s0 + $0xa8] sm:$0xff] }
   0x9   :  { %131 = vmatpush1.msra.mxu0 %v58_v8  ;;  %385 = vmatpush3.msra.mxu1 %v66_v18  ;;  %v44_v24 = vld [vmem:[%s828_s0 + $0xb0] sm:$0xff]  ;;  %v105_v27 = vld [vmem:[%s828_s0 + $0x298] sm:$0xff]  ;;  %v102_v31 = vld [vmem:[%s828_s0 + $0x280] sm:$0xff] }
   0xa   :  { %132 = vmatprep.subr.mxu0 %v56_v9  ;;  %386 = vmatprep.subr.mxu1 %v111_v20  ;;  %v60_v25 = vld [vmem:[%s828_s0 + $0x130] sm:$0xff]  ;;  %v41_v28 = vld [vmem:[%s828_s0 + $0x98] sm:$0xff]  ;;  %v38_v32 = vld [vmem:[%s828_s0 + $0x80] sm:$0xff] }
   0xb   :  { %133 = vmatpush1.msra.mxu0 %v55_v10  ;;  %387 = vmatpush3.msra.mxu1 %v63_v22  ;;  %v57_v29 = vld [vmem:[%s828_s0 + $0x118] sm:$0xff]  ;;  %v40_v30 = vld [vmem:[%s828_s0 + $0x90] sm:$0xff]  ;;  %v54_v33 = vld [vmem:[%s828_s0 + $0x100] sm:$0xff] }
   0xc   :  { %134 = vmatprep.subr.mxu0 %v53_v11  ;;  %388 = vmatprep.subr.mxu1 %v108_v23  ;;  %v37_v34 = vld [vmem:[%s828_s0 + $0x78] sm:$0xff]  ;;  %v99_v35 = vld [vmem:[%s828_s0 + $0x268] sm:$0xff]  ;;  %v34_v38 = vld [vmem:[%s828_s0 + $0x60] sm:$0xff] }
   0xd   :  { %135 = vmatpush1.msra.mxu0 %v52_v12  ;;  %389 = vmatpush3.msra.mxu1 %v60_v25  ;;  %v35_v36 = vld [vmem:[%s828_s0 + $0x68] sm:$0xff]  ;;  %v96_v39 = vld [vmem:[%s828_s0 + $0x250] sm:$0xff]  ;;  %v93_v43 = vld [vmem:[%s828_s0 + $0x238] sm:$0xff] }
   0xe   :  { %136 = vmatprep.subr.mxu0 %v50_v14  ;;  %390 = vmatprep.subr.mxu1 %v105_v27  ;;  %v51_v37 = vld [vmem:[%s828_s0 + $0xe8] sm:$0xff]  ;;  %v32_v40 = vld [vmem:[%s828_s0 + $0x50] sm:$0xff]  ;;  %v29_v44 = vld [vmem:[%s828_s0 + $0x38] sm:$0xff] }
   0xf   :  { %137 = vmatpush1.msra.mxu0 %v49_v16  ;;  %391 = vmatpush3.msra.mxu1 %v57_v29  ;;  %v48_v41 = vld [vmem:[%s828_s0 + $0xd0] sm:$0xff]  ;;  %v31_v42 = vld [vmem:[%s828_s0 + $0x48] sm:$0xff]  ;;  %v45_v45 = vld [vmem:[%s828_s0 + $0xb8] sm:$0xff] }
  0x10   :  { %138 = vmatprep.subr.mxu0 %v47_v19  ;;  %392 = vmatprep.subr.mxu1 %v102_v31  ;;  %v28_v46 = vld [vmem:[%s828_s0 + $0x30] sm:$0xff]  ;;  %v90_v47 = vld [vmem:[%s828_s0 + $0x220] sm:$0xff]  ;;  %v25_v50 = vld [vmem:[%s828_s0 + $0x18] sm:$0xff] }
  0x11   :  { %139 = vmatpush1.msra.mxu0 %v46_v21  ;;  %393 = vmatpush3.msra.mxu1 %v54_v33  ;;  %v26_v48 = vld [vmem:[%s828_s0 + $0x20] sm:$0xff]  ;;  %v87_v51 = vld [vmem:[%s828_s0 + $0x208] sm:$0xff]  ;;  %v84_v55 = vld [vmem:[%s828_s0 + $0x1f0] sm:$0xff] }
  0x12   :  { %140 = vmatprep.subr.mxu0 %v44_v24  ;;  %394 = vmatprep.subr.mxu1 %v99_v35  ;;  %v42_v49 = vld [vmem:[%s828_s0 + $0xa0] sm:$0xff]  ;;  %v23_v52 = vld [vmem:[%s828_s0 + $0x8] sm:$0xff]  ;;  %v116_v56 = vld [vmem:[%s828_s0 + $0x2f0] sm:$0xff] }
  0x13   :  { %141 = vmatpush1.msra.mxu0 %v43_v26  ;;  %395 = vmatpush3.msra.mxu1 %v51_v37  ;;  %v39_v53 = vld [vmem:[%s828_s0 + $0x88] sm:$0xff]  ;;  %v22_v54 = vld [vmem:[%s828_s0] sm:$0xff]  ;;  %v36_v57 = vld [vmem:[%s828_s0 + $0x70] sm:$0xff] }
  0x14   :  { %142 = vmatprep.subr.mxu0 %v41_v28  ;;  %396 = vmatprep.subr.mxu1 %v96_v39  ;;  %v115_v58 = vld [vmem:[%s828_s0 + $0x2e8] sm:$0xff]  ;;  %v81_v59 = vld [vmem:[%s828_s0 + $0x1d8] sm:$0xff]  ;;  %v112_v62 = vld [vmem:[%s828_s0 + $0x2d0] sm:$0xff] }
  0x15   :  { %143 = vmatpush1.msra.mxu0 %v40_v30  ;;  %397 = vmatpush3.msra.mxu1 %v48_v41  ;;  %v113_v60 = vld [vmem:[%s828_s0 + $0x2d8] sm:$0xff]  ;;  %v78_v63 = vld [vmem:[%s828_s0 + $0x1c0] sm:$0xff]  ;;  %v75_v3 = vld [vmem:[%s828_s0 + $0x1a8] sm:$0xff] }
  0x16   :  { %144 = vmatprep.subr.mxu0 %v38_v32  ;;  %398 = vmatprep.subr.mxu1 %v93_v43  ;;  %v33_v61 = vld [vmem:[%s828_s0 + $0x58] sm:$0xff]  ;;  %v110_v0 = vld [vmem:[%s828_s0 + $0x2c0] sm:$0xff]  ;;  %v107_v4 = vld [vmem:[%s828_s0 + $0x2a8] sm:$0xff] }
  0x17   :  { %145 = vmatpush1.msra.mxu0 %v37_v34  ;;  %399 = vmatpush3.msra.mxu1 %v45_v45  ;;  %v30_v1 = vld [vmem:[%s828_s0 + $0x40] sm:$0xff]  ;;  %v109_v2 = vld [vmem:[%s828_s0 + $0x2b8] sm:$0xff]  ;;  %v27_v5 = vld [vmem:[%s828_s0 + $0x28] sm:$0xff] }
  0x18   :  { %146 = vmatprep.subr.mxu0 %v35_v36  ;;  %400 = vmatprep.subr.mxu1 %v90_v47  ;;  %v106_v6 = vld [vmem:[%s828_s0 + $0x2a0] sm:$0xff]  ;;  %v72_v7 = vld [vmem:[%s828_s0 + $0x190] sm:$0xff]  ;;  %v103_v10 = vld [vmem:[%s828_s0 + $0x288] sm:$0xff]  ;;  %v272_v36 = vlaneseq }
  0x19   :  { %147 = vmatpush1.msra.mxu0 %v34_v38  ;;  %401 = vmatpush3.msra.mxu1 %v42_v49  ;;  %v104_v8 = vld [vmem:[%s828_s0 + $0x290] sm:$0xff]  ;;  %v21_v11 = vld [vmem:[%s829_s1 + $0x8] sm:$0x1f]  ;;  %v101_v12 = vld [vmem:[%s828_s0 + $0x278] sm:$0xff] }
  0x1a   :  { %148 = vmatprep.subr.mxu0 %v32_v40  ;;  %402 = vmatprep.subr.mxu1 %v87_v51  ;;  %v24_v9 = vld [vmem:[%s828_s0 + $0x10] sm:$0xff]  ;;  %v20_v13 = vld [vmem:[%s829_s1] sm:$0x1f]  ;;  %v97_v17 = vld [vmem:[%s828_s0 + $0x258] sm:$0xff]  ;;  %v273_v37 = vshrl.u32 %v272_v36, 7 }
  0x1b   :  { %149 = vmatpush1.msra.mxu0 %v31_v42  ;;  %403 = vmatpush3.msra.mxu1 %v39_v53  ;;  %v100_v14 = vld [vmem:[%s828_s0 + $0x270] sm:$0xff]  ;;  %v98_v15 = vld [vmem:[%s828_s0 + $0x260] sm:$0xff]  ;;  %v95_v18 = vld [vmem:[%s828_s0 + $0x248] sm:$0xff] }
  0x1c   :  { %150 = vmatprep.subr.mxu0 %v29_v44  ;;  %404 = vmatprep.subr.mxu1 %v84_v55  ;;  %v118_v16 = vld [vmem:[%s830_s2] sm:$0x1f]  ;;  %v92_v20 = vld [vmem:[%s828_s0 + $0x230] sm:$0xff]  ;;  %v91_v21 = vld [vmem:[%s828_s0 + $0x228] sm:$0xff]  ;;  %v282_v39 = vsub.s32 2, %v273_v37 }
  0x1d   :  { %151 = vmatpush1.msra.mxu0 %v28_v46  ;;  %405 = vmatpush3.msra.mxu1 %v36_v57  ;;  %v94_v19 = vld [vmem:[%s828_s0 + $0x240] sm:$0xff]  ;;  %v89_v22 = vld [vmem:[%s828_s0 + $0x218] sm:$0xff]  ;;  %v88_v23 = vld [vmem:[%s828_s0 + $0x210] sm:$0xff] }
  0x1e   :  { %152 = vmatprep.subr.mxu0 %v26_v48  ;;  %406 = vmatprep.subr.mxu1 %v81_v59  ;;  %v86_v24 = vld [vmem:[%s828_s0 + $0x200] sm:$0xff]  ;;  %v85_v25 = vld [vmem:[%s828_s0 + $0x1f8] sm:$0xff]  ;;  %v83_v26 = vld [vmem:[%s828_s0 + $0x1e8] sm:$0xff]  ;;  %v278_v59 = vsub.s32 1, %v273_v37 }
  0x1f   :  { %153 = vmatpush1.msra.mxu0 %v25_v50  ;;  %407 = vmatpush3.msra.mxu1 %v33_v61  ;;  %v82_v27 = vld [vmem:[%s828_s0 + $0x1e0] sm:$0xff]  ;;  %v80_v28 = vld [vmem:[%s828_s0 + $0x1d0] sm:$0xff]  ;;  %v79_v29 = vld [vmem:[%s828_s0 + $0x1c8] sm:$0xff] }
  0x20   :  { %154 = vmatprep.subr.mxu0 %v23_v52  ;;  %408 = vmatprep.subr.mxu1 %v78_v63  ;;  %v77_v30 = vld [vmem:[%s828_s0 + $0x1b8] sm:$0xff]  ;;  %v76_v31 = vld [vmem:[%s828_s0 + $0x1b0] sm:$0xff]  ;;  %v74_v32 = vld [vmem:[%s828_s0 + $0x1a0] sm:$0xff] }
  0x21   :  { %155 = vmatpush1.msra.mxu0 %v22_v54  ;;  %409 = vmatpush3.msra.mxu1 %v30_v1  ;;  %v73_v33 = vld [vmem:[%s828_s0 + $0x198] sm:$0xff]  ;;  %v71_v34 = vld [vmem:[%s828_s0 + $0x188] sm:$0xff]  ;;  %v70_v35 = vld [vmem:[%s828_s0 + $0x180] sm:$0xff] }
  0x22   :  { %156 = vmatprep.subr.mxu0 %v116_v56  ;;  %410 = vmatprep.subr.mxu1 %v75_v3  ;;  %v271_v38 = vld [vmem:[%s831_s4] sm:$0x7]  ;;  %v370_v40 = vld [vmem:[%s831_s4 + $0x3] sm:$0x7]  ;;  %v374_v41 = vld [vmem:[%s831_s4 + $0x6] sm:$0x7] }
  0x23   :  { %157 = vmatpush2.msra.mxu0 %v115_v58  ;;  %411 = vmatpush3.msra.mxu1 %v27_v5  ;;  %v378_v42 = vld [vmem:[%s831_s4 + $0x9] sm:$0x7]  ;;  %v283_v45 = vrot.slane %v271_v38, %v282_v39  ;;  %v307_v46 = vrot.slane %v370_v40, %v282_v39  ;;  %v331_v47 = vrot.slane %v374_v41, %v282_v39  ;;  %v270_v51 = vld [vmem:[%s832_s3 + $0x10] sm:$0x1f]  ;;  %v274_v58 = vsub.s32 0, %v273_v37 }
  0x24   :  { %158 = vmatprep.subr.mxu0 %v113_v60  ;;  %412 = vmatprep.subr.mxu1 %v72_v7  ;;  %v355_v48 = vrot.slane %v378_v42, %v282_v39  ;;  %v303_v3 = vrot.slane %v370_v40, %v278_v59  ;;  %v351_v5 = vrot.slane %v378_v42, %v278_v59  ;;  %v269_v7 = vld [vmem:[%s832_s3 + $0x8] sm:$0x1f] }
  0x25   :  { %159 = vmatpush2.msra.mxu0 %v112_v62  ;;  %413 = vmatpush3.msra.mxu1 %v24_v9  ;;  %vm286_vm0 = vcmp.eq.s32.totalorder %v270_v51, %v283_v45  ;;  %vm310_vm1 = vcmp.eq.s32.totalorder %v270_v51, %v307_v46  ;;  %vm334_vm2 = vcmp.eq.s32.totalorder %v270_v51, %v331_v47 }
  0x26   :  { %160 = vmatprep.subr.mxu0 %v110_v0  ;;  %259 = vmatprep.mubr.f32.mxu1 %v21_v11  ;;  %vm358_vm3 = vcmp.eq.s32.totalorder %v270_v51, %v355_v48  ;;  %v275_v60 = vrot.slane %v271_v38, %v274_v58  ;;  %v299_v61 = vrot.slane %v370_v40, %v274_v58  ;;  %v268_v0 = vld [vmem:[%s832_s3] sm:$0x1f] }
  0x27   :  { %161 = vmatpush2.msra.mxu0 %v109_v2  ;;  %260 = vmatmul.mubr.f32.vlgmr.msra.gmra.mxu1 %v20_v13  ;;  %v323_v62 = vrot.slane %v374_v41, %v274_v58  ;;  %v347_v63 = vrot.slane %v378_v42, %v274_v58  ;;  %v279_v2 = vrot.slane %v271_v38, %v278_v59 }
  0x28   :  { %162 = vmatprep.subr.mxu0 %v107_v4  ;;  %188 = vmatprep.mubr.f32.mxu0 %v21_v11  ;;  %v327_v4 = vrot.slane %v374_v41, %v278_v59  ;;  %vm284_vm5 = vcmp.eq.s32.totalorder %v268_v0, %v275_v60  ;;  %vm308_vm6 = vcmp.eq.s32.totalorder %v268_v0, %v299_v61 }
  0x29   :  { %163 = vmatpush2.msra.mxu0 %v106_v6  ;;  %121 = vperm.xlu0 %418, %v118_v16   ;;  %vm332_vm7 = vcmp.eq.s32.totalorder %v268_v0, %v323_v62  ;;  %vm356_vm8 = vcmp.eq.s32.totalorder %v268_v0, %v347_v63  ;;  %vm780_vm9 = vcmp.eq.s32.totalorder %v269_v7, %v279_v2 }
  0x2a   :  { %164 = vmatprep.subr.mxu0 %v104_v8  ;;  %vm784_vm10 = vcmp.eq.s32.totalorder %v269_v7, %v303_v3  ;;  %vm788_vm11 = vcmp.eq.s32.totalorder %v269_v7, %v327_v4  ;;  %vm792_vm12 = vcmp.eq.s32.totalorder %v269_v7, %v351_v5 }
  0x2b   :  { %165 = vmatpush2.msra.mxu0 %v103_v10 }
  0x2c   :  { %166 = vmatprep.subr.mxu0 %v101_v12 }
  0x2d   :  { %167 = vmatpush2.msra.mxu0 %v100_v14 }
  0x2e   :  { %168 = vmatprep.subr.mxu0 %v98_v15 }
  0x2f   :  { %169 = vmatpush2.msra.mxu0 %v97_v17 }
  0x30   :  { %170 = vmatprep.subr.mxu0 %v95_v18 }
  0x31   :  { %171 = vmatpush2.msra.mxu0 %v94_v19 }
  0x32   :  { %172 = vmatprep.subr.mxu0 %v92_v20 }
  0x33   :  { %173 = vmatpush2.msra.mxu0 %v91_v21 }
  0x34   :  { %174 = vmatprep.subr.mxu0 %v89_v22 }
  0x35   :  { %175 = vmatpush2.msra.mxu0 %v88_v23 }
  0x36   :  { %176 = vmatprep.subr.mxu0 %v86_v24 }
  0x37   :  { %177 = vmatpush2.msra.mxu0 %v85_v25 }
  0x38   :  { %178 = vmatprep.subr.mxu0 %v83_v26 }
  0x39   :  { %179 = vmatpush2.msra.mxu0 %v82_v27 }
  0x3a   :  { %180 = vmatprep.subr.mxu0 %v80_v28 }
  0x3b   :  { %181 = vmatpush2.msra.mxu0 %v79_v29 }
  0x3c   :  { %182 = vmatprep.subr.mxu0 %v77_v30 }
  0x3d   :  { %183 = vmatpush2.msra.mxu0 %v76_v31 }
  0x3e   :  { %184 = vmatprep.subr.mxu0 %v74_v32 }
  0x3f   :  { %185 = vmatpush2.msra.mxu0 %v73_v33 }
  0x40   :  { %186 = vmatprep.subr.mxu0 %v71_v34 }
  0x41   :  { %187 = vmatpush2.msra.mxu0 %v70_v35 }
  0x42   :  { %189 = vmatmul.mubr.f32.vlgmr.msra.gmra.mxu0 %v20_v13 }
  0xa4   :  { %v122_v49 = vpop.permute.xlu0 %121 }
  0xe7   :  { %v414_v43 = vpop.f32.mrf.mxu1 }
  0xe9   :  { %v415_v44 = vpop.f32.mrf.mxu1 }
  0xea   :  { %v416_v50 = vadd.f32 %v415_v44, %v414_v43 }
  0xec   :  { %v262_v52 = vadd.f32 %v416_v50, %v122_v49 }
  0xee   :  { %v267_v53 = vmax.f32 %v262_v52, 0.0 }
  0xf0   :  { %v289_v54 = vsel %vm286_vm0, %v267_v53, 0.0  ;;  %v313_v55 = vsel %vm310_vm1, %v267_v53, 0.0  ;;  %v337_v56 = vsel %vm334_vm2, %v267_v53, 0.0  ;;  %v361_v57 = vsel %vm358_vm3, %v267_v53, 0.0 }
  0xf1   :  { %293 = vst.msk [vmem:[%s833_s5 + $0x10] sm:$0x1f] %vm292_vm4, %v289_v54  ;;  %373 = vst.msk [vmem:[%s833_s5 + $0x28] sm:$0x1f] %vm292_vm4, %v313_v55 }
  0xf2   :  { %377 = vst.msk [vmem:[%s833_s5 + $0x40] sm:$0x1f] %vm292_vm4, %v337_v56  ;;  %381 = vst.msk [vmem:[%s833_s5 + $0x58] sm:$0x1f] %vm292_vm4, %v361_v57 }
 0x102   :  { %v190_v1 = vpop.f32.mrf.mxu0 }
 0x103   :  { %v191_v6 = vadd.f32 %v190_v1, %v122_v49 }
 0x104   :  { %v192_v8 = vpop.f32.mrf.mxu0 }
 0x105   :  { %v265_v9 = vmax.f32 %v191_v6, 0.0  ;;  %v193_v10 = vadd.f32 %v192_v8, %v122_v49 }
 0x107   :  { %v287_v15 = vsel %vm284_vm5, %v265_v9, 0.0  ;;  %v311_v16 = vsel %vm308_vm6, %v265_v9, 0.0  ;;  %v335_v17 = vsel %vm332_vm7, %v265_v9, 0.0  ;;  %v359_v18 = vsel %vm356_vm8, %v265_v9, 0.0 }
 0x108   :  { %290 = vst [vmem:[%s833_s5] sm:$0x1f] %v287_v15  ;;  %371 = vst [vmem:[%s833_s5 + $0x18] sm:$0x1f] %v311_v16  ;;  %v266_v19 = vmax.f32 %v193_v10, 0.0 }
 0x109   :  { %375 = vst [vmem:[%s833_s5 + $0x30] sm:$0x1f] %v335_v17  ;;  %379 = vst [vmem:[%s833_s5 + $0x48] sm:$0x1f] %v359_v18 }
 0x10a   :  { %v288_v20 = vsel %vm780_vm9, %v266_v19, 0.0  ;;  %v312_v21 = vsel %vm784_vm10, %v266_v19, 0.0  ;;  %v336_v22 = vsel %vm788_vm11, %v266_v19, 0.0  ;;  %v360_v23 = vsel %vm792_vm12, %v266_v19, 0.0 }
 0x10b   :  { %291 = vst [vmem:[%s833_s5 + $0x8] sm:$0x1f] %v288_v20  ;;  %372 = vst [vmem:[%s833_s5 + $0x20] sm:$0x1f] %v312_v21 }
 0x10c   :  { %376 = vst [vmem:[%s833_s5 + $0x38] sm:$0x1f] %v336_v22  ;;  %380 = vst [vmem:[%s833_s5 + $0x50] sm:$0x1f] %v360_v23 }

// kernel: ae_forward.9
= control target key start
LH: loop header
LB: loop body
LE: loop exit
PB: predicated region body
PF: predicated region fallthrough
CT: control target
= control target key end

     0   :  { %v901_v3 = vmov 0.0   ;;  %vm903_vm0 = vmmov 0   ;;  %s1593_s0 = inlined_call_operand.vmem [shape: f32[128,1568], index: 0, kind: input, shape index: {}]   ;;  %s1594_s2 = inlined_call_operand.<no memory space> [shape: f32[1,1], index: 2, kind: input, shape index: {}]   ;;  %s1595_s1 = inlined_call_operand.vmem [shape: f32[1,128], index: 1, kind: input, shape index: {}]   ;;  %s1596_s3 = inlined_call_operand.vmem [shape: f32[1,1568], index: 3, kind: output, shape index: {}]  }
   0x1   :  { %v213_v0 = vld [vmem:[%s1593_s0 + $0x620] sm:$0xff]  ;;  %v215_v1 = vld [vmem:[%s1593_s0 + $0x630] sm:$0xff]  ;;  %v212_v2 = vld [vmem:[%s1593_s0 + $0x618] sm:$0xff]  ;;  %299 = vmatprep.mubr.f32.mxu0 %v901_v3  ;;  %370 = vmatprep.mubr.f32.mxu1 %v901_v3  ;;  %v8_v4 = vstv %s1594_s2 }
   0x2   :  { %235 = vmatprep.subr.mxu0 %v213_v0  ;;  %306 = vmatprep.subr.mxu1 %v215_v1  ;;  %v214_v5 = vld [vmem:[%s1593_s0 + $0x628] sm:$0xff]  ;;  %v200_v6 = vld [vmem:[%s1593_s0 + $0x5b8] sm:$0xff]  ;;  %9 = vst [vmem:[#allocation2] sm:$0x1] %v8_v4  ;;  %v199_v8 = vld [vmem:[%s1593_s0 + $0x5b0] sm:$0xff] }
   0x3   :  { %v202_v7 = vld [vmem:[%s1593_s0 + $0x5c8] sm:$0xff]  ;;  %236 = vmatpush1.msra.mxu0 %v212_v2  ;;  %307 = vmatpush1.msra.mxu1 %v214_v5  ;;  %v201_v9 = vld [vmem:[%s1593_s0 + $0x5c0] sm:$0xff]  ;;  %v187_v10 = vld [vmem:[%s1593_s0 + $0x550] sm:$0xff] }
   0x4   :  { %237 = vmatprep.subr.mxu0 %v200_v6  ;;  %308 = vmatprep.subr.mxu1 %v202_v7  ;;  %v189_v11 = vld [vmem:[%s1593_s0 + $0x560] sm:$0xff]  ;;  %v186_v12 = vld [vmem:[%s1593_s0 + $0x548] sm:$0xff]  ;;  %v188_v13 = vld [vmem:[%s1593_s0 + $0x558] sm:$0xff] }
   0x5   :  { %238 = vmatpush1.msra.mxu0 %v199_v8  ;;  %309 = vmatpush1.msra.mxu1 %v201_v9  ;;  %v174_v14 = vld [vmem:[%s1593_s0 + $0x4e8] sm:$0xff]  ;;  %v176_v15 = vld [vmem:[%s1593_s0 + $0x4f8] sm:$0xff]  ;;  %v173_v16 = vld [vmem:[%s1593_s0 + $0x4e0] sm:$0xff] }
   0x6   :  { %239 = vmatprep.subr.mxu0 %v187_v10  ;;  %310 = vmatprep.subr.mxu1 %v189_v11  ;;  %v175_v17 = vld [vmem:[%s1593_s0 + $0x4f0] sm:$0xff]  ;;  %v161_v18 = vld [vmem:[%s1593_s0 + $0x480] sm:$0xff]  ;;  %v160_v20 = vld [vmem:[%s1593_s0 + $0x478] sm:$0xff] }
   0x7   :  { %240 = vmatpush1.msra.mxu0 %v186_v12  ;;  %311 = vmatpush1.msra.mxu1 %v188_v13  ;;  %v163_v19 = vld [vmem:[%s1593_s0 + $0x490] sm:$0xff]  ;;  %v162_v21 = vld [vmem:[%s1593_s0 + $0x488] sm:$0xff]  ;;  %v148_v22 = vld [vmem:[%s1593_s0 + $0x418] sm:$0xff] }
   0x8   :  { %241 = vmatprep.subr.mxu0 %v174_v14  ;;  %312 = vmatprep.subr.mxu1 %v176_v15  ;;  %v150_v23 = vld [vmem:[%s1593_s0 + $0x428] sm:$0xff]  ;;  %v147_v24 = vld [vmem:[%s1593_s0 + $0x410] sm:$0xff]  ;;  %v149_v25 = vld [vmem:[%s1593_s0 + $0x420] sm:$0xff] }
   0x9   :  { %242 = vmatpush1.msra.mxu0 %v173_v16  ;;  %313 = vmatpush1.msra.mxu1 %v175_v17  ;;  %v135_v26 = vld [vmem:[%s1593_s0 + $0x3b0] sm:$0xff]  ;;  %v137_v27 = vld [vmem:[%s1593_s0 + $0x3c0] sm:$0xff]  ;;  %v134_v28 = vld [vmem:[%s1593_s0 + $0x3a8] sm:$0xff] }
   0xa   :  { %243 = vmatprep.subr.mxu0 %v161_v18  ;;  %314 = vmatprep.subr.mxu1 %v163_v19  ;;  %v136_v29 = vld [vmem:[%s1593_s0 + $0x3b8] sm:$0xff]  ;;  %v122_v30 = vld [vmem:[%s1593_s0 + $0x348] sm:$0xff]  ;;  %v121_v32 = vld [vmem:[%s1593_s0 + $0x340] sm:$0xff] }
   0xb   :  { %244 = vmatpush1.msra.mxu0 %v160_v20  ;;  %315 = vmatpush1.msra.mxu1 %v162_v21  ;;  %v124_v31 = vld [vmem:[%s1593_s0 + $0x358] sm:$0xff]  ;;  %v123_v33 = vld [vmem:[%s1593_s0 + $0x350] sm:$0xff]  ;;  %v109_v34 = vld [vmem:[%s1593_s0 + $0x2e0] sm:$0xff] }
   0xc   :  { %245 = vmatprep.subr.mxu0 %v148_v22  ;;  %316 = vmatprep.subr.mxu1 %v150_v23  ;;  %v111_v35 = vld [vmem:[%s1593_s0 + $0x2f0] sm:$0xff]  ;;  %v108_v36 = vld [vmem:[%s1593_s0 + $0x2d8] sm:$0xff]  ;;  %v110_v37 = vld [vmem:[%s1593_s0 + $0x2e8] sm:$0xff] }
   0xd   :  { %246 = vmatpush1.msra.mxu0 %v147_v24  ;;  %317 = vmatpush1.msra.mxu1 %v149_v25  ;;  %v96_v38 = vld [vmem:[%s1593_s0 + $0x278] sm:$0xff]  ;;  %v98_v39 = vld [vmem:[%s1593_s0 + $0x288] sm:$0xff]  ;;  %v95_v40 = vld [vmem:[%s1593_s0 + $0x270] sm:$0xff] }
   0xe   :  { %247 = vmatprep.subr.mxu0 %v135_v26  ;;  %318 = vmatprep.subr.mxu1 %v137_v27  ;;  %v97_v41 = vld [vmem:[%s1593_s0 + $0x280] sm:$0xff]  ;;  %v83_v42 = vld [vmem:[%s1593_s0 + $0x210] sm:$0xff]  ;;  %v82_v44 = vld [vmem:[%s1593_s0 + $0x208] sm:$0xff] }
   0xf   :  { %248 = vmatpush1.msra.mxu0 %v134_v28  ;;  %319 = vmatpush1.msra.mxu1 %v136_v29  ;;  %v85_v43 = vld [vmem:[%s1593_s0 + $0x220] sm:$0xff]  ;;  %v84_v45 = vld [vmem:[%s1593_s0 + $0x218] sm:$0xff]  ;;  %v70_v46 = vld [vmem:[%s1593_s0 + $0x1a8] sm:$0xff] }
  0x10   :  { %249 = vmatprep.subr.mxu0 %v122_v30  ;;  %320 = vmatprep.subr.mxu1 %v124_v31  ;;  %v72_v47 = vld [vmem:[%s1593_s0 + $0x1b8] sm:$0xff]  ;;  %v69_v48 = vld [vmem:[%s1593_s0 + $0x1a0] sm:$0xff]  ;;  %v71_v49 = vld [vmem:[%s1593_s0 + $0x1b0] sm:$0xff] }
  0x11   :  { %250 = vmatpush1.msra.mxu0 %v121_v32  ;;  %321 = vmatpush1.msra.mxu1 %v123_v33  ;;  %v57_v50 = vld [vmem:[%s1593_s0 + $0x140] sm:$0xff]  ;;  %v59_v51 = vld [vmem:[%s1593_s0 + $0x150] sm:$0xff]  ;;  %v56_v52 = vld [vmem:[%s1593_s0 + $0x138] sm:$0xff] }
  0x12   :  { %251 = vmatprep.subr.mxu0 %v109_v34  ;;  %322 = vmatprep.subr.mxu1 %v111_v35  ;;  %v58_v53 = vld [vmem:[%s1593_s0 + $0x148] sm:$0xff]  ;;  %v44_v54 = vld [vmem:[%s1593_s0 + $0xd8] sm:$0xff]  ;;  %v43_v56 = vld [vmem:[%s1593_s0 + $0xd0] sm:$0xff] }
  0x13   :  { %252 = vmatpush1.msra.mxu0 %v108_v36  ;;  %323 = vmatpush1.msra.mxu1 %v110_v37  ;;  %v46_v55 = vld [vmem:[%s1593_s0 + $0xe8] sm:$0xff]  ;;  %v45_v57 = vld [vmem:[%s1593_s0 + $0xe0] sm:$0xff]  ;;  %v31_v58 = vld [vmem:[%s1593_s0 + $0x70] sm:$0xff] }
  0x14   :  { %253 = vmatprep.subr.mxu0 %v96_v38  ;;  %324 = vmatprep.subr.mxu1 %v98_v39  ;;  %v33_v59 = vld [vmem:[%s1593_s0 + $0x80] sm:$0xff]  ;;  %v30_v60 = vld [vmem:[%s1593_s0 + $0x68] sm:$0xff]  ;;  %v32_v61 = vld [vmem:[%s1593_s0 + $0x78] sm:$0xff] }
  0x15   :  { %254 = vmatpush1.msra.mxu0 %v95_v40  ;;  %325 = vmatpush1.msra.mxu1 %v97_v41  ;;  %v18_v62 = vld [vmem:[%s1593_s0 + $0x8] sm:$0xff]  ;;  %v20_v63 = vld [vmem:[%s1593_s0 + $0x18] sm:$0xff]  ;;  %v17_v0 = vld [vmem:[%s1593_s0] sm:$0xff] }
  0x16   :  { %255 = vmatprep.subr.mxu0 %v83_v42  ;;  %326 = vmatprep.subr.mxu1 %v85_v43  ;;  %v19_v1 = vld [vmem:[%s1593_s0 + $0x10] sm:$0xff]  ;;  %v1125_v2 = vld [vmem:[%s1595_s1] sm:$0x1]  ;;  %v216_v6 = vld [vmem:[%s1593_s0 + $0x638] sm:$0xff] }
  0x17   :  { %256 = vmatpush1.msra.mxu0 %v82_v44  ;;  %327 = vmatpush1.msra.mxu1 %v84_v45  ;;  %v217_v4 = vld [vmem:[%s1593_s0 + $0x640] sm:$0xff]  ;;  %v219_v5 = vld [vmem:[%s1593_s0 + $0x650] sm:$0xff]  ;;  %v218_v7 = vld [vmem:[%s1593_s0 + $0x648] sm:$0xff] }
  0x18   :  { %257 = vmatprep.subr.mxu0 %v70_v46  ;;  %328 = vmatprep.subr.mxu1 %v72_v47  ;;  %v204_v8 = vld [vmem:[%s1593_s0 + $0x5d8] sm:$0xff]  ;;  %v206_v9 = vld [vmem:[%s1593_s0 + $0x5e8] sm:$0xff]  ;;  %v203_v10 = vld [vmem:[%s1593_s0 + $0x5d0] sm:$0xff] }
  0x19   :  { %258 = vmatpush1.msra.mxu0 %v69_v48  ;;  %329 = vmatpush1.msra.mxu1 %v71_v49  ;;  %v205_v11 = vld [vmem:[%s1593_s0 + $0x5e0] sm:$0xff]  ;;  %v191_v12 = vld [vmem:[%s1593_s0 + $0x570] sm:$0xff]  ;;  %v190_v14 = vld [vmem:[%s1593_s0 + $0x568] sm:$0xff] }
  0x1a   :  { %259 = vmatprep.subr.mxu0 %v57_v50  ;;  %330 = vmatprep.subr.mxu1 %v59_v51  ;;  %v193_v13 = vld [vmem:[%s1593_s0 + $0x580] sm:$0xff]  ;;  %v192_v15 = vld [vmem:[%s1593_s0 + $0x578] sm:$0xff]  ;;  %v178_v16 = vld [vmem:[%s1593_s0 + $0x508] sm:$0xff] }
  0x1b   :  { %260 = vmatpush1.msra.mxu0 %v56_v52  ;;  %331 = vmatpush1.msra.mxu1 %v58_v53  ;;  %v180_v17 = vld [vmem:[%s1593_s0 + $0x518] sm:$0xff]  ;;  %v177_v18 = vld [vmem:[%s1593_s0 + $0x500] sm:$0xff]  ;;  %v179_v19 = vld [vmem:[%s1593_s0 + $0x510] sm:$0xff] }
  0x1c   :  { %261 = vmatprep.subr.mxu0 %v44_v54  ;;  %332 = vmatprep.subr.mxu1 %v46_v55  ;;  %v165_v20 = vld [vmem:[%s1593_s0 + $0x4a0] sm:$0xff]  ;;  %v167_v21 = vld [vmem:[%s1593_s0 + $0x4b0] sm:$0xff]  ;;  %v164_v22 = vld [vmem:[%s1593_s0 + $0x498] sm:$0xff] }
  0x1d   :  { %262 = vmatpush1.msra.mxu0 %v43_v56  ;;  %333 = vmatpush1.msra.mxu1 %v45_v57  ;;  %v166_v23 = vld [vmem:[%s1593_s0 + $0x4a8] sm:$0xff]  ;;  %v152_v24 = vld [vmem:[%s1593_s0 + $0x438] sm:$0xff]  ;;  %v151_v26 = vld [vmem:[%s1593_s0 + $0x430] sm:$0xff] }
  0x1e   :  { %263 = vmatprep.subr.mxu0 %v31_v58  ;;  %334 = vmatprep.subr.mxu1 %v33_v59  ;;  %v154_v25 = vld [vmem:[%s1593_s0 + $0x448] sm:$0xff]  ;;  %v153_v27 = vld [vmem:[%s1593_s0 + $0x440] sm:$0xff]  ;;  %v139_v28 = vld [vmem:[%s1593_s0 + $0x3d0] sm:$0xff] }
  0x1f   :  { %264 = vmatpush1.msra.mxu0 %v30_v60  ;;  %335 = vmatpush1.msra.mxu1 %v32_v61  ;;  %v141_v29 = vld [vmem:[%s1593_s0 + $0x3e0] sm:$0xff]  ;;  %v138_v30 = vld [vmem:[%s1593_s0 + $0x3c8] sm:$0xff]  ;;  %v140_v31 = vld [vmem:[%s1593_s0 + $0x3d8] sm:$0xff] }
  0x20   :  { %265 = vmatprep.subr.mxu0 %v18_v62  ;;  %336 = vmatprep.subr.mxu1 %v20_v63  ;;  %v126_v32 = vld [vmem:[%s1593_s0 + $0x368] sm:$0xff]  ;;  %v128_v33 = vld [vmem:[%s1593_s0 + $0x378] sm:$0xff]  ;;  %v125_v34 = vld [vmem:[%s1593_s0 + $0x360] sm:$0xff] }
  0x21   :  { %266 = vmatpush1.msra.mxu0 %v17_v0  ;;  %337 = vmatpush1.msra.mxu1 %v19_v1  ;;  %v127_v35 = vld [vmem:[%s1593_s0 + $0x370] sm:$0xff]  ;;  %v113_v36 = vld [vmem:[%s1593_s0 + $0x300] sm:$0xff]  ;;  %v112_v38 = vld [vmem:[%s1593_s0 + $0x2f8] sm:$0xff] }
  0x22   :  { %300 = vmatmul.mubr.f32.vlgmr.msra.gmra.mxu0 %v1125_v2  ;;  %371 = vmatmul.mubr.f32.vlgmr.msra.gmra.mxu1 %v1125_v2  ;;  %v115_v37 = vld [vmem:[%s1593_s0 + $0x310] sm:$0xff]  ;;  %v114_v39 = vld [vmem:[%s1593_s0 + $0x308] sm:$0xff]  ;;  %v100_v40 = vld [vmem:[%s1593_s0 + $0x298] sm:$0xff] }
  0x23   :  { %377 = vmatprep.subr.mxu0 %v217_v4  ;;  %448 = vmatprep.subr.mxu1 %v219_v5  ;;  %v102_v41 = vld [vmem:[%s1593_s0 + $0x2a8] sm:$0xff]  ;;  %v99_v42 = vld [vmem:[%s1593_s0 + $0x290] sm:$0xff]  ;;  %v101_v43 = vld [vmem:[%s1593_s0 + $0x2a0] sm:$0xff] }
  0x24   :  { %378 = vmatpush1.msra.mxu0 %v216_v6  ;;  %449 = vmatpush1.msra.mxu1 %v218_v7  ;;  %v87_v44 = vld [vmem:[%s1593_s0 + $0x230] sm:$0xff]  ;;  %v89_v45 = vld [vmem:[%s1593_s0 + $0x240] sm:$0xff]  ;;  %v86_v46 = vld [vmem:[%s1593_s0 + $0x228] sm:$0xff] }
  0x25   :  { %379 = vmatprep.subr.mxu0 %v204_v8  ;;  %450 = vmatprep.subr.mxu1 %v206_v9  ;;  %v88_v47 = vld [vmem:[%s1593_s0 + $0x238] sm:$0xff]  ;;  %v74_v48 = vld [vmem:[%s1593_s0 + $0x1c8] sm:$0xff]  ;;  %v73_v50 = vld [vmem:[%s1593_s0 + $0x1c0] sm:$0xff] }
  0x26   :  { %380 = vmatpush1.msra.mxu0 %v203_v10  ;;  %451 = vmatpush1.msra.mxu1 %v205_v11  ;;  %v76_v49 = vld [vmem:[%s1593_s0 + $0x1d8] sm:$0xff]  ;;  %v75_v51 = vld [vmem:[%s1593_s0 + $0x1d0] sm:$0xff]  ;;  %v61_v52 = vld [vmem:[%s1593_s0 + $0x160] sm:$0xff] }
  0x27   :  { %381 = vmatprep.subr.mxu0 %v191_v12  ;;  %452 = vmatprep.subr.mxu1 %v193_v13  ;;  %v63_v53 = vld [vmem:[%s1593_s0 + $0x170] sm:$0xff]  ;;  %v60_v54 = vld [vmem:[%s1593_s0 + $0x158] sm:$0xff]  ;;  %v62_v55 = vld [vmem:[%s1593_s0 + $0x168] sm:$0xff] }
  0x28   :  { %382 = vmatpush1.msra.mxu0 %v190_v14  ;;  %453 = vmatpush1.msra.mxu1 %v192_v15  ;;  %v48_v56 = vld [vmem:[%s1593_s0 + $0xf8] sm:$0xff]  ;;  %v50_v57 = vld [vmem:[%s1593_s0 + $0x108] sm:$0xff]  ;;  %v47_v58 = vld [vmem:[%s1593_s0 + $0xf0] sm:$0xff] }
  0x29   :  { %383 = vmatprep.subr.mxu0 %v178_v16  ;;  %454 = vmatprep.subr.mxu1 %v180_v17  ;;  %v49_v59 = vld [vmem:[%s1593_s0 + $0x100] sm:$0xff]  ;;  %v35_v60 = vld [vmem:[%s1593_s0 + $0x90] sm:$0xff]  ;;  %v34_v62 = vld [vmem:[%s1593_s0 + $0x88] sm:$0xff] }
  0x2a   :  { %384 = vmatpush1.msra.mxu0 %v177_v18  ;;  %455 = vmatpush1.msra.mxu1 %v179_v19  ;;  %v37_v61 = vld [vmem:[%s1593_s0 + $0xa0] sm:$0xff]  ;;  %v36_v63 = vld [vmem:[%s1593_s0 + $0x98] sm:$0xff]  ;;  %v22_v0 = vld [vmem:[%s1593_s0 + $0x28] sm:$0xff] }
  0x2b   :  { %385 = vmatprep.subr.mxu0 %v165_v20  ;;  %456 = vmatprep.subr.mxu1 %v167_v21  ;;  %v24_v1 = vld [vmem:[%s1593_s0 + $0x38] sm:$0xff]  ;;  %v21_v4 = vld [vmem:[%s1593_s0 + $0x20] sm:$0xff]  ;;  %v23_v5 = vld [vmem:[%s1593_s0 + $0x30] sm:$0xff] }
  0x2c   :  { %386 = vmatpush1.msra.mxu0 %v164_v22  ;;  %457 = vmatpush1.msra.mxu1 %v166_v23  ;;  %v221_v6 = vld [vmem:[%s1593_s0 + $0x660] sm:$0xff]  ;;  %v223_v7 = vld [vmem:[%s1593_s0 + $0x670] sm:$0xff]  ;;  %v220_v8 = vld [vmem:[%s1593_s0 + $0x658] sm:$0xff] }
  0x2d   :  { %387 = vmatprep.subr.mxu0 %v152_v24  ;;  %458 = vmatprep.subr.mxu1 %v154_v25  ;;  %v222_v9 = vld [vmem:[%s1593_s0 + $0x668] sm:$0xff]  ;;  %v208_v10 = vld [vmem:[%s1593_s0 + $0x5f8] sm:$0xff]  ;;  %v207_v12 = vld [vmem:[%s1593_s0 + $0x5f0] sm:$0xff] }
  0x2e   :  { %388 = vmatpush1.msra.mxu0 %v151_v26  ;;  %459 = vmatpush1.msra.mxu1 %v153_v27  ;;  %v210_v11 = vld [vmem:[%s1593_s0 + $0x608] sm:$0xff]  ;;  %v209_v13 = vld [vmem:[%s1593_s0 + $0x600] sm:$0xff]  ;;  %v195_v14 = vld [vmem:[%s1593_s0 + $0x590] sm:$0xff] }
  0x2f   :  { %389 = vmatprep.subr.mxu0 %v139_v28  ;;  %460 = vmatprep.subr.mxu1 %v141_v29  ;;  %v197_v15 = vld [vmem:[%s1593_s0 + $0x5a0] sm:$0xff]  ;;  %v194_v16 = vld [vmem:[%s1593_s0 + $0x588] sm:$0xff]  ;;  %v196_v17 = vld [vmem:[%s1593_s0 + $0x598] sm:$0xff] }
  0x30   :  { %390 = vmatpush1.msra.mxu0 %v138_v30  ;;  %461 = vmatpush1.msra.mxu1 %v140_v31  ;;  %v182_v18 = vld [vmem:[%s1593_s0 + $0x528] sm:$0xff]  ;;  %v184_v19 = vld [vmem:[%s1593_s0 + $0x538] sm:$0xff]  ;;  %v181_v20 = vld [vmem:[%s1593_s0 + $0x520] sm:$0xff] }
  0x31   :  { %391 = vmatprep.subr.mxu0 %v126_v32  ;;  %462 = vmatprep.subr.mxu1 %v128_v33  ;;  %v183_v21 = vld [vmem:[%s1593_s0 + $0x530] sm:$0xff]  ;;  %v169_v22 = vld [vmem:[%s1593_s0 + $0x4c0] sm:$0xff]  ;;  %v168_v24 = vld [vmem:[%s1593_s0 + $0x4b8] sm:$0xff] }
  0x32   :  { %392 = vmatpush1.msra.mxu0 %v125_v34  ;;  %463 = vmatpush1.msra.mxu1 %v127_v35  ;;  %v171_v23 = vld [vmem:[%s1593_s0 + $0x4d0] sm:$0xff]  ;;  %v170_v25 = vld [vmem:[%s1593_s0 + $0x4c8] sm:$0xff]  ;;  %v156_v26 = vld [vmem:[%s1593_s0 + $0x458] sm:$0xff] }
  0x33   :  { %393 = vmatprep.subr.mxu0 %v113_v36  ;;  %464 = vmatprep.subr.mxu1 %v115_v37  ;;  %v158_v27 = vld [vmem:[%s1593_s0 + $0x468] sm:$0xff]  ;;  %v155_v28 = vld [vmem:[%s1593_s0 + $0x450] sm:$0xff]  ;;  %v157_v29 = vld [vmem:[%s1593_s0 + $0x460] sm:$0xff] }
  0x34   :  { %394 = vmatpush1.msra.mxu0 %v112_v38  ;;  %465 = vmatpush1.msra.mxu1 %v114_v39  ;;  %v143_v30 = vld [vmem:[%s1593_s0 + $0x3f0] sm:$0xff]  ;;  %v145_v31 = vld [vmem:[%s1593_s0 + $0x400] sm:$0xff]  ;;  %v142_v32 = vld [vmem:[%s1593_s0 + $0x3e8] sm:$0xff] }
  0x35   :  { %395 = vmatprep.subr.mxu0 %v100_v40  ;;  %466 = vmatprep.subr.mxu1 %v102_v41  ;;  %v144_v33 = vld [vmem:[%s1593_s0 + $0x3f8] sm:$0xff]  ;;  %v130_v34 = vld [vmem:[%s1593_s0 + $0x388] sm:$0xff]  ;;  %v129_v36 = vld [vmem:[%s1593_s0 + $0x380] sm:$0xff] }
  0x36   :  { %396 = vmatpush1.msra.mxu0 %v99_v42  ;;  %467 = vmatpush1.msra.mxu1 %v101_v43  ;;  %v132_v35 = vld [vmem:[%s1593_s0 + $0x398] sm:$0xff]  ;;  %v131_v37 = vld [vmem:[%s1593_s0 + $0x390] sm:$0xff]  ;;  %v117_v38 = vld [vmem:[%s1593_s0 + $0x320] sm:$0xff] }
  0x37   :  { %397 = vmatprep.subr.mxu0 %v87_v44  ;;  %468 = vmatprep.subr.mxu1 %v89_v45  ;;  %v119_v39 = vld [vmem:[%s1593_s0 + $0x330] sm:$0xff]  ;;  %v116_v40 = vld [vmem:[%s1593_s0 + $0x318] sm:$0xff]  ;;  %v118_v41 = vld [vmem:[%s1593_s0 + $0x328] sm:$0xff] }
  0x38   :  { %398 = vmatpush1.msra.mxu0 %v86_v46  ;;  %469 = vmatpush1.msra.mxu1 %v88_v47  ;;  %v104_v42 = vld [vmem:[%s1593_s0 + $0x2b8] sm:$0xff]  ;;  %v106_v43 = vld [vmem:[%s1593_s0 + $0x2c8] sm:$0xff]  ;;  %v103_v44 = vld [vmem:[%s1593_s0 + $0x2b0] sm:$0xff] }
  0x39   :  { %399 = vmatprep.subr.mxu0 %v74_v48  ;;  %470 = vmatprep.subr.mxu1 %v76_v49  ;;  %v105_v45 = vld [vmem:[%s1593_s0 + $0x2c0] sm:$0xff]  ;;  %v91_v46 = vld [vmem:[%s1593_s0 + $0x250] sm:$0xff]  ;;  %v90_v48 = vld [vmem:[%s1593_s0 + $0x248] sm:$0xff] }
  0x3a   :  { %400 = vmatpush1.msra.mxu0 %v73_v50  ;;  %471 = vmatpush1.msra.mxu1 %v75_v51  ;;  %v93_v47 = vld [vmem:[%s1593_s0 + $0x260] sm:$0xff]  ;;  %v92_v49 = vld [vmem:[%s1593_s0 + $0x258] sm:$0xff]  ;;  %v78_v50 = vld [vmem:[%s1593_s0 + $0x1e8] sm:$0xff] }
  0x3b   :  { %401 = vmatprep.subr.mxu0 %v61_v52  ;;  %472 = vmatprep.subr.mxu1 %v63_v53  ;;  %v80_v51 = vld [vmem:[%s1593_s0 + $0x1f8] sm:$0xff]  ;;  %v77_v52 = vld [vmem:[%s1593_s0 + $0x1e0] sm:$0xff]  ;;  %v79_v53 = vld [vmem:[%s1593_s0 + $0x1f0] sm:$0xff] }
  0x3c   :  { %402 = vmatpush1.msra.mxu0 %v60_v54  ;;  %473 = vmatpush1.msra.mxu1 %v62_v55  ;;  %v65_v54 = vld [vmem:[%s1593_s0 + $0x180] sm:$0xff]  ;;  %v67_v55 = vld [vmem:[%s1593_s0 + $0x190] sm:$0xff] }
  0x3d   :  { %403 = vmatprep.subr.mxu0 %v48_v56  ;;  %474 = vmatprep.subr.mxu1 %v50_v57  ;;  %v64_v56 = vld [vmem:[%s1593_s0 + $0x178] sm:$0xff]  ;;  %v66_v57 = vld [vmem:[%s1593_s0 + $0x188] sm:$0xff] }
  0x3e   :  { %404 = vmatpush1.msra.mxu0 %v47_v58  ;;  %475 = vmatpush1.msra.mxu1 %v49_v59  ;;  %v52_v58 = vld [vmem:[%s1593_s0 + $0x118] sm:$0xff]  ;;  %v54_v59 = vld [vmem:[%s1593_s0 + $0x128] sm:$0xff] }
  0x3f   :  { %405 = vmatprep.subr.mxu0 %v35_v60  ;;  %476 = vmatprep.subr.mxu1 %v37_v61  ;;  %v51_v60 = vld [vmem:[%s1593_s0 + $0x110] sm:$0xff]  ;;  %v53_v61 = vld [vmem:[%s1593_s0 + $0x120] sm:$0xff] }
  0x40   :  { %406 = vmatpush1.msra.mxu0 %v34_v62  ;;  %477 = vmatpush1.msra.mxu1 %v36_v63  ;;  %v39_v62 = vld [vmem:[%s1593_s0 + $0xb0] sm:$0xff]  ;;  %v41_v63 = vld [vmem:[%s1593_s0 + $0xc0] sm:$0xff] }
  0x41   :  { %407 = vmatprep.subr.mxu0 %v22_v0  ;;  %478 = vmatprep.subr.mxu1 %v24_v1  ;;  %v38_v0 = vld [vmem:[%s1593_s0 + $0xa8] sm:$0xff]  ;;  %v40_v1 = vld [vmem:[%s1593_s0 + $0xb8] sm:$0xff] }
  0x42   :  { %408 = vmatpush1.msra.mxu0 %v21_v4  ;;  %441 = vmatprep.mubr.f32.mxu0 %v901_v3  ;;  %v26_v4 = vld [vmem:[%s1593_s0 + $0x48] sm:$0xff] }
  0x43   :  { %479 = vmatpush1.msra.mxu1 %v23_v5  ;;  %512 = vmatprep.mubr.f32.mxu1 %v901_v3  ;;  %v28_v5 = vld [vmem:[%s1593_s0 + $0x58] sm:$0xff] }
  0x44   :  { %442 = vmatmul.mubr.f32.vlgmr.msra.gmra.mxu0 %v1125_v2  ;;  %513 = vmatmul.mubr.f32.vlgmr.msra.gmra.mxu1 %v1125_v2 }
  0x45   :  { %519 = vmatprep.subr.mxu0 %v221_v6  ;;  %590 = vmatprep.subr.mxu1 %v223_v7  ;;  %v25_v6 = vld [vmem:[%s1593_s0 + $0x40] sm:$0xff]  ;;  %v27_v7 = vld [vmem:[%s1593_s0 + $0x50] sm:$0xff] }
  0x46   :  { %520 = vmatpush1.msra.mxu0 %v220_v8  ;;  %591 = vmatpush1.msra.mxu1 %v222_v9  ;;  %v224_v8 = vld [vmem:[%s1593_s0 + $0x678] sm:$0xff]  ;;  %v225_v9 = vld [vmem:[#allocation2] sm:$0x1] }
  0x47   :  { %521 = vmatprep.subr.mxu0 %v208_v10  ;;  %592 = vmatprep.subr.mxu1 %v210_v11  ;;  %v902_v10 = vmov 0   ;;  %v211_v11 = vld [vmem:[%s1593_s0 + $0x610] sm:$0xff] }
  0x48   :  { %522 = vmatpush1.msra.mxu0 %v207_v12  ;;  %593 = vmatpush1.msra.mxu1 %v209_v13  ;;  %v198_v12 = vld [vmem:[%s1593_s0 + $0x5a8] sm:$0xff]  ;;  %v185_v13 = vld [vmem:[%s1593_s0 + $0x540] sm:$0xff] }
  0x49   :  { %523 = vmatprep.subr.mxu0 %v195_v14  ;;  %594 = vmatprep.subr.mxu1 %v197_v15  ;;  %v172_v14 = vld [vmem:[%s1593_s0 + $0x4d8] sm:$0xff]  ;;  %v159_v15 = vld [vmem:[%s1593_s0 + $0x470] sm:$0xff] }
  0x4a   :  { %524 = vmatpush1.msra.mxu0 %v194_v16  ;;  %595 = vmatpush1.msra.mxu1 %v196_v17  ;;  %v146_v16 = vld [vmem:[%s1593_s0 + $0x408] sm:$0xff]  ;;  %v133_v17 = vld [vmem:[%s1593_s0 + $0x3a0] sm:$0xff] }
  0x4b   :  { %525 = vmatprep.subr.mxu0 %v182_v18  ;;  %596 = vmatprep.subr.mxu1 %v184_v19  ;;  %v120_v18 = vld [vmem:[%s1593_s0 + $0x338] sm:$0xff]  ;;  %v107_v19 = vld [vmem:[%s1593_s0 + $0x2d0] sm:$0xff] }
  0x4c   :  { %526 = vmatpush1.msra.mxu0 %v181_v20  ;;  %597 = vmatpush1.msra.mxu1 %v183_v21  ;;  %v94_v20 = vld [vmem:[%s1593_s0 + $0x268] sm:$0xff]  ;;  %v81_v21 = vld [vmem:[%s1593_s0 + $0x200] sm:$0xff] }
  0x4d   :  { %527 = vmatprep.subr.mxu0 %v169_v22  ;;  %598 = vmatprep.subr.mxu1 %v171_v23  ;;  %v68_v22 = vld [vmem:[%s1593_s0 + $0x198] sm:$0xff]  ;;  %v55_v23 = vld [vmem:[%s1593_s0 + $0x130] sm:$0xff] }
  0x4e   :  { %528 = vmatpush1.msra.mxu0 %v168_v24  ;;  %599 = vmatpush1.msra.mxu1 %v170_v25  ;;  %v42_v24 = vld [vmem:[%s1593_s0 + $0xc8] sm:$0xff]  ;;  %v29_v25 = vld [vmem:[%s1593_s0 + $0x60] sm:$0xff] }
  0x4f   :  { %529 = vmatprep.subr.mxu0 %v156_v26  ;;  %600 = vmatprep.subr.mxu1 %v158_v27  ;;  %v231_v26 = vlaneseq }
  0x50   :  { %530 = vmatpush1.msra.mxu0 %v155_v28  ;;  %601 = vmatpush1.msra.mxu1 %v157_v29 }
  0x51   :  { %531 = vmatprep.subr.mxu0 %v143_v30  ;;  %602 = vmatprep.subr.mxu1 %v145_v31  ;;  %v232_v27 = vshrl.u32 %v231_v26, 7  ;;  %vm837_vm1 = vcmp.lt.s32.totalorder %v231_v26, 544 }
  0x52   :  { %532 = vmatpush1.msra.mxu0 %v142_v32  ;;  %603 = vmatpush1.msra.mxu1 %v144_v33  ;;  %v904_v32 = vmov 1966171168  }
  0x53   :  { %533 = vmatprep.subr.mxu0 %v130_v34  ;;  %604 = vmatprep.subr.mxu1 %v132_v35  ;;  %v233_v28 = vsub.s32 0, %v232_v27  ;;  %v749_v33 = vunpack.c.l.s4 %v904_v32 }
  0x54   :  { %534 = vmatpush1.msra.mxu0 %v129_v36  ;;  %605 = vmatpush1.msra.mxu1 %v131_v37 }
  0x55   :  { %535 = vmatprep.subr.mxu0 %v117_v38  ;;  %606 = vmatprep.subr.mxu1 %v119_v39  ;;  %v750_v37 = vunpack.c.0.s8 %v749_v33 }
  0x56   :  { %536 = vmatpush1.msra.mxu0 %v116_v40  ;;  %607 = vmatpush1.msra.mxu1 %v118_v41 }
  0x57   :  { %537 = vmatprep.subr.mxu0 %v104_v42  ;;  %608 = vmatprep.subr.mxu1 %v106_v43 }
  0x58   :  { %538 = vmatpush1.msra.mxu0 %v103_v44  ;;  %609 = vmatpush1.msra.mxu1 %v105_v45 }
  0x59   :  { %539 = vmatprep.subr.mxu0 %v91_v46  ;;  %610 = vmatprep.subr.mxu1 %v93_v47 }
  0x5a   :  { %540 = vmatpush1.msra.mxu0 %v90_v48  ;;  %611 = vmatpush1.msra.mxu1 %v92_v49 }
  0x5b   :  { %541 = vmatprep.subr.mxu0 %v78_v50  ;;  %612 = vmatprep.subr.mxu1 %v80_v51 }
  0x5c   :  { %542 = vmatpush1.msra.mxu0 %v77_v52  ;;  %613 = vmatpush1.msra.mxu1 %v79_v53 }
  0x5d   :  { %543 = vmatprep.subr.mxu0 %v65_v54  ;;  %614 = vmatprep.subr.mxu1 %v67_v55 }
  0x5e   :  { %544 = vmatpush1.msra.mxu0 %v64_v56  ;;  %615 = vmatpush1.msra.mxu1 %v66_v57 }
  0x5f   :  { %545 = vmatprep.subr.mxu0 %v52_v58  ;;  %616 = vmatprep.subr.mxu1 %v54_v59 }
  0x60   :  { %546 = vmatpush1.msra.mxu0 %v51_v60  ;;  %617 = vmatpush1.msra.mxu1 %v53_v61 }
  0x61   :  { %547 = vmatprep.subr.mxu0 %v39_v62  ;;  %618 = vmatprep.subr.mxu1 %v41_v63 }
  0x62   :  { %548 = vmatpush1.msra.mxu0 %v38_v0  ;;  %619 = vmatpush1.msra.mxu1 %v40_v1 }
  0x63   :  { %549 = vmatprep.subr.mxu0 %v26_v4  ;;  %620 = vmatprep.subr.mxu1 %v28_v5 }
  0x64   :  { %550 = vmatpush1.msra.mxu0 %v25_v6  ;;  %583 = vmatprep.mubr.f32.mxu0 %v901_v3 }
  0x65   :  { %621 = vmatpush1.msra.mxu1 %v27_v7  ;;  %654 = vmatprep.mubr.f32.mxu1 %v901_v3 }
  0x66   :  { %584 = vmatmul.mubr.f32.vlgmr.msra.gmra.mxu0 %v1125_v2  ;;  %655 = vmatmul.mubr.f32.vlgmr.msra.gmra.mxu1 %v1125_v2 }
  0x67   :  { %861 = vmatprep.subr.mxu0 %v901_v3  ;;  %900 = vset.pattern.permute.xlu0 %v902_v10 }
  0x68   :  { %862 = vmatpush3.msra.mxu0 %v224_v8  ;;  %228 = vperm.xlu0 %900, %v225_v9  }
  0x69   :  { %863 = vmatprep.subr.mxu0 %v901_v3  ;;  %893 = vmatprep.mubr.msk.f32.mxu0 %vm903_vm0, %v901_v3 }
  0x6a   :  { %864 = vmatpush3.msra.mxu0 %v211_v11 }
  0x6b   :  { %865 = vmatprep.subr.mxu0 %v901_v3 }
  0x6c   :  { %866 = vmatpush3.msra.mxu0 %v198_v12 }
  0x6d   :  { %867 = vmatprep.subr.mxu0 %v901_v3 }
  0x6e   :  { %868 = vmatpush3.msra.mxu0 %v185_v13 }
  0x6f   :  { %869 = vmatprep.subr.mxu0 %v901_v3 }
  0x70   :  { %870 = vmatpush3.msra.mxu0 %v172_v14 }
  0x71   :  { %871 = vmatprep.subr.mxu0 %v901_v3 }
  0x72   :  { %872 = vmatpush3.msra.mxu0 %v159_v15 }
  0x73   :  { %873 = vmatprep.subr.mxu0 %v901_v3 }
  0x74   :  { %874 = vmatpush3.msra.mxu0 %v146_v16 }
  0x75   :  { %875 = vmatprep.subr.mxu0 %v901_v3 }
  0x76   :  { %876 = vmatpush3.msra.mxu0 %v133_v17 }
  0x77   :  { %877 = vmatprep.subr.mxu0 %v901_v3 }
  0x78   :  { %878 = vmatpush3.msra.mxu0 %v120_v18 }
  0x79   :  { %879 = vmatprep.subr.mxu0 %v901_v3 }
  0x7a   :  { %880 = vmatpush3.msra.mxu0 %v107_v19 }
  0x7b   :  { %881 = vmatprep.subr.mxu0 %v901_v3 }
  0x7c   :  { %882 = vmatpush3.msra.mxu0 %v94_v20 }
  0x7d   :  { %883 = vmatprep.subr.mxu0 %v901_v3 }
  0x7e   :  { %884 = vmatpush3.msra.mxu0 %v81_v21 }
  0x7f   :  { %885 = vmatprep.subr.mxu0 %v901_v3 }
  0x80   :  { %886 = vmatpush3.msra.mxu0 %v68_v22 }
  0x81   :  { %887 = vmatprep.subr.mxu0 %v901_v3 }
  0x82   :  { %888 = vmatpush3.msra.mxu0 %v55_v23 }
  0x83   :  { %889 = vmatprep.subr.mxu0 %v901_v3 }
  0x84   :  { %890 = vmatpush3.msra.mxu0 %v42_v24 }
  0x85   :  { %891 = vmatprep.subr.mxu0 %v901_v3  ;;  %v753_v3 = vsub.s32 %v750_v37, %v232_v27 }
  0x86   :  { %892 = vmatpush3.msra.mxu0 %v29_v25 }
  0x87   :  { %894 = vmatmul.mubr.f32.vlgmr.msra.gmra.mxu0 %v1125_v2 }
  0xe2   :  { %v301_v29 = vpop.f32.mrf.mxu0  ;;  %v372_v31 = vpop.f32.mrf.mxu1 }
  0xe3   :  { %v229_v30 = vpop.permute.xlu0 %228 }
  0xe4   :  { %v234_v34 = vrot.slane %v229_v30, %v233_v28  ;;  %v303_v35 = vpop.f32.mrf.mxu0  ;;  %v374_v36 = vpop.f32.mrf.mxu1 }
  0xe6   :  { %v302_v38 = vadd.f32 %v301_v29, %v234_v34  ;;  %v373_v39 = vadd.f32 %v372_v31, %v234_v34  ;;  %v304_v40 = vadd.f32 %v303_v35, %v234_v34  ;;  %v375_v41 = vadd.f32 %v374_v36, %v234_v34 }
  0xe8   :  { %v744_v42 = vcombine.low %v302_v38, %v304_v40  ;;  %v745_v43 = vcombine.low %v373_v39, %v375_v41 }
  0xea   :  { %v754_v49 = vrot.slane %v744_v42, %v753_v3  ;;  %v761_v50 = vrot.slane %v745_v43, %v753_v3 }
  0xec   :  { %v776_v55 = vcombine.low %v754_v49, %v761_v50 }
  0xee   :  { %v784_v59 = vrot.slane %v776_v55, %v753_v3 }
 0x104   :  { %v443_v2 = vpop.f32.mrf.mxu0  ;;  %v514_v44 = vpop.f32.mrf.mxu1 }
 0x105   :  { %v444_v45 = vadd.f32 %v443_v2, %v234_v34  ;;  %v515_v46 = vadd.f32 %v514_v44, %v234_v34 }
 0x106   :  { %v445_v47 = vpop.f32.mrf.mxu0  ;;  %v516_v48 = vpop.f32.mrf.mxu1 }
 0x107   :  { %v446_v51 = vadd.f32 %v445_v47, %v234_v34  ;;  %v517_v52 = vadd.f32 %v516_v48, %v234_v34 }
 0x109   :  { %v746_v53 = vcombine.low %v444_v45, %v446_v51  ;;  %v747_v54 = vcombine.low %v515_v46, %v517_v52 }
 0x10b   :  { %v768_v56 = vrot.slane %v746_v53, %v753_v3  ;;  %v775_v57 = vrot.slane %v747_v54, %v753_v3 }
 0x10d   :  { %v777_v58 = vcombine.low %v768_v56, %v775_v57 }
 0x10f   :  { %v791_v60 = vrot.slane %v777_v58, %v753_v3 }
 0x111   :  { %v792_v61 = vcombine.low %v784_v59, %v791_v60 }
 0x113   :  { %834 = vst [vmem:[%s1596_s3] sm:$0xff] %v792_v61 }
 0x126   :  { %v585_v62 = vpop.f32.mrf.mxu0  ;;  %v656_v63 = vpop.f32.mrf.mxu1 }
 0x127   :  { %v586_v4 = vadd.f32 %v585_v62, %v234_v34  ;;  %v657_v5 = vadd.f32 %v656_v63, %v234_v34 }
 0x128   :  { %v587_v0 = vpop.f32.mrf.mxu0  ;;  %v658_v1 = vpop.f32.mrf.mxu1 }
 0x129   :  { %v588_v6 = vadd.f32 %v587_v0, %v234_v34  ;;  %v659_v7 = vadd.f32 %v658_v1, %v234_v34 }
 0x12b   :  { %v793_v8 = vcombine.low %v586_v4, %v588_v6  ;;  %v794_v9 = vcombine.low %v657_v5, %v659_v7 }
 0x12d   :  { %v801_v10 = vrot.slane %v793_v8, %v753_v3  ;;  %v808_v11 = vrot.slane %v794_v9, %v753_v3 }
 0x12f   :  { %v816_v13 = vcombine.low %v801_v10, %v808_v11 }
 0x131   :  { %v823_v17 = vrot.slane %v816_v13, %v753_v3 }
 0x147   :  { %v727_v12 = vpop.f32.mrf.mxu0 }
 0x148   :  { %v728_v14 = vadd.f32 %v727_v12, %v234_v34 }
 0x149   :  { %v895_v15 = vpop.f32.mrf.mxu0 }
 0x14a   :  { %v815_v16 = vrot.slane %v728_v14, %v753_v3 }
 0x14c   :  { %v830_v18 = vrot.slane %v815_v16, %v753_v3 }
 0x14e   :  { %v831_v19 = vcombine.low %v823_v17, %v830_v18 }
 0x150   :  { %839 = vst.msk [vmem:[%s1596_s3 + $0x8] sm:$0x1f] %vm837_vm1, %v831_v19 }

</bundles_post_ra>
